<compile_context>
chip_gen: v7x
topology: tpu7x:2x2x1
jax: 0.10.0
libtpu: 0.0.40
codegen_flags: <defaults>
</compile_context>

<pallas_src>
import functools
import math

import jax
import jax.numpy as jnp
from jax.experimental import pallas as pl
from jax.experimental.pallas import tpu as pltpu


# ------------------------------ tiling helpers ------------------------------

def _largest_tile(n, cands):
    """Largest candidate that divides n, else n (block == full dim is legal)."""
    for c in cands:
        if n % c == 0:
            return c
    return n


def _split_tile(n, cands):
    """Like _largest_tile but prefers >= 2 grid steps (megacore sharding)."""
    for c in cands:
        if n % c == 0 and n // c >= 2:
            return c
    return n


def _cparams(*sem):
    return pltpu.CompilerParams(
        dimension_semantics=sem,
        vmem_limit_bytes=48 * 1024 * 1024,   # within v7x's 64 MiB physical VMEM
    )


# ----------------------------- Pallas kernels ------------------------------

def _linear_kernel(x_ref, w_ref, b_ref, o_ref, *, pre_act, post_act):
    x = x_ref[...].astype(jnp.float32)
    if pre_act == "silu":
        x = x * jax.nn.sigmoid(x)
    y = jnp.dot(x.astype(w_ref.dtype), w_ref[...],
                preferred_element_type=jnp.float32)
    y = y + b_ref[...].astype(jnp.float32)
    if post_act == "silu":
        y = y * jax.nn.sigmoid(y)
    elif post_act == "gelu_tanh":
        y = 0.5 * y * (1.0 + jnp.tanh(0.7978845608028654 * (y + 0.044715 * y * y * y)))
    o_ref[...] = y


def linear_pallas(x, w, b, *, pre_act="none", post_act="none"):
    """y = post_act(pre_act(x) @ w + b).  x:(M,K) f32, w:(K,N) bf16, b:(N,) f32."""
    M, K = x.shape
    N = w.shape[1]
    bm = _split_tile(M, (256, 128, 64, 32, 16, 8))
    bn = _largest_tile(N, (512, 384, 256, 128))
    grid = (M // bm, N // bn)
    # TODO(synk): add K-tiling with a VMEM f32 accumulator for very large K.
    return pl.pallas_call(
        functools.partial(_linear_kernel, pre_act=pre_act, post_act=post_act),
        out_shape=jax.ShapeDtypeStruct((M, N), jnp.float32),
        grid=grid,
        in_specs=[
            pl.BlockSpec((bm, K), lambda i, j: (i, 0)),
            pl.BlockSpec((K, bn), lambda i, j: (0, j)),
            pl.BlockSpec((1, bn), lambda i, j: (0, j)),
        ],
        out_specs=pl.BlockSpec((bm, bn), lambda i, j: (i, j)),
        compiler_params=_cparams("parallel", "parallel"),
    )(x, w, b.reshape(1, N))


def _ln_mod_linear_kernel(x_ref, sh_ref, sc_ref, w_ref, b_ref, o_ref, *, post_act):
    # LayerNorm(elementwise_affine=False, eps=1e-6), adaLN modulate, then matmul.
    x = x_ref[0].astype(jnp.float32)                       # (bt, D)
    mu = jnp.mean(x, axis=-1, keepdims=True)
    xc = x - mu
    var = jnp.mean(xc * xc, axis=-1, keepdims=True)        # biased, as nn.LayerNorm
    xn = xc * jax.lax.rsqrt(var + 1e-6)
    xm = xn * (1.0 + sc_ref[0].astype(jnp.float32)) + sh_ref[0].astype(jnp.float32)
    y = jnp.dot(xm.astype(w_ref.dtype), w_ref[...],
                preferred_element_type=jnp.float32)
    y = y + b_ref[...].astype(jnp.float32)
    if post_act == "gelu_tanh":
        y = 0.5 * y * (1.0 + jnp.tanh(0.7978845608028654 * (y + 0.044715 * y * y * y)))
    o_ref[0] = y


def ln_mod_linear_pallas(x, shift, scale, w, b, *, post_act="none"):
    """(LN+modulate(x)) @ w + b, fused.  x:(B,T,D), shift/scale:(B,D), w:(D,N)."""
    B, T, D = x.shape
    N = w.shape[1]
    bt = _largest_tile(T, (256, 128))
    bn = _largest_tile(N, (512, 384, 256, 128))
    grid = (B, T // bt, N // bn)
    return pl.pallas_call(
        functools.partial(_ln_mod_linear_kernel, post_act=post_act),
        out_shape=jax.ShapeDtypeStruct((B, T, N), jnp.float32),
        grid=grid,
        in_specs=[
            pl.BlockSpec((1, bt, D), lambda bb, ti, ni: (bb, ti, 0)),
            pl.BlockSpec((1, 1, D), lambda bb, ti, ni: (bb, 0, 0)),
            pl.BlockSpec((1, 1, D), lambda bb, ti, ni: (bb, 0, 0)),
            pl.BlockSpec((D, bn), lambda bb, ti, ni: (0, ni)),
            pl.BlockSpec((1, bn), lambda bb, ti, ni: (0, ni)),
        ],
        out_specs=pl.BlockSpec((1, bt, bn), lambda bb, ti, ni: (bb, ti, ni)),
        compiler_params=_cparams("parallel", "parallel", "parallel"),
    )(x, shift.reshape(B, 1, D), scale.reshape(B, 1, D), w, b.reshape(1, N))


def _linear_gate_add_kernel(x_ref, res_ref, g_ref, w_ref, b_ref, o_ref):
    x = x_ref[0].astype(jnp.float32)                        # (bt, K)
    y = jnp.dot(x.astype(w_ref.dtype), w_ref[...],
                preferred_element_type=jnp.float32)
    y = y + b_ref[...].astype(jnp.float32)
    o_ref[0] = res_ref[0] + g_ref[0].astype(jnp.float32) * y


def linear_gate_add_pallas(x, res, gate, w, b):
    """res + gate[:,None,:] * (x @ w + b).  x:(B,T,K), res:(B,T,D), gate:(B,D)."""
    B, T, K = x.shape
    D = w.shape[1]
    bt = _largest_tile(T, (256, 128))
    bd = _largest_tile(D, (512, 384, 256, 128))
    grid = (B, T // bt, D // bd)
    return pl.pallas_call(
        _linear_gate_add_kernel,
        out_shape=jax.ShapeDtypeStruct((B, T, D), jnp.float32),
        grid=grid,
        in_specs=[
            pl.BlockSpec((1, bt, K), lambda bb, ti, di: (bb, ti, 0)),
            pl.BlockSpec((1, bt, bd), lambda bb, ti, di: (bb, ti, di)),
            pl.BlockSpec((1, 1, bd), lambda bb, ti, di: (bb, 0, di)),
            pl.BlockSpec((K, bd), lambda bb, ti, di: (0, di)),
            pl.BlockSpec((1, bd), lambda bb, ti, di: (0, di)),
        ],
        out_specs=pl.BlockSpec((1, bt, bd), lambda bb, ti, di: (bb, ti, di)),
        compiler_params=_cparams("parallel", "parallel", "parallel"),
    )(x, res, gate.reshape(B, 1, D), w, b.reshape(1, D))


def _attn_kernel(q_ref, k_ref, v_ref, o_ref, *, H, hd, scale):
    # q_ref/k_ref/v_ref are lane-dense (1, T, D) slices of the (B, T, 3D) qkv.
    q = q_ref[0]
    k = k_ref[0]
    v = v_ref[0]
    outs = []
    for h in range(H):                                      # static head loop
        sl = slice(h * hd, (h + 1) * hd)
        qh = (q[:, sl] * scale).astype(jnp.bfloat16)
        kh = k[:, sl].astype(jnp.bfloat16)
        vh = v[:, sl].astype(jnp.bfloat16)
        # q @ k^T via dot_general (no explicit transpose needed).
        s = jax.lax.dot_general(qh, kh, (((1,), (1,)), ((), ())),
                                preferred_element_type=jnp.float32)
        s = s - jnp.max(s, axis=-1, keepdims=True)
        p = jnp.exp(s)
        p = p * pl.reciprocal(jnp.sum(p, axis=-1, keepdims=True), approx=True)
        outs.append(jnp.dot(p.astype(jnp.bfloat16), vh,
                            preferred_element_type=jnp.float32))
    o_ref[0] = jnp.concatenate(outs, axis=-1)               # lane-dense (T, D) store


def attention_pallas(qkv, num_heads):
    """Multi-head softmax attention.  qkv:(B, T, 3D) -> (B, T, D)."""
    B, T, threeD = qkv.shape
    D = threeD // 3
    hd = D // num_heads
    scale = 1.0 / math.sqrt(hd)
    # TODO(synk): flash-style KV tiling (online softmax) for long T / v7x 64MiB VMEM.

    def col_spec(col):
        return pl.BlockSpec((1, T, D), lambda bb: (bb, 0, col))

    return pl.pallas_call(
        functools.partial(_attn_kernel, H=num_heads, hd=hd, scale=scale),
        out_shape=jax.ShapeDtypeStruct((B, T, D), jnp.float32),
        grid=(B,),
        in_specs=[col_spec(0), col_spec(1), col_spec(2)],
        out_specs=pl.BlockSpec((1, T, D), lambda bb: (bb, 0, 0)),
        compiler_params=_cparams("parallel"),
    )(qkv, qkv, qkv)


def _temb_kernel(f_ref, w0_ref, b0_ref, w1_ref, b1_ref, o_ref):
    h = jnp.dot(f_ref[...].astype(w0_ref.dtype), w0_ref[...],
                preferred_element_type=jnp.float32) + b0_ref[...].astype(jnp.float32)
    h = h * jax.nn.sigmoid(h)                               # SiLU in f32
    y = jnp.dot(h.astype(w1_ref.dtype), w1_ref[...],
                preferred_element_type=jnp.float32) + b1_ref[...].astype(jnp.float32)
    o_ref[...] = y


def temb_mlp_pallas(freq, w0, b0, w1, b1):
    """TimestepEmbedder MLP: Linear -> SiLU -> Linear, fused into one call."""
    B = freq.shape[0]
    D = w1.shape[1]
    return pl.pallas_call(
        _temb_kernel,
        out_shape=jax.ShapeDtypeStruct((B, D), jnp.float32),
    )(freq, w0, b0.reshape(1, -1), w1, b1.reshape(1, -1))


# ------------------------------- glue (JAX) ---------------------------------

def patchify(x, p):
    """NCHW -> (N, T, C*p*p) with (C, p, p) flattening order == Conv2d weight order."""
    N, C, H, W = x.shape
    hp, wp = H // p, W // p
    x = x.reshape(N, C, hp, p, wp, p)
    x = jnp.transpose(x, (0, 2, 4, 1, 3, 5))                # N, hp, wp, C, p, p
    return x.reshape(N, hp * wp, C * p * p)


def unpatchify(x, p, c):
    """(N, T, p*p*c) -> (N, c, H, W), matching DiT.unpatchify einsum."""
    B, T, _ = x.shape
    h = w = int(round(math.sqrt(T)))
    x = x.reshape(B, h, w, p, p, c)
    x = jnp.transpose(x, (0, 5, 1, 3, 2, 4))                # n c h p w q
    return x.reshape(B, c, h * p, w * p)


def timestep_sinusoid(t, dim=256, max_period=10000.0):
    half = dim // 2
    freqs = jnp.exp(-math.log(max_period) * jnp.arange(half, dtype=jnp.float32) / half)
    args = t.astype(jnp.float32)[:, None] * freqs[None, :]
    return jnp.concatenate([jnp.cos(args), jnp.sin(args)], axis=-1)


def sincos_2d_pos_embed(dim, grid_size):
    """Fixed 2D sin-cos positional embedding (as DiT's get_2d_sincos_pos_embed)."""
    def one_dim(d, pos):
        omega = jnp.arange(d // 2, dtype=jnp.float32) / (d / 2.0)
        omega = 1.0 / (10000.0 ** omega)
        out = pos.reshape(-1).astype(jnp.float32)[:, None] * omega[None, :]
        return jnp.concatenate([jnp.sin(out), jnp.cos(out)], axis=1)

    coords = jnp.arange(grid_size, dtype=jnp.float32)
    gw, gh = jnp.meshgrid(coords, coords)                   # w varies fastest
    emb_h = one_dim(dim // 2, gw)
    emb_w = one_dim(dim // 2, gh)
    return jnp.concatenate([emb_h, emb_w], axis=1)          # (T, dim)


# ---------------------------- parameters / model ----------------------------

def init_params(key, cfg):
    D = cfg["hidden"]; C = cfg["in_channels"]; p = cfg["patch"]
    depth = cfg["depth"]
    Cout = C * 2 if cfg["learn_sigma"] else C
    mlp_hidden = int(D * cfg["mlp_ratio"])
    freq = 256
    keys = iter(jax.random.split(key, 16 + 10 * depth))

    def w(shape, s=0.02, dtype=jnp.bfloat16):
        return (s * jax.random.normal(next(keys), shape)).astype(dtype)

    def b(shape, s=0.02):
        return w(shape, s, dtype=jnp.float32)

    params = {
        "patch_w": w((C * p * p, D)), "patch_b": b((D,)),
        "pos": sincos_2d_pos_embed(D, cfg["input_size"] // p)[None].astype(jnp.float32),
        "t_w0": w((freq, D)), "t_b0": b((D,)),
        "t_w1": w((D, D)),    "t_b1": b((D,)),
        "blocks": [],
        # All per-block adaLN projections + the final-layer adaLN concatenated
        # into ONE (D, depth*6D + 2D) weight -> one pallas_call per forward.
        "ada_all_w": w((D, depth * 6 * D + 2 * D)),
        "ada_all_b": b((depth * 6 * D + 2 * D,)),
        "final_w": w((D, p * p * Cout)), "final_b": b((p * p * Cout,)),
    }
    for _ in range(depth):
        params["blocks"].append({
            "qkv_w": w((D, 3 * D)), "qkv_b": b((3 * D,)),
            "proj_w": w((D, D)),    "proj_b": b((D,)),
            "fc1_w": w((D, mlp_hidden)), "fc1_b": b((mlp_hidden,)),
            "fc2_w": w((mlp_hidden, D)), "fc2_b": b((D,)),
        })
        # consume the two spare keys per block so key usage stays deterministic
        next(keys); next(keys)
    return params


def dit_forward(params, x, t, cfg):
    B = x.shape[0]
    D = cfg["hidden"]; p = cfg["patch"]; H = cfg["num_heads"]
    depth = cfg["depth"]
    Cout = cfg["in_channels"] * 2 if cfg["learn_sigma"] else cfg["in_channels"]

    # --- x_embedder (patchified conv as matmul) + pos_embed -----------------
    xp = patchify(x, p)                                      # (B, T, C*p*p)
    T = xp.shape[1]
    tok = linear_pallas(xp.reshape(B * T, -1), params["patch_w"], params["patch_b"])
    tok = tok.reshape(B, T, D) + params["pos"]

    # --- t_embedder (c = t embedding) ---------------------------------------
    tfreq = timestep_sinusoid(t, 256)                        # (B, 256)
    c = temb_mlp_pallas(tfreq, params["t_w0"], params["t_b0"],
                        params["t_w1"], params["t_b1"])      # (B, D)

    # --- all adaLN modulations in one batched matmul -------------------------
    ada_all = linear_pallas(c, params["ada_all_w"], params["ada_all_b"],
                            pre_act="silu")                  # (B, depth*6D + 2D)

    # --- DiT blocks -----------------------------------------------------------
    for i, blk in enumerate(params["blocks"]):
        base = i * 6 * D
        sh_msa = ada_all[:, base + 0 * D: base + 1 * D]
        sc_msa = ada_all[:, base + 1 * D: base + 2 * D]
        g_msa  = ada_all[:, base + 2 * D: base + 3 * D]
        sh_mlp = ada_all[:, base + 3 * D: base + 4 * D]
        sc_mlp = ada_all[:, base + 4 * D: base + 5 * D]
        g_mlp  = ada_all[:, base + 5 * D: base + 6 * D]

        # attention branch: LN+modulate fused into qkv matmul
        qkv = ln_mod_linear_pallas(tok, sh_msa, sc_msa, blk["qkv_w"], blk["qkv_b"])
        attn = attention_pallas(qkv, H)                      # (B, T, D)
        # output projection fused with gated residual add
        tok = linear_gate_add_pallas(attn, tok, g_msa, blk["proj_w"], blk["proj_b"])

        # MLP branch: LN+modulate fused into fc1 (+GELU-tanh), fc2 fused with residual
        h1 = ln_mod_linear_pallas(tok, sh_mlp, sc_mlp, blk["fc1_w"], blk["fc1_b"],
                                  post_act="gelu_tanh")
        tok = linear_gate_add_pallas(h1, tok, g_mlp, blk["fc2_w"], blk["fc2_b"])

    # --- FinalLayer (LN+modulate fused into final linear) + unpatchify -------
    base = depth * 6 * D
    sh_f = ada_all[:, base: base + D]
    sc_f = ada_all[:, base + D: base + 2 * D]
    out = ln_mod_linear_pallas(tok, sh_f, sc_f, params["final_w"], params["final_b"])
    return unpatchify(out, p, Cout)                          # (B, Cout, H, W)


# ----------------------------------- main ------------------------------------

if __name__ == "__main__":
    cfg = dict(input_size=16, patch=2, in_channels=4, hidden=128,
               depth=2, num_heads=4, mlp_ratio=4.0, learn_sigma=True)

    key = jax.random.PRNGKey(0)
    kp, kx, kt = jax.random.split(key, 3)
    params = init_params(kp, cfg)

    B = 2
    x = jax.random.normal(
        kx, (B, cfg["in_channels"], cfg["input_size"], cfg["input_size"]), jnp.float32)
    t = jax.random.randint(kt, (B,), 0, 1000).astype(jnp.float32)

    fwd = jax.jit(functools.partial(dit_forward, cfg=cfg))
    out = jax.block_until_ready(fwd(params, x, t))

    assert out.shape == (B, 2 * cfg["in_channels"], cfg["input_size"], cfg["input_size"])
    assert bool(jnp.all(jnp.isfinite(out)))
    print("KERNEL_OK")
</pallas_src>

<mosaic_0001>
module attributes {stable_mosaic.version = 11 : i64} {
  func.func @_temb_kernel(%arg0: memref<2x256xf32, #tpu.memory_space<vmem>>, %arg1: memref<256x128xbf16, #tpu.memory_space<vmem>>, %arg2: memref<1x128xf32, #tpu.memory_space<vmem>>, %arg3: memref<128x128xbf16, #tpu.memory_space<vmem>>, %arg4: memref<1x128xf32, #tpu.memory_space<vmem>>, %arg5: memref<2x128xf32, #tpu.memory_space<vmem>>) attributes {dimension_semantics = [], scalar_prefetch = 0 : i64, scratch_operands = 0 : i64, tpu.core_type = #tpu.core_type<tc>} {
    %c0 = arith.constant 0 : index
    %c0_0 = arith.constant 0 : index
    %0 = vector.load %arg0[%c0, %c0_0] : memref<2x256xf32, #tpu.memory_space<vmem>>, vector<2x256xf32>
    %1 = arith.truncf %0 : vector<2x256xf32> to vector<2x256xbf16>
    %c0_1 = arith.constant 0 : index
    %c0_2 = arith.constant 0 : index
    %2 = vector.load %arg1[%c0_1, %c0_2] : memref<256x128xbf16, #tpu.memory_space<vmem>>, vector<256x128xbf16>
    %cst = arith.constant dense<0.000000e+00> : vector<2x128xf32>
    %3 = tpu.matmul %1, %2, %cst {dimension_numbers = #tpu.dot_dimension_numbers<[1], [0], [0], [1], [0, 0, 1, 1], [], []>} : vector<2x256xbf16>, vector<256x128xbf16>, vector<2x128xf32> -> vector<2x128xf32>
    %c0_3 = arith.constant 0 : index
    %c0_4 = arith.constant 0 : index
    %4 = vector.load %arg2[%c0_3, %c0_4] : memref<1x128xf32, #tpu.memory_space<vmem>>, vector<1x128xf32>
    %5 = vector.broadcast %4 : vector<1x128xf32> to vector<2x128xf32>
    %6 = arith.addf %3, %5 : vector<2x128xf32>
    %7 = arith.negf %6 : vector<2x128xf32>
    %8 = math.exp %7 : vector<2x128xf32>
    %cst_5 = arith.constant 1.000000e+00 : f32
    %9 = vector.broadcast %cst_5 : f32 to vector<2x128xf32>
    %10 = arith.addf %9, %8 : vector<2x128xf32>
    %11 = arith.divf %9, %10 : vector<2x128xf32>
    %12 = arith.mulf %6, %11 : vector<2x128xf32>
    %13 = arith.truncf %12 : vector<2x128xf32> to vector<2x128xbf16>
    %c0_6 = arith.constant 0 : index
    %c0_7 = arith.constant 0 : index
    %14 = vector.load %arg3[%c0_6, %c0_7] : memref<128x128xbf16, #tpu.memory_space<vmem>>, vector<128x128xbf16>
    %cst_8 = arith.constant dense<0.000000e+00> : vector<2x128xf32>
    %15 = tpu.matmul %13, %14, %cst_8 {dimension_numbers = #tpu.dot_dimension_numbers<[1], [0], [0], [1], [0, 0, 1, 1], [], []>} : vector<2x128xbf16>, vector<128x128xbf16>, vector<2x128xf32> -> vector<2x128xf32>
    %c0_9 = arith.constant 0 : index
    %c0_10 = arith.constant 0 : index
    %16 = vector.load %arg4[%c0_9, %c0_10] : memref<1x128xf32, #tpu.memory_space<vmem>>, vector<1x128xf32>
    %17 = vector.broadcast %16 : vector<1x128xf32> to vector<2x128xf32>
    %18 = arith.addf %15, %17 : vector<2x128xf32>
    %c0_11 = arith.constant 0 : index
    %c0_12 = arith.constant 0 : index
    %19 = vector.load %arg5[%c0_11, %c0_12] : memref<2x128xf32, #tpu.memory_space<vmem>>, vector<2x128xf32>
    tpu.vector_store %arg5[%c0_11, %c0_12], %18 {strides = array<i32>} : memref<2x128xf32, #tpu.memory_space<vmem>>, vector<2x128xf32>,
    return
  }
}

module attributes {stable_mosaic.version = 11 : i64} {
  func.func @_linear_kernel(%arg0: i32, %arg1: i32, %arg2: memref<2x128xf32, #tpu.memory_space<vmem>>, %arg3: memref<128x256xbf16, #tpu.memory_space<vmem>>, %arg4: memref<1x256xf32, #tpu.memory_space<vmem>>, %arg5: memref<2x256xf32, #tpu.memory_space<vmem>>) attributes {dimension_semantics = [#tpu.dimension_semantics<parallel>, #tpu.dimension_semantics<parallel>], iteration_bounds = array<i64: 1, 7>, scalar_prefetch = 0 : i64, scratch_operands = 0 : i64, tpu.core_type = #tpu.core_type<tc>, window_params = [{transform_indices = @transform_0, window_bounds = array<i64: 2, 128>}, {transform_indices = @transform_1, window_bounds = array<i64: 128, 256>}, {transform_indices = @transform_2, window_bounds = array<i64: 1, 256>}, {transform_indices = @transform_3, window_bounds = array<i64: 2, 256>}]} {
    %c0 = arith.constant 0 : index
    %c0_0 = arith.constant 0 : index
    %0 = vector.load %arg2[%c0, %c0_0] : memref<2x128xf32, #tpu.memory_space<vmem>>, vector<2x128xf32>
    %1 = arith.negf %0 : vector<2x128xf32>
    %2 = math.exp %1 : vector<2x128xf32>
    %cst = arith.constant 1.000000e+00 : f32
    %3 = vector.broadcast %cst : f32 to vector<2x128xf32>
    %4 = arith.addf %3, %2 : vector<2x128xf32>
    %5 = arith.divf %3, %4 : vector<2x128xf32>
    %6 = arith.mulf %0, %5 : vector<2x128xf32>
    %7 = arith.truncf %6 : vector<2x128xf32> to vector<2x128xbf16>
    %c0_1 = arith.constant 0 : index
    %c0_2 = arith.constant 0 : index
    %8 = vector.load %arg3[%c0_1, %c0_2] : memref<128x256xbf16, #tpu.memory_space<vmem>>, vector<128x256xbf16>
    %cst_3 = arith.constant dense<0.000000e+00> : vector<2x256xf32>
    %9 = tpu.matmul %7, %8, %cst_3 {dimension_numbers = #tpu.dot_dimension_numbers<[1], [0], [0], [1], [0, 0, 1, 1], [], []>} : vector<2x128xbf16>, vector<128x256xbf16>, vector<2x256xf32> -> vector<2x256xf32>
    %c0_4 = arith.constant 0 : index
    %c0_5 = arith.constant 0 : index
    %10 = vector.load %arg4[%c0_4, %c0_5] : memref<1x256xf32, #tpu.memory_space<vmem>>, vector<1x256xf32>
    %11 = vector.broadcast %10 : vector<1x256xf32> to vector<2x256xf32>
    %12 = arith.addf %9, %11 : vector<2x256xf32>
    %c0_6 = arith.constant 0 : index
    %c0_7 = arith.constant 0 : index
    %13 = vector.load %arg5[%c0_6, %c0_7] : memref<2x256xf32, #tpu.memory_space<vmem>>, vector<2x256xf32>
    tpu.vector_store %arg5[%c0_6, %c0_7], %12 {strides = array<i32>} : memref<2x256xf32, #tpu.memory_space<vmem>>, vector<2x256xf32>,
    return
  }
  func.func @transform_0(%arg0: i32, %arg1: i32) -> (i32, i32) {
    %c0_i32 = arith.constant 0 : i32
    %c0_i32_0 = arith.constant 0 : i32
    return %arg0, %c0_i32 : i32, i32
  }
  func.func @transform_1(%arg0: i32, %arg1: i32) -> (i32, i32) {
    %c0_i32 = arith.constant 0 : i32
    %c0_i32_0 = arith.constant 0 : i32
    return %c0_i32, %arg1 : i32, i32
  }
  func.func @transform_2(%arg0: i32, %arg1: i32) -> (i32, i32) {
    %c0_i32 = arith.constant 0 : i32
    %c0_i32_0 = arith.constant 0 : i32
    return %c0_i32, %arg1 : i32, i32
  }
  func.func @transform_3(%arg0: i32, %arg1: i32) -> (i32, i32) {
    %c0_i32 = arith.constant 0 : i32
    return %arg0, %arg1 : i32, i32
  }
}

module attributes {stable_mosaic.version = 11 : i64} {
  func.func @_linear_kernel(%arg0: i32, %arg1: i32, %arg2: memref<64x16xf32, #tpu.memory_space<vmem>>, %arg3: memref<16x128xbf16, #tpu.memory_space<vmem>>, %arg4: memref<1x128xf32, #tpu.memory_space<vmem>>, %arg5: memref<64x128xf32, #tpu.memory_space<vmem>>) attributes {dimension_semantics = [#tpu.dimension_semantics<parallel>, #tpu.dimension_semantics<parallel>], iteration_bounds = array<i64: 2, 1>, scalar_prefetch = 0 : i64, scratch_operands = 0 : i64, tpu.core_type = #tpu.core_type<tc>, window_params = [{transform_indices = @transform_0, window_bounds = array<i64: 64, 16>}, {transform_indices = @transform_1, window_bounds = array<i64: 16, 128>}, {transform_indices = @transform_2, window_bounds = array<i64: 1, 128>}, {transform_indices = @transform_3, window_bounds = array<i64: 64, 128>}]} {
    %c0 = arith.constant 0 : index
    %c0_0 = arith.constant 0 : index
    %0 = vector.load %arg2[%c0, %c0_0] : memref<64x16xf32, #tpu.memory_space<vmem>>, vector<64x16xf32>
    %1 = arith.truncf %0 : vector<64x16xf32> to vector<64x16xbf16>
    %c0_1 = arith.constant 0 : index
    %c0_2 = arith.constant 0 : index
    %2 = vector.load %arg3[%c0_1, %c0_2] : memref<16x128xbf16, #tpu.memory_space<vmem>>, vector<16x128xbf16>
    %cst = arith.constant dense<0.000000e+00> : vector<64x128xf32>
    %3 = tpu.matmul %1, %2, %cst {dimension_numbers = #tpu.dot_dimension_numbers<[1], [0], [0], [1], [0, 0, 1, 1], [], []>} : vector<64x16xbf16>, vector<16x128xbf16>, vector<64x128xf32> -> vector<64x128xf32>
    %c0_3 = arith.constant 0 : index
    %c0_4 = arith.constant 0 : index
    %4 = vector.load %arg4[%c0_3, %c0_4] : memref<1x128xf32, #tpu.memory_space<vmem>>, vector<1x128xf32>
    %5 = vector.broadcast %4 : vector<1x128xf32> to vector<64x128xf32>
    %6 = arith.addf %3, %5 : vector<64x128xf32>
    %c0_5 = arith.constant 0 : index
    %c0_6 = arith.constant 0 : index
    %7 = vector.load %arg5[%c0_5, %c0_6] : memref<64x128xf32, #tpu.memory_space<vmem>>, vector<64x128xf32>
    tpu.vector_store %arg5[%c0_5, %c0_6], %6 {strides = array<i32>} : memref<64x128xf32, #tpu.memory_space<vmem>>, vector<64x128xf32>,
    return
  }
  func.func @transform_0(%arg0: i32, %arg1: i32) -> (i32, i32) {
    %c0_i32 = arith.constant 0 : i32
    %c0_i32_0 = arith.constant 0 : i32
    return %arg0, %c0_i32 : i32, i32
  }
  func.func @transform_1(%arg0: i32, %arg1: i32) -> (i32, i32) {
    %c0_i32 = arith.constant 0 : i32
    %c0_i32_0 = arith.constant 0 : i32
    return %c0_i32, %arg1 : i32, i32
  }
  func.func @transform_2(%arg0: i32, %arg1: i32) -> (i32, i32) {
    %c0_i32 = arith.constant 0 : i32
    %c0_i32_0 = arith.constant 0 : i32
    return %c0_i32, %arg1 : i32, i32
  }
  func.func @transform_3(%arg0: i32, %arg1: i32) -> (i32, i32) {
    %c0_i32 = arith.constant 0 : i32
    return %arg0, %arg1 : i32, i32
  }
}

module attributes {stable_mosaic.version = 11 : i64} {
  func.func @_attn_kernel(%arg0: i32, %arg1: memref<1x64x128xf32, #tpu.memory_space<vmem>>, %arg2: memref<1x64x128xf32, #tpu.memory_space<vmem>>, %arg3: memref<1x64x128xf32, #tpu.memory_space<vmem>>, %arg4: memref<1x64x128xf32, #tpu.memory_space<vmem>>) attributes {dimension_semantics = [#tpu.dimension_semantics<parallel>], iteration_bounds = array<i64: 2>, scalar_prefetch = 0 : i64, scratch_operands = 0 : i64, tpu.core_type = #tpu.core_type<tc>, window_params = [{transform_indices = @transform_0, window_bounds = array<i64: 1, 64, 128>}, {transform_indices = @transform_1, window_bounds = array<i64: 1, 64, 128>}, {transform_indices = @transform_2, window_bounds = array<i64: 1, 64, 128>}, {transform_indices = @transform_3, window_bounds = array<i64: 1, 64, 128>}]} {
    %c0 = arith.constant 0 : index
    %c0_0 = arith.constant 0 : index
    %c0_1 = arith.constant 0 : index
    %0 = vector.load %arg1[%c0, %c0_0, %c0_1] : memref<1x64x128xf32, #tpu.memory_space<vmem>>, vector<1x64x128xf32>
    %1 = vector.shape_cast %0 : vector<1x64x128xf32> to vector<64x128xf32>
    %c0_2 = arith.constant 0 : index
    %c0_3 = arith.constant 0 : index
    %c0_4 = arith.constant 0 : index
    %2 = vector.load %arg2[%c0_2, %c0_3, %c0_4] : memref<1x64x128xf32, #tpu.memory_space<vmem>>, vector<1x64x128xf32>
    %3 = vector.shape_cast %2 : vector<1x64x128xf32> to vector<64x128xf32>
    %c0_5 = arith.constant 0 : index
    %c0_6 = arith.constant 0 : index
    %c0_7 = arith.constant 0 : index
    %4 = vector.load %arg3[%c0_5, %c0_6, %c0_7] : memref<1x64x128xf32, #tpu.memory_space<vmem>>, vector<1x64x128xf32>
    %5 = vector.shape_cast %4 : vector<1x64x128xf32> to vector<64x128xf32>
    %6 = vector.extract_strided_slice %1 {offsets = [0, 0], sizes = [64, 32], strides = [1, 1]} : vector<64x128xf32> to vector<64x32xf32>
    %cst = arith.constant 0.176776692 : f32
    %7 = vector.broadcast %cst : f32 to vector<64x32xf32>
    %8 = arith.mulf %6, %7 : vector<64x32xf32>
    %9 = arith.truncf %8 : vector<64x32xf32> to vector<64x32xbf16>
    %10 = vector.extract_strided_slice %3 {offsets = [0, 0], sizes = [64, 32], strides = [1, 1]} : vector<64x128xf32> to vector<64x32xf32>
    %11 = arith.truncf %10 : vector<64x32xf32> to vector<64x32xbf16>
    %12 = vector.extract_strided_slice %5 {offsets = [0, 0], sizes = [64, 32], strides = [1, 1]} : vector<64x128xf32> to vector<64x32xf32>
    %13 = arith.truncf %12 : vector<64x32xf32> to vector<64x32xbf16>
    %cst_8 = arith.constant dense<0.000000e+00> : vector<64x64xf32>
    %14 = tpu.matmul %9, %11, %cst_8 {dimension_numbers = #tpu.dot_dimension_numbers<[1], [1], [0], [0], [0, 0, 1, 0], [], []>} : vector<64x32xbf16>, vector<64x32xbf16>, vector<64x64xf32> -> vector<64x64xf32>
    %cst_9 = arith.constant dense<0xFF800000> : vector<64xf32>
    %15 = vector.multi_reduction <maximumf>, %14, %cst_9 [1] : vector<64x64xf32> to vector<64xf32>
    %16 = vector.shape_cast %15 : vector<64xf32> to vector<64x1xf32>
    %17 = vector.broadcast %16 : vector<64x1xf32> to vector<64x64xf32>
    %18 = arith.subf %14, %17 : vector<64x64xf32>
    %19 = math.exp %18 : vector<64x64xf32>
    %cst_10 = arith.constant dense<0.000000e+00> : vector<64xf32>
    %20 = vector.multi_reduction <add>, %19, %cst_10 [1] : vector<64x64xf32> to vector<64xf32>
    %21 = vector.shape_cast %20 : vector<64xf32> to vector<64x1xf32>
    %22 = tpu.reciprocal %21 {approx = true} : vector<64x1xf32> -> vector<64x1xf32>
    %23 = vector.broadcast %22 : vector<64x1xf32> to vector<64x64xf32>
    %24 = arith.mulf %19, %23 : vector<64x64xf32>
    %25 = arith.truncf %24 : vector<64x64xf32> to vector<64x64xbf16>
    %cst_11 = arith.constant dense<0.000000e+00> : vector<64x32xf32>
    %26 = tpu.matmul %25, %13, %cst_11 {dimension_numbers = #tpu.dot_dimension_numbers<[1], [0], [0], [1], [0, 0, 1, 1], [], []>} : vector<64x64xbf16>, vector<64x32xbf16>, vector<64x32xf32> -> vector<64x32xf32>
    %27 = vector.extract_strided_slice %1 {offsets = [0, 32], sizes = [64, 32], strides = [1, 1]} : vector<64x128xf32> to vector<64x32xf32>
    %cst_12 = arith.constant 0.176776692 : f32
    %28 = vector.broadcast %cst_12 : f32 to vector<64x32xf32>
    %29 = arith.mulf %27, %28 : vector<64x32xf32>
    %30 = arith.truncf %29 : vector<64x32xf32> to vector<64x32xbf16>
    %31 = vector.extract_strided_slice %3 {offsets = [0, 32], sizes = [64, 32], strides = [1, 1]} : vector<64x128xf32> to vector<64x32xf32>
    %32 = arith.truncf %31 : vector<64x32xf32> to vector<64x32xbf16>
    %33 = vector.extract_strided_slice %5 {offsets = [0, 32], sizes = [64, 32], strides = [1, 1]} : vector<64x128xf32> to vector<64x32xf32>
    %34 = arith.truncf %33 : vector<64x32xf32> to vector<64x32xbf16>
    %cst_13 = arith.constant dense<0.000000e+00> : vector<64x64xf32>
    %35 = tpu.matmul %30, %32, %cst_13 {dimension_numbers = #tpu.dot_dimension_numbers<[1], [1], [0], [0], [0, 0, 1, 0], [], []>} : vector<64x32xbf16>, vector<64x32xbf16>, vector<64x64xf32> -> vector<64x64xf32>
    %cst_14 = arith.constant dense<0xFF800000> : vector<64xf32>
    %36 = vector.multi_reduction <maximumf>, %35, %cst_14 [1] : vector<64x64xf32> to vector<64xf32>
    %37 = vector.shape_cast %36 : vector<64xf32> to vector<64x1xf32>
    %38 = vector.broadcast %37 : vector<64x1xf32> to vector<64x64xf32>
    %39 = arith.subf %35, %38 : vector<64x64xf32>
    %40 = math.exp %39 : vector<64x64xf32>
    %cst_15 = arith.constant dense<0.000000e+00> : vector<64xf32>
    %41 = vector.multi_reduction <add>, %40, %cst_15 [1] : vector<64x64xf32> to vector<64xf32>
    %42 = vector.shape_cast %41 : vector<64xf32> to vector<64x1xf32>
    %43 = tpu.reciprocal %42 {approx = true} : vector<64x1xf32> -> vector<64x1xf32>
    %44 = vector.broadcast %43 : vector<64x1xf32> to vector<64x64xf32>
    %45 = arith.mulf %40, %44 : vector<64x64xf32>
    %46 = arith.truncf %45 : vector<64x64xf32> to vector<64x64xbf16>
    %cst_16 = arith.constant dense<0.000000e+00> : vector<64x32xf32>
    %47 = tpu.matmul %46, %34, %cst_16 {dimension_numbers = #tpu.dot_dimension_numbers<[1], [0], [0], [1], [0, 0, 1, 1], [], []>} : vector<64x64xbf16>, vector<64x32xbf16>, vector<64x32xf32> -> vector<64x32xf32>
    %48 = vector.extract_strided_slice %1 {offsets = [0, 64], sizes = [64, 32], strides = [1, 1]} : vector<64x128xf32> to vector<64x32xf32>
    %cst_17 = arith.constant 0.176776692 : f32
    %49 = vector.broadcast %cst_17 : f32 to vector<64x32xf32>
    %50 = arith.mulf %48, %49 : vector<64x32xf32>
    %51 = arith.truncf %50 : vector<64x32xf32> to vector<64x32xbf16>
    %52 = vector.extract_strided_slice %3 {offsets = [0, 64], sizes = [64, 32], strides = [1, 1]} : vector<64x128xf32> to vector<64x32xf32>
    %53 = arith.truncf %52 : vector<64x32xf32> to vector<64x32xbf16>
    %54 = vector.extract_strided_slice %5 {offsets = [0, 64], sizes = [64, 32], strides = [1, 1]} : vector<64x128xf32> to vector<64x32xf32>
    %55 = arith.truncf %54 : vector<64x32xf32> to vector<64x32xbf16>
    %cst_18 = arith.constant dense<0.000000e+00> : vector<64x64xf32>
    %56 = tpu.matmul %51, %53, %cst_18 {dimension_numbers = #tpu.dot_dimension_numbers<[1], [1], [0], [0], [0, 0, 1, 0], [], []>} : vector<64x32xbf16>, vector<64x32xbf16>, vector<64x64xf32> -> vector<64x64xf32>
    %cst_19 = arith.constant dense<0xFF800000> : vector<64xf32>
    %57 = vector.multi_reduction <maximumf>, %56, %cst_19 [1] : vector<64x64xf32> to vector<64xf32>
    %58 = vector.shape_cast %57 : vector<64xf32> to vector<64x1xf32>
    %59 = vector.broadcast %58 : vector<64x1xf32> to vector<64x64xf32>
    %60 = arith.subf %56, %59 : vector<64x64xf32>
    %61 = math.exp %60 : vector<64x64xf32>
    %cst_20 = arith.constant dense<0.000000e+00> : vector<64xf32>
    %62 = vector.multi_reduction <add>, %61, %cst_20 [1] : vector<64x64xf32> to vector<64xf32>
    %63 = vector.shape_cast %62 : vector<64xf32> to vector<64x1xf32>
    %64 = tpu.reciprocal %63 {approx = true} : vector<64x1xf32> -> vector<64x1xf32>
    %65 = vector.broadcast %64 : vector<64x1xf32> to vector<64x64xf32>
    %66 = arith.mulf %61, %65 : vector<64x64xf32>
    %67 = arith.truncf %66 : vector<64x64xf32> to vector<64x64xbf16>
    %cst_21 = arith.constant dense<0.000000e+00> : vector<64x32xf32>
    %68 = tpu.matmul %67, %55, %cst_21 {dimension_numbers = #tpu.dot_dimension_numbers<[1], [0], [0], [1], [0, 0, 1, 1], [], []>} : vector<64x64xbf16>, vector<64x32xbf16>, vector<64x32xf32> -> vector<64x32xf32>
    %69 = vector.extract_strided_slice %1 {offsets = [0, 96], sizes = [64, 32], strides = [1, 1]} : vector<64x128xf32> to vector<64x32xf32>
    %cst_22 = arith.constant 0.176776692 : f32
    %70 = vector.broadcast %cst_22 : f32 to vector<64x32xf32>
    %71 = arith.mulf %69, %70 : vector<64x32xf32>
    %72 = arith.truncf %71 : vector<64x32xf32> to vector<64x32xbf16>
    %73 = vector.extract_strided_slice %3 {offsets = [0, 96], sizes = [64, 32], strides = [1, 1]} : vector<64x128xf32> to vector<64x32xf32>
    %74 = arith.truncf %73 : vector<64x32xf32> to vector<64x32xbf16>
    %75 = vector.extract_strided_slice %5 {offsets = [0, 96], sizes = [64, 32], strides = [1, 1]} : vector<64x128xf32> to vector<64x32xf32>
    %76 = arith.truncf %75 : vector<64x32xf32> to vector<64x32xbf16>
    %cst_23 = arith.constant dense<0.000000e+00> : vector<64x64xf32>
    %77 = tpu.matmul %72, %74, %cst_23 {dimension_numbers = #tpu.dot_dimension_numbers<[1], [1], [0], [0], [0, 0, 1, 0], [], []>} : vector<64x32xbf16>, vector<64x32xbf16>, vector<64x64xf32> -> vector<64x64xf32>
    %cst_24 = arith.constant dense<0xFF800000> : vector<64xf32>
    %78 = vector.multi_reduction <maximumf>, %77, %cst_24 [1] : vector<64x64xf32> to vector<64xf32>
    %79 = vector.shape_cast %78 : vector<64xf32> to vector<64x1xf32>
    %80 = vector.broadcast %79 : vector<64x1xf32> to vector<64x64xf32>
    %81 = arith.subf %77, %80 : vector<64x64xf32>
    %82 = math.exp %81 : vector<64x64xf32>
    %cst_25 = arith.constant dense<0.000000e+00> : vector<64xf32>
    %83 = vector.multi_reduction <add>, %82, %cst_25 [1] : vector<64x64xf32> to vector<64xf32>
    %84 = vector.shape_cast %83 : vector<64xf32> to vector<64x1xf32>
    %85 = tpu.reciprocal %84 {approx = true} : vector<64x1xf32> -> vector<64x1xf32>
    %86 = vector.broadcast %85 : vector<64x1xf32> to vector<64x64xf32>
    %87 = arith.mulf %82, %86 : vector<64x64xf32>
    %88 = arith.truncf %87 : vector<64x64xf32> to vector<64x64xbf16>
    %cst_26 = arith.constant dense<0.000000e+00> : vector<64x32xf32>
    %89 = tpu.matmul %88, %76, %cst_26 {dimension_numbers = #tpu.dot_dimension_numbers<[1], [0], [0], [1], [0, 0, 1, 1], [], []>} : vector<64x64xbf16>, vector<64x32xbf16>, vector<64x32xf32> -> vector<64x32xf32>
    %90 = tpu.concatenate %26, %47, %68, %89 in 1 : vector<64x32xf32>, vector<64x32xf32>, vector<64x32xf32>, vector<64x32xf32> -> vector<64x128xf32>
    %c0_27 = arith.constant 0 : index
    %c0_28 = arith.constant 0 : index
    %c0_29 = arith.constant 0 : index
    %91 = vector.load %arg4[%c0_27, %c0_28, %c0_29] : memref<1x64x128xf32, #tpu.memory_space<vmem>>, vector<1x64x128xf32>
    %92 = vector.shape_cast %91 : vector<1x64x128xf32> to vector<64x128xf32>
    %93 = vector.shape_cast %90 : vector<64x128xf32> to vector<1x64x128xf32>
    tpu.vector_store %arg4[%c0_27, %c0_28, %c0_29], %93 {strides = array<i32>} : memref<1x64x128xf32, #tpu.memory_space<vmem>>, vector<1x64x128xf32>,
    return
  }
  func.func @transform_0(%arg0: i32) -> (i32, i32, i32) {
    %c0_i32 = arith.constant 0 : i32
    %c0_i32_0 = arith.constant 0 : i32
    %c0_i32_1 = arith.constant 0 : i32
    return %arg0, %c0_i32, %c0_i32_0 : i32, i32, i32
  }
  func.func @transform_1(%arg0: i32) -> (i32, i32, i32) {
    %c0_i32 = arith.constant 0 : i32
    %c1_i32 = arith.constant 1 : i32
    %c0_i32_0 = arith.constant 0 : i32
    return %arg0, %c0_i32, %c1_i32 : i32, i32, i32
  }
  func.func @transform_2(%arg0: i32) -> (i32, i32, i32) {
    %c0_i32 = arith.constant 0 : i32
    %c2_i32 = arith.constant 2 : i32
    %c0_i32_0 = arith.constant 0 : i32
    return %arg0, %c0_i32, %c2_i32 : i32, i32, i32
  }
  func.func @transform_3(%arg0: i32) -> (i32, i32, i32) {
    %c0_i32 = arith.constant 0 : i32
    %c0_i32_0 = arith.constant 0 : i32
    %c0_i32_1 = arith.constant 0 : i32
    return %arg0, %c0_i32, %c0_i32_0 : i32, i32, i32
  }
}

module attributes {stable_mosaic.version = 11 : i64} {
  func.func @_ln_mod_linear_kernel(%arg0: i32, %arg1: i32, %arg2: i32, %arg3: memref<1x64x128xf32, #tpu.memory_space<vmem>>, %arg4: memref<1x1x128xf32, #tpu.memory_space<vmem>>, %arg5: memref<1x1x128xf32, #tpu.memory_space<vmem>>, %arg6: memref<128x384xbf16, #tpu.memory_space<vmem>>, %arg7: memref<1x384xf32, #tpu.memory_space<vmem>>, %arg8: memref<1x64x384xf32, #tpu.memory_space<vmem>>) attributes {dimension_semantics = [#tpu.dimension_semantics<parallel>, #tpu.dimension_semantics<parallel>, #tpu.dimension_semantics<parallel>], iteration_bounds = array<i64: 2, 1, 1>, scalar_prefetch = 0 : i64, scratch_operands = 0 : i64, tpu.core_type = #tpu.core_type<tc>, window_params = [{transform_indices = @transform_0, window_bounds = array<i64: 1, 64, 128>}, {transform_indices = @transform_1, window_bounds = array<i64: 1, 1, 128>}, {transform_indices = @transform_2, window_bounds = array<i64: 1, 1, 128>}, {transform_indices = @transform_3, window_bounds = array<i64: 128, 384>}, {transform_indices = @transform_4, window_bounds = array<i64: 1, 384>}, {transform_indices = @transform_5, window_bounds = array<i64: 1, 64, 384>}]} {
    %c0 = arith.constant 0 : index
    %c0_0 = arith.constant 0 : index
    %c0_1 = arith.constant 0 : index
    %0 = vector.load %arg3[%c0, %c0_0, %c0_1] : memref<1x64x128xf32, #tpu.memory_space<vmem>>, vector<1x64x128xf32>
    %1 = vector.shape_cast %0 : vector<1x64x128xf32> to vector<64x128xf32>
    %cst = arith.constant dense<0.000000e+00> : vector<64xf32>
    %2 = vector.multi_reduction <add>, %1, %cst [1] : vector<64x128xf32> to vector<64xf32>
    %3 = vector.shape_cast %2 : vector<64xf32> to vector<64x1xf32>
    %cst_2 = arith.constant 1.280000e+02 : f32
    %4 = vector.broadcast %cst_2 : f32 to vector<64x1xf32>
    %5 = arith.divf %3, %4 : vector<64x1xf32>
    %6 = vector.broadcast %5 : vector<64x1xf32> to vector<64x128xf32>
    %7 = arith.subf %1, %6 : vector<64x128xf32>
    %8 = arith.mulf %7, %7 : vector<64x128xf32>
    %cst_3 = arith.constant dense<0.000000e+00> : vector<64xf32>
    %9 = vector.multi_reduction <add>, %8, %cst_3 [1] : vector<64x128xf32> to vector<64xf32>
    %10 = vector.shape_cast %9 : vector<64xf32> to vector<64x1xf32>
    %cst_4 = arith.constant 1.280000e+02 : f32
    %11 = vector.broadcast %cst_4 : f32 to vector<64x1xf32>
    %12 = arith.divf %10, %11 : vector<64x1xf32>
    %cst_5 = arith.constant 9.99999997E-7 : f32
    %13 = vector.broadcast %cst_5 : f32 to vector<64x1xf32>
    %14 = arith.addf %12, %13 : vector<64x1xf32>
    %15 = math.rsqrt %14 : vector<64x1xf32>
    %16 = vector.broadcast %15 : vector<64x1xf32> to vector<64x128xf32>
    %17 = arith.mulf %7, %16 : vector<64x128xf32>
    %c0_6 = arith.constant 0 : index
    %c0_7 = arith.constant 0 : index
    %c0_8 = arith.constant 0 : index
    %18 = vector.load %arg5[%c0_6, %c0_7, %c0_8] : memref<1x1x128xf32, #tpu.memory_space<vmem>>, vector<1x1x128xf32>
    %19 = vector.shape_cast %18 : vector<1x1x128xf32> to vector<1x128xf32>
    %cst_9 = arith.constant 1.000000e+00 : f32
    %20 = vector.broadcast %cst_9 : f32 to vector<1x128xf32>
    %21 = arith.addf %20, %19 : vector<1x128xf32>
    %22 = vector.broadcast %21 : vector<1x128xf32> to vector<64x128xf32>
    %23 = arith.mulf %17, %22 : vector<64x128xf32>
    %c0_10 = arith.constant 0 : index
    %c0_11 = arith.constant 0 : index
    %c0_12 = arith.constant 0 : index
    %24 = vector.load %arg4[%c0_10, %c0_11, %c0_12] : memref<1x1x128xf32, #tpu.memory_space<vmem>>, vector<1x1x128xf32>
    %25 = vector.shape_cast %24 : vector<1x1x128xf32> to vector<1x128xf32>
    %26 = vector.broadcast %25 : vector<1x128xf32> to vector<64x128xf32>
    %27 = arith.addf %23, %26 : vector<64x128xf32>
    %28 = arith.truncf %27 : vector<64x128xf32> to vector<64x128xbf16>
    %c0_13 = arith.constant 0 : index
    %c0_14 = arith.constant 0 : index
    %29 = vector.load %arg6[%c0_13, %c0_14] : memref<128x384xbf16, #tpu.memory_space<vmem>>, vector<128x384xbf16>
    %cst_15 = arith.constant dense<0.000000e+00> : vector<64x384xf32>
    %30 = tpu.matmul %28, %29, %cst_15 {dimension_numbers = #tpu.dot_dimension_numbers<[1], [0], [0], [1], [0, 0, 1, 1], [], []>} : vector<64x128xbf16>, vector<128x384xbf16>, vector<64x384xf32> -> vector<64x384xf32>
    %c0_16 = arith.constant 0 : index
    %c0_17 = arith.constant 0 : index
    %31 = vector.load %arg7[%c0_16, %c0_17] : memref<1x384xf32, #tpu.memory_space<vmem>>, vector<1x384xf32>
    %32 = vector.broadcast %31 : vector<1x384xf32> to vector<64x384xf32>
    %33 = arith.addf %30, %32 : vector<64x384xf32>
    %c0_18 = arith.constant 0 : index
    %c0_19 = arith.constant 0 : index
    %c0_20 = arith.constant 0 : index
    %34 = vector.load %arg8[%c0_18, %c0_19, %c0_20] : memref<1x64x384xf32, #tpu.memory_space<vmem>>, vector<1x64x384xf32>
    %35 = vector.shape_cast %34 : vector<1x64x384xf32> to vector<64x384xf32>
    %36 = vector.shape_cast %33 : vector<64x384xf32> to vector<1x64x384xf32>
    tpu.vector_store %arg8[%c0_18, %c0_19, %c0_20], %36 {strides = array<i32>} : memref<1x64x384xf32, #tpu.memory_space<vmem>>, vector<1x64x384xf32>,
    return
  }
  func.func @transform_0(%arg0: i32, %arg1: i32, %arg2: i32) -> (i32, i32, i32) {
    %c0_i32 = arith.constant 0 : i32
    %c0_i32_0 = arith.constant 0 : i32
    return %arg0, %arg1, %c0_i32 : i32, i32, i32
  }
  func.func @transform_1(%arg0: i32, %arg1: i32, %arg2: i32) -> (i32, i32, i32) {
    %c0_i32 = arith.constant 0 : i32
    %c0_i32_0 = arith.constant 0 : i32
    %c0_i32_1 = arith.constant 0 : i32
    return %arg0, %c0_i32, %c0_i32_0 : i32, i32, i32
  }
  func.func @transform_2(%arg0: i32, %arg1: i32, %arg2: i32) -> (i32, i32, i32) {
    %c0_i32 = arith.constant 0 : i32
    %c0_i32_0 = arith.constant 0 : i32
    %c0_i32_1 = arith.constant 0 : i32
    return %arg0, %c0_i32, %c0_i32_0 : i32, i32, i32
  }
  func.func @transform_3(%arg0: i32, %arg1: i32, %arg2: i32) -> (i32, i32) {
    %c0_i32 = arith.constant 0 : i32
    %c0_i32_0 = arith.constant 0 : i32
    return %c0_i32, %arg2 : i32, i32
  }
  func.func @transform_4(%arg0: i32, %arg1: i32, %arg2: i32) -> (i32, i32) {
    %c0_i32 = arith.constant 0 : i32
    %c0_i32_0 = arith.constant 0 : i32
    return %c0_i32, %arg2 : i32, i32
  }
  func.func @transform_5(%arg0: i32, %arg1: i32, %arg2: i32) -> (i32, i32, i32) {
    %c0_i32 = arith.constant 0 : i32
    return %arg0, %arg1, %arg2 : i32, i32, i32
  }
}

module attributes {stable_mosaic.version = 11 : i64} {
  func.func @_linear_gate_add_kernel(%arg0: i32, %arg1: i32, %arg2: i32, %arg3: memref<1x64x128xf32, #tpu.memory_space<vmem>>, %arg4: memref<1x64x128xf32, #tpu.memory_space<vmem>>, %arg5: memref<1x1x128xf32, #tpu.memory_space<vmem>>, %arg6: memref<128x128xbf16, #tpu.memory_space<vmem>>, %arg7: memref<1x128xf32, #tpu.memory_space<vmem>>, %arg8: memref<1x64x128xf32, #tpu.memory_space<vmem>>) attributes {dimension_semantics = [#tpu.dimension_semantics<parallel>, #tpu.dimension_semantics<parallel>, #tpu.dimension_semantics<parallel>], iteration_bounds = array<i64: 2, 1, 1>, scalar_prefetch = 0 : i64, scratch_operands = 0 : i64, tpu.core_type = #tpu.core_type<tc>, window_params = [{transform_indices = @transform_0, window_bounds = array<i64: 1, 64, 128>}, {transform_indices = @transform_1, window_bounds = array<i64: 1, 64, 128>}, {transform_indices = @transform_2, window_bounds = array<i64: 1, 1, 128>}, {transform_indices = @transform_3, window_bounds = array<i64: 128, 128>}, {transform_indices = @transform_4, window_bounds = array<i64: 1, 128>}, {transform_indices = @transform_5, window_bounds = array<i64: 1, 64, 128>}]} {
    %c0 = arith.constant 0 : index
    %c0_0 = arith.constant 0 : index
    %c0_1 = arith.constant 0 : index
    %0 = vector.load %arg3[%c0, %c0_0, %c0_1] : memref<1x64x128xf32, #tpu.memory_space<vmem>>, vector<1x64x128xf32>
    %1 = vector.shape_cast %0 : vector<1x64x128xf32> to vector<64x128xf32>
    %2 = arith.truncf %1 : vector<64x128xf32> to vector<64x128xbf16>
    %c0_2 = arith.constant 0 : index
    %c0_3 = arith.constant 0 : index
    %3 = vector.load %arg6[%c0_2, %c0_3] : memref<128x128xbf16, #tpu.memory_space<vmem>>, vector<128x128xbf16>
    %cst = arith.constant dense<0.000000e+00> : vector<64x128xf32>
    %4 = tpu.matmul %2, %3, %cst {dimension_numbers = #tpu.dot_dimension_numbers<[1], [0], [0], [1], [0, 0, 1, 1], [], []>} : vector<64x128xbf16>, vector<128x128xbf16>, vector<64x128xf32> -> vector<64x128xf32>
    %c0_4 = arith.constant 0 : index
    %c0_5 = arith.constant 0 : index
    %5 = vector.load %arg7[%c0_4, %c0_5] : memref<1x128xf32, #tpu.memory_space<vmem>>, vector<1x128xf32>
    %6 = vector.broadcast %5 : vector<1x128xf32> to vector<64x128xf32>
    %7 = arith.addf %4, %6 : vector<64x128xf32>
    %c0_6 = arith.constant 0 : index
    %c0_7 = arith.constant 0 : index
    %c0_8 = arith.constant 0 : index
    %8 = vector.load %arg4[%c0_6, %c0_7, %c0_8] : memref<1x64x128xf32, #tpu.memory_space<vmem>>, vector<1x64x128xf32>
    %9 = vector.shape_cast %8 : vector<1x64x128xf32> to vector<64x128xf32>
    %c0_9 = arith.constant 0 : index
    %c0_10 = arith.constant 0 : index
    %c0_11 = arith.constant 0 : index
    %10 = vector.load %arg5[%c0_9, %c0_10, %c0_11] : memref<1x1x128xf32, #tpu.memory_space<vmem>>, vector<1x1x128xf32>
    %11 = vector.shape_cast %10 : vector<1x1x128xf32> to vector<1x128xf32>
    %12 = vector.broadcast %11 : vector<1x128xf32> to vector<64x128xf32>
    %13 = arith.mulf %12, %7 : vector<64x128xf32>
    %14 = arith.addf %9, %13 : vector<64x128xf32>
    %c0_12 = arith.constant 0 : index
    %c0_13 = arith.constant 0 : index
    %c0_14 = arith.constant 0 : index
    %15 = vector.load %arg8[%c0_12, %c0_13, %c0_14] : memref<1x64x128xf32, #tpu.memory_space<vmem>>, vector<1x64x128xf32>
    %16 = vector.shape_cast %15 : vector<1x64x128xf32> to vector<64x128xf32>
    %17 = vector.shape_cast %14 : vector<64x128xf32> to vector<1x64x128xf32>
    tpu.vector_store %arg8[%c0_12, %c0_13, %c0_14], %17 {strides = array<i32>} : memref<1x64x128xf32, #tpu.memory_space<vmem>>, vector<1x64x128xf32>,
    return
  }
  func.func @transform_0(%arg0: i32, %arg1: i32, %arg2: i32) -> (i32, i32, i32) {
    %c0_i32 = arith.constant 0 : i32
    %c0_i32_0 = arith.constant 0 : i32
    return %arg0, %arg1, %c0_i32 : i32, i32, i32
  }
  func.func @transform_1(%arg0: i32, %arg1: i32, %arg2: i32) -> (i32, i32, i32) {
    %c0_i32 = arith.constant 0 : i32
    return %arg0, %arg1, %arg2 : i32, i32, i32
  }
  func.func @transform_2(%arg0: i32, %arg1: i32, %arg2: i32) -> (i32, i32, i32) {
    %c0_i32 = arith.constant 0 : i32
    %c0_i32_0 = arith.constant 0 : i32
    return %arg0, %c0_i32, %arg2 : i32, i32, i32
  }
  func.func @transform_3(%arg0: i32, %arg1: i32, %arg2: i32) -> (i32, i32) {
    %c0_i32 = arith.constant 0 : i32
    %c0_i32_0 = arith.constant 0 : i32
    return %c0_i32, %arg2 : i32, i32
  }
  func.func @transform_4(%arg0: i32, %arg1: i32, %arg2: i32) -> (i32, i32) {
    %c0_i32 = arith.constant 0 : i32
    %c0_i32_0 = arith.constant 0 : i32
    return %c0_i32, %arg2 : i32, i32
  }
  func.func @transform_5(%arg0: i32, %arg1: i32, %arg2: i32) -> (i32, i32, i32) {
    %c0_i32 = arith.constant 0 : i32
    return %arg0, %arg1, %arg2 : i32, i32, i32
  }
}

module attributes {stable_mosaic.version = 11 : i64} {
  func.func @_ln_mod_linear_kernel(%arg0: i32, %arg1: i32, %arg2: i32, %arg3: memref<1x64x128xf32, #tpu.memory_space<vmem>>, %arg4: memref<1x1x128xf32, #tpu.memory_space<vmem>>, %arg5: memref<1x1x128xf32, #tpu.memory_space<vmem>>, %arg6: memref<128x512xbf16, #tpu.memory_space<vmem>>, %arg7: memref<1x512xf32, #tpu.memory_space<vmem>>, %arg8: memref<1x64x512xf32, #tpu.memory_space<vmem>>) attributes {dimension_semantics = [#tpu.dimension_semantics<parallel>, #tpu.dimension_semantics<parallel>, #tpu.dimension_semantics<parallel>], iteration_bounds = array<i64: 2, 1, 1>, scalar_prefetch = 0 : i64, scratch_operands = 0 : i64, tpu.core_type = #tpu.core_type<tc>, window_params = [{transform_indices = @transform_0, window_bounds = array<i64: 1, 64, 128>}, {transform_indices = @transform_1, window_bounds = array<i64: 1, 1, 128>}, {transform_indices = @transform_2, window_bounds = array<i64: 1, 1, 128>}, {transform_indices = @transform_3, window_bounds = array<i64: 128, 512>}, {transform_indices = @transform_4, window_bounds = array<i64: 1, 512>}, {transform_indices = @transform_5, window_bounds = array<i64: 1, 64, 512>}]} {
    %c0 = arith.constant 0 : index
    %c0_0 = arith.constant 0 : index
    %c0_1 = arith.constant 0 : index
    %0 = vector.load %arg3[%c0, %c0_0, %c0_1] : memref<1x64x128xf32, #tpu.memory_space<vmem>>, vector<1x64x128xf32>
    %1 = vector.shape_cast %0 : vector<1x64x128xf32> to vector<64x128xf32>
    %cst = arith.constant dense<0.000000e+00> : vector<64xf32>
    %2 = vector.multi_reduction <add>, %1, %cst [1] : vector<64x128xf32> to vector<64xf32>
    %3 = vector.shape_cast %2 : vector<64xf32> to vector<64x1xf32>
    %cst_2 = arith.constant 1.280000e+02 : f32
    %4 = vector.broadcast %cst_2 : f32 to vector<64x1xf32>
    %5 = arith.divf %3, %4 : vector<64x1xf32>
    %6 = vector.broadcast %5 : vector<64x1xf32> to vector<64x128xf32>
    %7 = arith.subf %1, %6 : vector<64x128xf32>
    %8 = arith.mulf %7, %7 : vector<64x128xf32>
    %cst_3 = arith.constant dense<0.000000e+00> : vector<64xf32>
    %9 = vector.multi_reduction <add>, %8, %cst_3 [1] : vector<64x128xf32> to vector<64xf32>
    %10 = vector.shape_cast %9 : vector<64xf32> to vector<64x1xf32>
    %cst_4 = arith.constant 1.280000e+02 : f32
    %11 = vector.broadcast %cst_4 : f32 to vector<64x1xf32>
    %12 = arith.divf %10, %11 : vector<64x1xf32>
    %cst_5 = arith.constant 9.99999997E-7 : f32
    %13 = vector.broadcast %cst_5 : f32 to vector<64x1xf32>
    %14 = arith.addf %12, %13 : vector<64x1xf32>
    %15 = math.rsqrt %14 : vector<64x1xf32>
    %16 = vector.broadcast %15 : vector<64x1xf32> to vector<64x128xf32>
    %17 = arith.mulf %7, %16 : vector<64x128xf32>
    %c0_6 = arith.constant 0 : index
    %c0_7 = arith.constant 0 : index
    %c0_8 = arith.constant 0 : index
    %18 = vector.load %arg5[%c0_6, %c0_7, %c0_8] : memref<1x1x128xf32, #tpu.memory_space<vmem>>, vector<1x1x128xf32>
    %19 = vector.shape_cast %18 : vector<1x1x128xf32> to vector<1x128xf32>
    %cst_9 = arith.constant 1.000000e+00 : f32
    %20 = vector.broadcast %cst_9 : f32 to vector<1x128xf32>
    %21 = arith.addf %20, %19 : vector<1x128xf32>
    %22 = vector.broadcast %21 : vector<1x128xf32> to vector<64x128xf32>
    %23 = arith.mulf %17, %22 : vector<64x128xf32>
    %c0_10 = arith.constant 0 : index
    %c0_11 = arith.constant 0 : index
    %c0_12 = arith.constant 0 : index
    %24 = vector.load %arg4[%c0_10, %c0_11, %c0_12] : memref<1x1x128xf32, #tpu.memory_space<vmem>>, vector<1x1x128xf32>
    %25 = vector.shape_cast %24 : vector<1x1x128xf32> to vector<1x128xf32>
    %26 = vector.broadcast %25 : vector<1x128xf32> to vector<64x128xf32>
    %27 = arith.addf %23, %26 : vector<64x128xf32>
    %28 = arith.truncf %27 : vector<64x128xf32> to vector<64x128xbf16>
    %c0_13 = arith.constant 0 : index
    %c0_14 = arith.constant 0 : index
    %29 = vector.load %arg6[%c0_13, %c0_14] : memref<128x512xbf16, #tpu.memory_space<vmem>>, vector<128x512xbf16>
    %cst_15 = arith.constant dense<0.000000e+00> : vector<64x512xf32>
    %30 = tpu.matmul %28, %29, %cst_15 {dimension_numbers = #tpu.dot_dimension_numbers<[1], [0], [0], [1], [0, 0, 1, 1], [], []>} : vector<64x128xbf16>, vector<128x512xbf16>, vector<64x512xf32> -> vector<64x512xf32>
    %c0_16 = arith.constant 0 : index
    %c0_17 = arith.constant 0 : index
    %31 = vector.load %arg7[%c0_16, %c0_17] : memref<1x512xf32, #tpu.memory_space<vmem>>, vector<1x512xf32>
    %32 = vector.broadcast %31 : vector<1x512xf32> to vector<64x512xf32>
    %33 = arith.addf %30, %32 : vector<64x512xf32>
    %cst_18 = arith.constant 5.000000e-01 : f32
    %34 = vector.broadcast %cst_18 : f32 to vector<64x512xf32>
    %35 = arith.mulf %34, %33 : vector<64x512xf32>
    %cst_19 = arith.constant 4.471500e-02 : f32
    %36 = vector.broadcast %cst_19 : f32 to vector<64x512xf32>
    %37 = arith.mulf %36, %33 : vector<64x512xf32>
    %38 = arith.mulf %37, %33 : vector<64x512xf32>
    %39 = arith.mulf %38, %33 : vector<64x512xf32>
    %40 = arith.addf %33, %39 : vector<64x512xf32>
    %cst_20 = arith.constant 0.797884583 : f32
    %41 = vector.broadcast %cst_20 : f32 to vector<64x512xf32>
    %42 = arith.mulf %41, %40 : vector<64x512xf32>
    %43 = math.tanh %42 : vector<64x512xf32>
    %cst_21 = arith.constant 1.000000e+00 : f32
    %44 = vector.broadcast %cst_21 : f32 to vector<64x512xf32>
    %45 = arith.addf %44, %43 : vector<64x512xf32>
    %46 = arith.mulf %35, %45 : vector<64x512xf32>
    %c0_22 = arith.constant 0 : index
    %c0_23 = arith.constant 0 : index
    %c0_24 = arith.constant 0 : index
    %47 = vector.load %arg8[%c0_22, %c0_23, %c0_24] : memref<1x64x512xf32, #tpu.memory_space<vmem>>, vector<1x64x512xf32>
    %48 = vector.shape_cast %47 : vector<1x64x512xf32> to vector<64x512xf32>
    %49 = vector.shape_cast %46 : vector<64x512xf32> to vector<1x64x512xf32>
    tpu.vector_store %arg8[%c0_22, %c0_23, %c0_24], %49 {strides = array<i32>} : memref<1x64x512xf32, #tpu.memory_space<vmem>>, vector<1x64x512xf32>,
    return
  }
  func.func @transform_0(%arg0: i32, %arg1: i32, %arg2: i32) -> (i32, i32, i32) {
    %c0_i32 = arith.constant 0 : i32
    %c0_i32_0 = arith.constant 0 : i32
    return %arg0, %arg1, %c0_i32 : i32, i32, i32
  }
  func.func @transform_1(%arg0: i32, %arg1: i32, %arg2: i32) -> (i32, i32, i32) {
    %c0_i32 = arith.constant 0 : i32
    %c0_i32_0 = arith.constant 0 : i32
    %c0_i32_1 = arith.constant 0 : i32
    return %arg0, %c0_i32, %c0_i32_0 : i32, i32, i32
  }
  func.func @transform_2(%arg0: i32, %arg1: i32, %arg2: i32) -> (i32, i32, i32) {
    %c0_i32 = arith.constant 0 : i32
    %c0_i32_0 = arith.constant 0 : i32
    %c0_i32_1 = arith.constant 0 : i32
    return %arg0, %c0_i32, %c0_i32_0 : i32, i32, i32
  }
  func.func @transform_3(%arg0: i32, %arg1: i32, %arg2: i32) -> (i32, i32) {
    %c0_i32 = arith.constant 0 : i32
    %c0_i32_0 = arith.constant 0 : i32
    return %c0_i32, %arg2 : i32, i32
  }
  func.func @transform_4(%arg0: i32, %arg1: i32, %arg2: i32) -> (i32, i32) {
    %c0_i32 = arith.constant 0 : i32
    %c0_i32_0 = arith.constant 0 : i32
    return %c0_i32, %arg2 : i32, i32
  }
  func.func @transform_5(%arg0: i32, %arg1: i32, %arg2: i32) -> (i32, i32, i32) {
    %c0_i32 = arith.constant 0 : i32
    return %arg0, %arg1, %arg2 : i32, i32, i32
  }
}

module attributes {stable_mosaic.version = 11 : i64} {
  func.func @_linear_gate_add_kernel(%arg0: i32, %arg1: i32, %arg2: i32, %arg3: memref<1x64x512xf32, #tpu.memory_space<vmem>>, %arg4: memref<1x64x128xf32, #tpu.memory_space<vmem>>, %arg5: memref<1x1x128xf32, #tpu.memory_space<vmem>>, %arg6: memref<512x128xbf16, #tpu.memory_space<vmem>>, %arg7: memref<1x128xf32, #tpu.memory_space<vmem>>, %arg8: memref<1x64x128xf32, #tpu.memory_space<vmem>>) attributes {dimension_semantics = [#tpu.dimension_semantics<parallel>, #tpu.dimension_semantics<parallel>, #tpu.dimension_semantics<parallel>], iteration_bounds = array<i64: 2, 1, 1>, scalar_prefetch = 0 : i64, scratch_operands = 0 : i64, tpu.core_type = #tpu.core_type<tc>, window_params = [{transform_indices = @transform_0, window_bounds = array<i64: 1, 64, 512>}, {transform_indices = @transform_1, window_bounds = array<i64: 1, 64, 128>}, {transform_indices = @transform_2, window_bounds = array<i64: 1, 1, 128>}, {transform_indices = @transform_3, window_bounds = array<i64: 512, 128>}, {transform_indices = @transform_4, window_bounds = array<i64: 1, 128>}, {transform_indices = @transform_5, window_bounds = array<i64: 1, 64, 128>}]} {
    %c0 = arith.constant 0 : index
    %c0_0 = arith.constant 0 : index
    %c0_1 = arith.constant 0 : index
    %0 = vector.load %arg3[%c0, %c0_0, %c0_1] : memref<1x64x512xf32, #tpu.memory_space<vmem>>, vector<1x64x512xf32>
    %1 = vector.shape_cast %0 : vector<1x64x512xf32> to vector<64x512xf32>
    %2 = arith.truncf %1 : vector<64x512xf32> to vector<64x512xbf16>
    %c0_2 = arith.constant 0 : index
    %c0_3 = arith.constant 0 : index
    %3 = vector.load %arg6[%c0_2, %c0_3] : memref<512x128xbf16, #tpu.memory_space<vmem>>, vector<512x128xbf16>
    %cst = arith.constant dense<0.000000e+00> : vector<64x128xf32>
    %4 = tpu.matmul %2, %3, %cst {dimension_numbers = #tpu.dot_dimension_numbers<[1], [0], [0], [1], [0, 0, 1, 1], [], []>} : vector<64x512xbf16>, vector<512x128xbf16>, vector<64x128xf32> -> vector<64x128xf32>
    %c0_4 = arith.constant 0 : index
    %c0_5 = arith.constant 0 : index
    %5 = vector.load %arg7[%c0_4, %c0_5] : memref<1x128xf32, #tpu.memory_space<vmem>>, vector<1x128xf32>
    %6 = vector.broadcast %5 : vector<1x128xf32> to vector<64x128xf32>
    %7 = arith.addf %4, %6 : vector<64x128xf32>
    %c0_6 = arith.constant 0 : index
    %c0_7 = arith.constant 0 : index
    %c0_8 = arith.constant 0 : index
    %8 = vector.load %arg4[%c0_6, %c0_7, %c0_8] : memref<1x64x128xf32, #tpu.memory_space<vmem>>, vector<1x64x128xf32>
    %9 = vector.shape_cast %8 : vector<1x64x128xf32> to vector<64x128xf32>
    %c0_9 = arith.constant 0 : index
    %c0_10 = arith.constant 0 : index
    %c0_11 = arith.constant 0 : index
    %10 = vector.load %arg5[%c0_9, %c0_10, %c0_11] : memref<1x1x128xf32, #tpu.memory_space<vmem>>, vector<1x1x128xf32>
    %11 = vector.shape_cast %10 : vector<1x1x128xf32> to vector<1x128xf32>
    %12 = vector.broadcast %11 : vector<1x128xf32> to vector<64x128xf32>
    %13 = arith.mulf %12, %7 : vector<64x128xf32>
    %14 = arith.addf %9, %13 : vector<64x128xf32>
    %c0_12 = arith.constant 0 : index
    %c0_13 = arith.constant 0 : index
    %c0_14 = arith.constant 0 : index
    %15 = vector.load %arg8[%c0_12, %c0_13, %c0_14] : memref<1x64x128xf32, #tpu.memory_space<vmem>>, vector<1x64x128xf32>
    %16 = vector.shape_cast %15 : vector<1x64x128xf32> to vector<64x128xf32>
    %17 = vector.shape_cast %14 : vector<64x128xf32> to vector<1x64x128xf32>
    tpu.vector_store %arg8[%c0_12, %c0_13, %c0_14], %17 {strides = array<i32>} : memref<1x64x128xf32, #tpu.memory_space<vmem>>, vector<1x64x128xf32>,
    return
  }
  func.func @transform_0(%arg0: i32, %arg1: i32, %arg2: i32) -> (i32, i32, i32) {
    %c0_i32 = arith.constant 0 : i32
    %c0_i32_0 = arith.constant 0 : i32
    return %arg0, %arg1, %c0_i32 : i32, i32, i32
  }
  func.func @transform_1(%arg0: i32, %arg1: i32, %arg2: i32) -> (i32, i32, i32) {
    %c0_i32 = arith.constant 0 : i32
    return %arg0, %arg1, %arg2 : i32, i32, i32
  }
  func.func @transform_2(%arg0: i32, %arg1: i32, %arg2: i32) -> (i32, i32, i32) {
    %c0_i32 = arith.constant 0 : i32
    %c0_i32_0 = arith.constant 0 : i32
    return %arg0, %c0_i32, %arg2 : i32, i32, i32
  }
  func.func @transform_3(%arg0: i32, %arg1: i32, %arg2: i32) -> (i32, i32) {
    %c0_i32 = arith.constant 0 : i32
    %c0_i32_0 = arith.constant 0 : i32
    return %c0_i32, %arg2 : i32, i32
  }
  func.func @transform_4(%arg0: i32, %arg1: i32, %arg2: i32) -> (i32, i32) {
    %c0_i32 = arith.constant 0 : i32
    %c0_i32_0 = arith.constant 0 : i32
    return %c0_i32, %arg2 : i32, i32
  }
  func.func @transform_5(%arg0: i32, %arg1: i32, %arg2: i32) -> (i32, i32, i32) {
    %c0_i32 = arith.constant 0 : i32
    return %arg0, %arg1, %arg2 : i32, i32, i32
  }
}

module attributes {stable_mosaic.version = 11 : i64} {
  func.func @_ln_mod_linear_kernel(%arg0: i32, %arg1: i32, %arg2: i32, %arg3: memref<1x64x128xf32, #tpu.memory_space<vmem>>, %arg4: memref<1x1x128xf32, #tpu.memory_space<vmem>>, %arg5: memref<1x1x128xf32, #tpu.memory_space<vmem>>, %arg6: memref<128x32xbf16, #tpu.memory_space<vmem>>, %arg7: memref<1x32xf32, #tpu.memory_space<vmem>>, %arg8: memref<1x64x32xf32, #tpu.memory_space<vmem>>) attributes {dimension_semantics = [#tpu.dimension_semantics<parallel>, #tpu.dimension_semantics<parallel>, #tpu.dimension_semantics<parallel>], iteration_bounds = array<i64: 2, 1, 1>, scalar_prefetch = 0 : i64, scratch_operands = 0 : i64, tpu.core_type = #tpu.core_type<tc>, window_params = [{transform_indices = @transform_0, window_bounds = array<i64: 1, 64, 128>}, {transform_indices = @transform_1, window_bounds = array<i64: 1, 1, 128>}, {transform_indices = @transform_2, window_bounds = array<i64: 1, 1, 128>}, {transform_indices = @transform_3, window_bounds = array<i64: 128, 32>}, {transform_indices = @transform_4, window_bounds = array<i64: 1, 32>}, {transform_indices = @transform_5, window_bounds = array<i64: 1, 64, 32>}]} {
    %c0 = arith.constant 0 : index
    %c0_0 = arith.constant 0 : index
    %c0_1 = arith.constant 0 : index
    %0 = vector.load %arg3[%c0, %c0_0, %c0_1] : memref<1x64x128xf32, #tpu.memory_space<vmem>>, vector<1x64x128xf32>
    %1 = vector.shape_cast %0 : vector<1x64x128xf32> to vector<64x128xf32>
    %cst = arith.constant dense<0.000000e+00> : vector<64xf32>
    %2 = vector.multi_reduction <add>, %1, %cst [1] : vector<64x128xf32> to vector<64xf32>
    %3 = vector.shape_cast %2 : vector<64xf32> to vector<64x1xf32>
    %cst_2 = arith.constant 1.280000e+02 : f32
    %4 = vector.broadcast %cst_2 : f32 to vector<64x1xf32>
    %5 = arith.divf %3, %4 : vector<64x1xf32>
    %6 = vector.broadcast %5 : vector<64x1xf32> to vector<64x128xf32>
    %7 = arith.subf %1, %6 : vector<64x128xf32>
    %8 = arith.mulf %7, %7 : vector<64x128xf32>
    %cst_3 = arith.constant dense<0.000000e+00> : vector<64xf32>
    %9 = vector.multi_reduction <add>, %8, %cst_3 [1] : vector<64x128xf32> to vector<64xf32>
    %10 = vector.shape_cast %9 : vector<64xf32> to vector<64x1xf32>
    %cst_4 = arith.constant 1.280000e+02 : f32
    %11 = vector.broadcast %cst_4 : f32 to vector<64x1xf32>
    %12 = arith.divf %10, %11 : vector<64x1xf32>
    %cst_5 = arith.constant 9.99999997E-7 : f32
    %13 = vector.broadcast %cst_5 : f32 to vector<64x1xf32>
    %14 = arith.addf %12, %13 : vector<64x1xf32>
    %15 = math.rsqrt %14 : vector<64x1xf32>
    %16 = vector.broadcast %15 : vector<64x1xf32> to vector<64x128xf32>
    %17 = arith.mulf %7, %16 : vector<64x128xf32>
    %c0_6 = arith.constant 0 : index
    %c0_7 = arith.constant 0 : index
    %c0_8 = arith.constant 0 : index
    %18 = vector.load %arg5[%c0_6, %c0_7, %c0_8] : memref<1x1x128xf32, #tpu.memory_space<vmem>>, vector<1x1x128xf32>
    %19 = vector.shape_cast %18 : vector<1x1x128xf32> to vector<1x128xf32>
    %cst_9 = arith.constant 1.000000e+00 : f32
    %20 = vector.broadcast %cst_9 : f32 to vector<1x128xf32>
    %21 = arith.addf %20, %19 : vector<1x128xf32>
    %22 = vector.broadcast %21 : vector<1x128xf32> to vector<64x128xf32>
    %23 = arith.mulf %17, %22 : vector<64x128xf32>
    %c0_10 = arith.constant 0 : index
    %c0_11 = arith.constant 0 : index
    %c0_12 = arith.constant 0 : index
    %24 = vector.load %arg4[%c0_10, %c0_11, %c0_12] : memref<1x1x128xf32, #tpu.memory_space<vmem>>, vector<1x1x128xf32>
    %25 = vector.shape_cast %24 : vector<1x1x128xf32> to vector<1x128xf32>
    %26 = vector.broadcast %25 : vector<1x128xf32> to vector<64x128xf32>
    %27 = arith.addf %23, %26 : vector<64x128xf32>
    %28 = arith.truncf %27 : vector<64x128xf32> to vector<64x128xbf16>
    %c0_13 = arith.constant 0 : index
    %c0_14 = arith.constant 0 : index
    %29 = vector.load %arg6[%c0_13, %c0_14] : memref<128x32xbf16, #tpu.memory_space<vmem>>, vector<128x32xbf16>
    %cst_15 = arith.constant dense<0.000000e+00> : vector<64x32xf32>
    %30 = tpu.matmul %28, %29, %cst_15 {dimension_numbers = #tpu.dot_dimension_numbers<[1], [0], [0], [1], [0, 0, 1, 1], [], []>} : vector<64x128xbf16>, vector<128x32xbf16>, vector<64x32xf32> -> vector<64x32xf32>
    %c0_16 = arith.constant 0 : index
    %c0_17 = arith.constant 0 : index
    %31 = vector.load %arg7[%c0_16, %c0_17] : memref<1x32xf32, #tpu.memory_space<vmem>>, vector<1x32xf32>
    %32 = vector.broadcast %31 : vector<1x32xf32> to vector<64x32xf32>
    %33 = arith.addf %30, %32 : vector<64x32xf32>
    %c0_18 = arith.constant 0 : index
    %c0_19 = arith.constant 0 : index
    %c0_20 = arith.constant 0 : index
    %34 = vector.load %arg8[%c0_18, %c0_19, %c0_20] : memref<1x64x32xf32, #tpu.memory_space<vmem>>, vector<1x64x32xf32>
    %35 = vector.shape_cast %34 : vector<1x64x32xf32> to vector<64x32xf32>
    %36 = vector.shape_cast %33 : vector<64x32xf32> to vector<1x64x32xf32>
    tpu.vector_store %arg8[%c0_18, %c0_19, %c0_20], %36 {strides = array<i32>} : memref<1x64x32xf32, #tpu.memory_space<vmem>>, vector<1x64x32xf32>,
    return
  }
  func.func @transform_0(%arg0: i32, %arg1: i32, %arg2: i32) -> (i32, i32, i32) {
    %c0_i32 = arith.constant 0 : i32
    %c0_i32_0 = arith.constant 0 : i32
    return %arg0, %arg1, %c0_i32 : i32, i32, i32
  }
  func.func @transform_1(%arg0: i32, %arg1: i32, %arg2: i32) -> (i32, i32, i32) {
    %c0_i32 = arith.constant 0 : i32
    %c0_i32_0 = arith.constant 0 : i32
    %c0_i32_1 = arith.constant 0 : i32
    return %arg0, %c0_i32, %c0_i32_0 : i32, i32, i32
  }
  func.func @transform_2(%arg0: i32, %arg1: i32, %arg2: i32) -> (i32, i32, i32) {
    %c0_i32 = arith.constant 0 : i32
    %c0_i32_0 = arith.constant 0 : i32
    %c0_i32_1 = arith.constant 0 : i32
    return %arg0, %c0_i32, %c0_i32_0 : i32, i32, i32
  }
  func.func @transform_3(%arg0: i32, %arg1: i32, %arg2: i32) -> (i32, i32) {
    %c0_i32 = arith.constant 0 : i32
    %c0_i32_0 = arith.constant 0 : i32
    return %c0_i32, %arg2 : i32, i32
  }
  func.func @transform_4(%arg0: i32, %arg1: i32, %arg2: i32) -> (i32, i32) {
    %c0_i32 = arith.constant 0 : i32
    %c0_i32_0 = arith.constant 0 : i32
    return %c0_i32, %arg2 : i32, i32
  }
  func.func @transform_5(%arg0: i32, %arg1: i32, %arg2: i32) -> (i32, i32, i32) {
    %c0_i32 = arith.constant 0 : i32
    return %arg0, %arg1, %arg2 : i32, i32, i32
  }
}

</mosaic_0001>

<bundles_post_ra>
// kernel: dit_forward.15
= control target key start
LH: loop header
LB: loop body
LE: loop exit
PB: predicated region body
PF: predicated region fallthrough
CT: control target
= control target key end

     0   :  { %10 = vsyncpa [#allocation3], 0  ;;  %s485_s18 = smov [#allocation2]   ;;  %s592_s0 = inlined_call_operand.vmem [shape: f32[2,256], index: 0, kind: input, shape index: {}]   ;;  %s593_s1 = inlined_call_operand.vmem [shape: bf16[256,128], index: 1, kind: input, shape index: {}]   ;;  %s594_s2 = inlined_call_operand.vmem [shape: f32[1,128], index: 2, kind: input, shape index: {}]   ;;  %s595_s3 = inlined_call_operand.hbm [shape: bf16[128,128], index: 3, kind: input, shape index: {}]   ;;  %s596_s4 = inlined_call_operand.vmem [shape: f32[1,128], index: 4, kind: input, shape index: {}]   ;;  %s597_s5 = inlined_call_operand.vmem [shape: f32[2,128], index: 5, kind: output, shape index: {}]  }
   0x1   :  { %s22_s19 = sshll.u32 %s485_s18, 4  ;;  %s461_s22 = scalar_lea.hbm %s595_s3, 1024  ;;  %s23_s19 = int_to_ptr.vmem [resolvable:$true] %s22_s19 }
   0x2   :  { %p462_p0 = scmp.ne.s32.totalorder %s595_s3, %s461_s22  ;;  %p465_p1 = scmp.lt.u32.totalorder %s461_s22, %s595_s3 }
   0x4   :  { %p467_p2 = pnand %p465_p1, %p462_p0 }
   0x6   :  { %470 = shalt.err (!%p467_p2)
}
   0x7   :  { %s471_s27 = scalar_lea.vmem %s23_s19, 1024  ;;  %p476_p4 = scmp.lt.s32.totalorder %s23_s19, %s23_s19 }
   0x8   :  { %p472_p3 = scmp.ne.s32.totalorder %s23_s19, %s471_s27  ;;  %p477_p5 = scmp.lt.s32.totalorder %s471_s27, %s471_s27 }
   0xa   :  { %p478_p6 = por %p477_p5, %p476_p4 }
   0xc   :  { %p479_p7 = pnand %p478_p6, %p472_p3 }
   0xe   :  { %482 = shalt.err (!%p479_p7)
}
   0xf   :  { %s486_s28 = smov 64   ;;  %s487_s29 = smov 4  }
  0x10   :  { %28 = dma.hbm_to_vmem [thread:$0]  %s595_s3, 1024, %s23_s19, [#allocation3], %s486_s28, %s486_s28, %s487_s29  }
  0x11   :  { %483 = dma.done.wait [#allocation3], 1024  }
  0x12   :  { %484 = vsyncadd [#allocation3], 4294966272  ;;  %v433_v0 = vld [vmem:[%s593_s1 + $0x40] sm:$0xff]   ;;  %v435_v2 = vld [vmem:[%s593_s1 + $0x48] sm:$0xff]   ;;  %v488_v21 = vmov 0.0   ;;  %vm489_vm0 = vmmov 0  }
  0x13   :  { %v434_v1 = vld [vmem:[%s593_s1] sm:$0xff]   ;;  %377 = vmatprep.subr.bf16.mxu0 %v433_v0  ;;  %v436_v3 = vld [vmem:[%s593_s1 + $0x8] sm:$0xff]   ;;  %v437_v4 = vld [vmem:[%s593_s1 + $0x50] sm:$0xff]   ;;  %408 = vmatprep.subr.bf16.mxu1 %v488_v21 }
  0x14   :  { %378 = vmatpush3.bf16.msra.mxu0 %v434_v1  ;;  %v438_v5 = vld [vmem:[%s593_s1 + $0x10] sm:$0xff]   ;;  %v439_v6 = vld [vmem:[%s593_s1 + $0x58] sm:$0xff]   ;;  %v441_v8 = vld [vmem:[%s593_s1 + $0x60] sm:$0xff]   ;;  %424 = vmatprep.mubr.msk.bf16.mxu1 %vm489_vm0, %v488_v21 }
  0x15   :  { %379 = vmatprep.subr.bf16.mxu0 %v435_v2  ;;  %v440_v7 = vld [vmem:[%s593_s1 + $0x18] sm:$0xff]   ;;  %v442_v9 = vld [vmem:[%s593_s1 + $0x20] sm:$0xff]   ;;  %v443_v10 = vld [vmem:[%s593_s1 + $0x68] sm:$0xff]  }
  0x16   :  { %v349_v11 = vld.sshfl [vmem:[%s592_s0] sm:$0x33 pattern:$0x76325410]  ;;  %v444_v12 = vld [vmem:[%s593_s1 + $0x28] sm:$0xff]   ;;  %v445_v14 = vld [vmem:[%s593_s1 + $0x70] sm:$0xff]  }
  0x17   :  { %v44_v13 = vcombine.high %v349_v11, %v349_v11  ;;  %v446_v16 = vld [vmem:[%s593_s1 + $0x30] sm:$0xff]   ;;  %v447_v17 = vld [vmem:[%s593_s1 + $0x78] sm:$0xff]   ;;  %v47_v19 = vpack.c.bf16 %v349_v11, %v349_v11  ;;  %v449_v20 = vld [vmem:[#allocation2] sm:$0xff]  }
  0x18   :  { %380 = vmatpush3.bf16.msra.mxu0 %v436_v3  ;;  %v448_v18 = vld [vmem:[%s593_s1 + $0x38] sm:$0xff]   ;;  %409 = vmatpush3.bf16.msra.mxu1 %v449_v20  ;;  %v450_v22 = vld [vmem:[#allocation2 + $0x8] sm:$0xff]   ;;  %v451_v23 = vld [vmem:[#allocation2 + $0x10] sm:$0xff]  }
  0x19   :  { %381 = vmatprep.subr.bf16.mxu0 %v437_v4  ;;  %v48_v15 = vpack.c.bf16 %v44_v13, %v44_v13  ;;  %410 = vmatprep.subr.bf16.mxu1 %v488_v21  ;;  %v452_v24 = vld [vmem:[#allocation2 + $0x18] sm:$0xff]   ;;  %v453_v25 = vld [vmem:[#allocation2 + $0x20] sm:$0xff]   ;;  %v454_v26 = vld [vmem:[#allocation2 + $0x28] sm:$0xff]  }
  0x1a   :  { %v455_v27 = vld [vmem:[#allocation2 + $0x30] sm:$0xff]   ;;  %v456_v28 = vld [vmem:[#allocation2 + $0x38] sm:$0xff]   ;;  %v350_v30 = vld [vmem:[%s594_s2] ss:$0 sm:$0xff] }
  0x1b   :  { %216 = vmatprep.mubr.bf16.mxu0 %v48_v15  ;;  %v368_v42 = vld [vmem:[%s596_s4] ss:$0 sm:$0xff] }
  0x1c   :  { %382 = vmatpush3.bf16.msra.mxu0 %v438_v5  ;;  %411 = vmatpush3.bf16.msra.mxu1 %v450_v22 }
  0x1d   :  { %383 = vmatprep.subr.bf16.mxu0 %v439_v6  ;;  %412 = vmatprep.subr.bf16.mxu1 %v488_v21 }
  0x20   :  { %384 = vmatpush3.bf16.msra.mxu0 %v440_v7  ;;  %413 = vmatpush3.bf16.msra.mxu1 %v451_v23 }
  0x21   :  { %385 = vmatprep.subr.bf16.mxu0 %v441_v8  ;;  %414 = vmatprep.subr.bf16.mxu1 %v488_v21 }
  0x24   :  { %386 = vmatpush3.bf16.msra.mxu0 %v442_v9  ;;  %415 = vmatpush3.bf16.msra.mxu1 %v452_v24 }
  0x25   :  { %387 = vmatprep.subr.bf16.mxu0 %v443_v10  ;;  %416 = vmatprep.subr.bf16.mxu1 %v488_v21 }
  0x28   :  { %388 = vmatpush3.bf16.msra.mxu0 %v444_v12  ;;  %417 = vmatpush3.bf16.msra.mxu1 %v453_v25 }
  0x29   :  { %389 = vmatprep.subr.bf16.mxu0 %v445_v14  ;;  %418 = vmatprep.subr.bf16.mxu1 %v488_v21 }
  0x2c   :  { %390 = vmatpush3.bf16.msra.mxu0 %v446_v16  ;;  %419 = vmatpush3.bf16.msra.mxu1 %v454_v26 }
  0x2d   :  { %391 = vmatprep.subr.bf16.mxu0 %v447_v17  ;;  %420 = vmatprep.subr.bf16.mxu1 %v488_v21 }
  0x30   :  { %392 = vmatpush3.bf16.msra.mxu0 %v448_v18  ;;  %421 = vmatpush3.bf16.msra.mxu1 %v455_v27 }
  0x31   :  { %422 = vmatprep.subr.bf16.mxu1 %v488_v21 }
  0x33   :  { %217 = vmatmul.mubr.bf16.vlgmr.msra.gmra.mrb[0].mxu0 %v47_v19 }
  0x34   :  { %423 = vmatpush3.bf16.msra.mxu1 %v456_v28 }
 0x106   :  { %v393_v29 = vpop.f32.mrb[0].mxu0 }
 0x107   :  { %v394_v31 = vpop.f32.mrb[1].mxu0 }
 0x108   :  { %v395_v32 = vadd.f32 %v394_v31, %v393_v29  ;;  %v396_v33 = vpop.f32.mrb[2].mxu0 }
 0x109   :  { %v397_v34 = vpop.f32.mrb[3].mxu0 }
 0x10a   :  { %v219_v35 = vadd.f32 %v395_v32, %v350_v30 }
 0x10c   :  { %v367_v36 = vmul.f32 -1.442695, %v219_v35 }
 0x10e   :  { %457 = vpow2.f32 %v367_v36 }
 0x118   :  { %v458_v37 = vpop.eup %457 }
 0x119   :  { %v227_v38 = vadd.f32 1.0, %v458_v37 }
 0x11b   :  { %459 = vrcp.f32 %v227_v38 }
 0x125   :  { %v460_v39 = vpop.eup %459 }
 0x126   :  { %v230_v40 = vmul.f32 %v460_v39, %v219_v35 }
 0x128   :  { %v231_v41 = vpack.c.bf16 %v230_v40, %v230_v40 }
 0x12a   :  { %425 = vmatmul.mubr.bf16.vlgmr.msra.gmra.mrb[0].mxu1 %v231_v41 }
 0x1fd   :  { %v337_v43 = vpop.f32.mrb[0].mxu1 }
 0x1fe   :  { %v338_v44 = vadd.f32 %v368_v42, %v337_v43  ;;  %v426_v45 = vpop.f32.mrb[1].mxu1 }
 0x1ff   :  { %v340_v46 = vpop.f32.mrb[2].mxu1 }
 0x200   :  { %343 = vst [vmem:[%s597_s5] sm:$0x3] %v338_v44  ;;  %v427_v47 = vpop.f32.mrb[3].mxu1 }
 0x201   :  { %348 = vsyncpa [#allocation3], 1 }

// kernel: dit_forward.16
= control target key start
LH: loop header
LB: loop body
LE: loop exit
PB: predicated region body
PF: predicated region fallthrough
CT: control target
= control target key end

     0   :  { %8 = vsyncpa [#allocation3], 0  ;;  %s915_s0 = inlined_call_operand.vmem [shape: f32[2,128], index: 0, kind: input, shape index: {}]   ;;  %s916_s1 = inlined_call_operand.hbm [shape: bf16[128,1792], index: 1, kind: input, shape index: {}]   ;;  %s917_s2 = inlined_call_operand.vmem [shape: f32[1,1792], index: 2, kind: input, shape index: {}]   ;;  %s918_s3 = inlined_call_operand.vmem [shape: f32[2,1792], index: 3, kind: output, shape index: {}]  }
   0x1   :  { %10 = vsyncpa [#allocation3 + $0x1], 0  ;;  %s766_s12 = smov 0   ;;  %s768_s13 = smov 0  }
   0x2   :  { %s770_s14 = smov 0   ;;  %s772_s15 = smov 0  }
   0x3   :  { %s774_s16 = smov 0   ;;  %s776_s17 = smov 0  }
   0x4 LB: > { %s538_s18 = sadd.s32 4294967295, %s739_s17   ;;  %s25_s19 = sadd.s32 1, %s735_s16  ;;  %s739_s17 = sphi %s776_s17, %s16_s17   ;;  %s735_s16 = sphi %s774_s16, %s927_s16   ;;  %s731_s15 = sphi %s772_s15, %s926_s15   ;;  %s727_s14 = sphi %s770_s14, %s925_s14   ;;  %s723_s13 = sphi %s768_s13, %s924_s13   ;;  %s719_s12 = sphi %s766_s12, %s923_s12  }
   0x5   : > { %p26_p0 = scmp.ge.s32.totalorder %s25_s19, 7  ;;  %s61_s20 = sadd.s32 1, %s727_s14 }
   0x6   : > { %p68_p1 = scmp.ne.s32.totalorder %s727_s14, %s723_s13  ;;  %p69_p2 = scmp.eq.s32.totalorder %s739_s17, 0 }
   0x7   : > { %s929_s19 = smov (%p26_p0, %s25_s19), 0  ;;  %p74_p4 = scmp.ne.s32.totalorder %s723_s13, %s719_s12 }
   0x8   : > { %p802_p3 = por %p69_p2, %p68_p1  ;;  %s58_s22 = ssub.s32 %s735_s16, %s929_s19 }
   0x9   : > { %p75_p5 = scmp.eq.s32.totalorder %s538_s18, 0  ;;  %p59_p6 = scmp.eq.s32.totalorder %s58_s22, 0 }
   0xa   : > { %p578_p8 = scmp.lt.s32.totalorder %s739_s17, 7  ;;  %s159_s25 = sand.u32 1, %s727_s14  }
   0xb   : > { %p809_p7 = por %p75_p5, %p74_p4  ;;  %s571_s26 = sshll.u32 %s735_s16, 7 }
   0xc   : > { %s815_s24 = scalar_select %p59_p6, %s727_s14, %s61_s20  }
   0xd   : > { %s543_s27 = sshll.u32 %s159_s25, 7  ;;  %s822_s30 = scalar_lea.hbm %s916_s1, %s571_s26 }
   0xe   : > { %s163_s4 = scalar_lea.vmem [#allocation2], %s543_s27  ;;  %p826_p9 = pnand %p578_p8, %p802_p3 }
   0xf   : > { %s170_s5 = sshll.u32 %s163_s4, 4  ;;  %s833_s7 = scalar_lea.sflag [#allocation3], %s159_s25  ;;  %s830_s5 = int_to_ptr.vmem [resolvable:$true] %s170_s5 }
  0x10   : > { %s659_s8 = scalar_lea.hbm %s822_s30, 2048  ;;  %p661_p12 = pneg %p826_p9 }
  0x11   : > { %p660_p11 = scmp.ne.s32.totalorder %s822_s30, %s659_s8  ;;  %s664_s11 = scalar_lea.hbm %s916_s1, 14336 }
  0x12   : > { %p665_p1 = scmp.lt.u32.totalorder %s822_s30, %s916_s1  ;;  %p666_p2 = scmp.lt.u32.totalorder %s664_s11, %s659_s8 }
  0x13   : > { %p662_p13 = pnand %p661_p12, %p660_p11  ;;  %p668_p4 = scmp.lt.u32.totalorder %s659_s8, %s822_s30 }
  0x14   : > { %p667_p3 = por %p666_p2, %p665_p1 }
  0x15   : > { %p663_p0 = pneg %p662_p13 }
  0x16   : > { %p669_p5 = por %p668_p4, %p667_p3 }
  0x18   : > { %p670_p6 = pnand %p669_p5, %p663_p0 }
  0x1a   : > { %673 = shalt.err (!%p670_p6)
}
  0x1b   : > { %s674_s20 = scalar_lea.vmem %s830_s5, 2048  ;;  %s741_s21 = smov [#allocation2]  }
  0x1c   : > { %p675_p8 = scmp.ne.s32.totalorder %s830_s5, %s674_s20  ;;  %s679_s22 = sshll.u32 %s741_s21, 4  ;;  %s680_s22 = int_to_ptr.vmem [resolvable:$false] %s679_s22 }
  0x1d   : > { %s681_s25 = scalar_lea.vmem %s680_s22, 4096  ;;  %p682_p10 = scmp.lt.s32.totalorder %s830_s5, %s680_s22 }
  0x1e   : > { %p677_p11 = pnand %p675_p8, %p661_p12  ;;  %p683_p1 = scmp.lt.s32.totalorder %s681_s25, %s674_s20 }
  0x20   : > { %p678_p13 = pneg %p677_p11  ;;  %p684_p2 = por %p683_p1, %p682_p10 }
  0x22   : > { %p685_p3 = pnand %p684_p2, %p678_p13 }
  0x24   : > { %688 = shalt.err (!%p685_p3)
}
  0x25   : > { %s742_s26 = smov 896   ;;  %s743_s27 = smov 128  }
  0x26   : > { %s744_s28 = smov 8   ;;  %p186_p12 = scmp.lt.s32.totalorder %s739_s17, 8 }
  0x27   : > { %577 = dma.hbm_to_vmem [thread:$0]  (!%p826_p9), %s822_s30, 2048, %s830_s5, %s833_s7, %s742_s26, %s743_s27, %s744_s28  }
  0x28   : > { %p922_p0 = scmp.ge.s32.totalorder %s739_s17, 1 }
  0x2a   : > { %p187_p4 = pnand %p922_p0, %p186_p12 }
  0x2b   : > { %s192_s29 = sand.u32 (!%p187_p4), 1, %s723_s13  }
  0x2c   : > { %190 = sbr.rel (%p187_p4) target bundleno = 304 (0x130), region = 32  ;;  %s547_s4 = sshll.u32 (!%p187_p4), %s192_s29, 7 }
  0x2d   : > { %s193_s8 = scalar_lea.sflag (!%p187_p4), [#allocation3], %s192_s29  ;;  %s865_s9 = scalar_lea.vmem (!%p187_p4), [#allocation2], %s547_s4 }
  0x33   : > { %714 = dma.done.wait (%p809_p7), %s193_s8, 2048  }
  0x34   : > { %716 = vsyncadd (%p809_p7), %s193_s8, 4294965248  ;;  %v745_v0 = vmov 0   ;;  %v631_v1 = vld [vmem:[%s865_s9 + $0x4] ss:$8 sps:$4 sm:$0xff]   ;;  %v633_v2 = vld [vmem:[%s865_s9] ss:$8 sps:$4 sm:$0xff]   ;;  %v279_v24 = vlaneseq }
  0x35   : > { %401 = vmatprep.mubr.bf16.mxu0 %v745_v0  ;;  %369 = vmatprep.subr.bf16.mxu0 %v631_v1  ;;  %v634_v3 = vld [vmem:[%s865_s9 + $0x14] ss:$8 sps:$4 sm:$0xff]   ;;  %v636_v4 = vld [vmem:[%s865_s9 + $0x10] ss:$8 sps:$4 sm:$0xff]   ;;  %v637_v5 = vld [vmem:[%s865_s9 + $0x24] ss:$8 sps:$4 sm:$0xff]  }
  0x36   : > { %370 = vmatpush1.bf16.msra.mxu0 %v633_v2  ;;  %v639_v6 = vld [vmem:[%s865_s9 + $0x20] ss:$8 sps:$4 sm:$0xff]   ;;  %v640_v7 = vld [vmem:[%s865_s9 + $0x34] ss:$8 sps:$4 sm:$0xff]   ;;  %v642_v9 = vld [vmem:[%s865_s9 + $0x30] ss:$8 sps:$4 sm:$0xff]  }
  0x37   : > { %371 = vmatprep.subr.bf16.mxu0 %v634_v3  ;;  %v252_v8 = vld [vmem:[%s915_s0] sm:$0x3]  ;;  %v643_v11 = vld [vmem:[%s865_s9 + $0x44] ss:$8 sps:$4 sm:$0xff]   ;;  %v646_v13 = vld [vmem:[%s865_s9 + $0x54] ss:$8 sps:$4 sm:$0xff]  }
  0x38   : > { %v551_v10 = vmul.f32 -1.442695, %v252_v8  ;;  %v645_v12 = vld [vmem:[%s865_s9 + $0x40] ss:$8 sps:$4 sm:$0xff]   ;;  %v648_v14 = vld [vmem:[%s865_s9 + $0x50] ss:$8 sps:$4 sm:$0xff]  }
  0x39   : > { %v649_v15 = vld [vmem:[%s865_s9 + $0x64] ss:$8 sps:$4 sm:$0xff]   ;;  %v651_v17 = vld [vmem:[%s865_s9 + $0x60] ss:$8 sps:$4 sm:$0xff]   ;;  %v652_v18 = vld [vmem:[%s865_s9 + $0x74] ss:$8 sps:$4 sm:$0xff]  }
  0x3a   : > { %372 = vmatpush1.bf16.msra.mxu0 %v636_v4  ;;  %655 = vpow2.f32 %v551_v10  ;;  %v654_v20 = vld [vmem:[%s865_s9 + $0x70] ss:$8 sps:$4 sm:$0xff]   ;;  %s548_s5 = sshll.u32 %s731_s15, 1  ;;  %v280_v25 = vshrl.u32 %v279_v24, 7 }
  0x3b   : > { %373 = vmatprep.subr.bf16.mxu0 %v637_v5  ;;  %p237_p7 = scmp.lt.s32.totalorder %s548_s5, 13 }
  0x3c   : > { %v281_v26 = vsub.s32 0, %v280_v25  ;;  %v285_v28 = vsub.s32 1, %v280_v25 }
  0x3d   : > { %s931_s5 = smov (!%p237_p7, %s548_s5), 13 }
  0x3e   : > { %374 = vmatpush1.bf16.msra.mxu0 %v639_v6  ;;  %s239_s10 = scalar_lea.vmem %s917_s2, %s931_s5  ;;  %s550_s11 = sshll.u32 %s931_s5, 1 }
  0x3f   : > { %375 = vmatprep.subr.bf16.mxu0 %v640_v7  ;;  %v277_v27 = vld [vmem:[%s239_s10] sm:$0x3]  ;;  %s249_s18 = scalar_lea.vmem %s918_s3, %s550_s11 }
  0x40   : > { %v282_v29 = vrot.slane %v277_v27, %v281_v26  ;;  %v286_v30 = vrot.slane %v277_v27, %v285_v28 }
  0x42   : > { %376 = vmatpush1.bf16.msra.mxu0 %v642_v9 }
  0x43   : > { %377 = vmatprep.subr.bf16.mxu0 %v643_v11 }
  0x44   : > { %v656_v16 = vpop.eup %655 }
  0x45   : > { %v256_v19 = vadd.f32 1.0, %v656_v16 }
  0x46   : > { %378 = vmatpush1.bf16.msra.mxu0 %v645_v12 }
  0x47   : > { %379 = vmatprep.subr.bf16.mxu0 %v646_v13  ;;  %657 = vrcp.f32 %v256_v19 }
  0x4a   : > { %380 = vmatpush1.bf16.msra.mxu0 %v648_v14 }
  0x4b   : > { %381 = vmatprep.subr.bf16.mxu0 %v649_v15 }
  0x4e   : > { %382 = vmatpush1.bf16.msra.mxu0 %v651_v17 }
  0x4f   : > { %383 = vmatprep.subr.bf16.mxu0 %v652_v18 }
  0x51   : > { %v658_v21 = vpop.eup %657 }
  0x52   : > { %384 = vmatpush1.bf16.msra.mxu0 %v654_v20  ;;  %v259_v22 = vmul.f32 %v658_v21, %v252_v8 }
  0x54   : > { %v260_v23 = vpack.c.bf16 %v259_v22, %v259_v22 }
  0x56   : > { %402 = vmatmul.mubr.bf16.vlgmr.msra.gmra.mrb[0].mxu0 %v260_v23 }
 0x129   : > { %v403_v31 = vpop.f32.mrb[0].mxu0 }
 0x12a   : > { %v404_v32 = vadd.f32 %v403_v31, %v282_v29  ;;  %v405_v33 = vpop.f32.mrb[1].mxu0 }
 0x12b   : > { %v406_v34 = vadd.f32 %v405_v33, %v286_v30  ;;  %v407_v35 = vpop.f32.mrb[2].mxu0 }
 0x12c   : > { %v408_v36 = vpop.f32.mrb[3].mxu0 }
 0x12d   : > { %v412_v37 = vcombine.low %v404_v32, %v406_v34 }
 0x12f   : > { %568 = vst.sshfl [vmem:[%s249_s18] sm:$0x33 pattern:$0x76325410] %v412_v37 }
 0x130 PF: > { %s16_s17 = sadd.s32 1, %s739_s17   ;;  %s923_s12 = smov %s723_s13 }
 0x131   : > { %p13_p9 = scmp.ge.s32.totalorder %s16_s17, 9   ;;  %s924_s13 = smov %s727_s14 }
 0x132   : > { %s925_s14 = smov %s815_s24  ;;  %s926_s15 = smov %s735_s16 }
 0x133   : > { %s927_s16 = smov %s929_s19  ;;  %15 = sbr.rel (!%p13_p9) target bundleno = 4 (0x4), region = 78 }
 0x13a   :  { %452 = vsyncpa [#allocation3], 1 }
 0x13b   :  { %454 = vsyncpa [#allocation3 + $0x1], 1 }

// kernel: dit_forward.14
= control target key start
LH: loop header
LB: loop body
LE: loop exit
PB: predicated region body
PF: predicated region fallthrough
CT: control target
= control target key end

     0   :  { %s546_s12 = smov 0   ;;  %s548_s13 = smov 0   ;;  %s585_s0 = inlined_call_operand.vmem [shape: f32[128,16], index: 0, kind: input, shape index: {}]   ;;  %s586_s1 = inlined_call_operand.vmem [shape: bf16[16,128], index: 1, kind: input, shape index: {}]   ;;  %s587_s2 = inlined_call_operand.vmem [shape: f32[1,128], index: 2, kind: input, shape index: {}]   ;;  %s588_s3 = inlined_call_operand.vmem [shape: f32[128,128], index: 3, kind: output, shape index: {}]  }
   0x1   :  { %s550_s14 = smov 0  }
   0x2 LB: > { %s25_s15 = sadd.s32 1, %s520_s13  ;;  %p447_p0 = scmp.ge.s32.totalorder %s524_s14, 1  ;;  %s524_s14 = sphi %s550_s14, %s13_s14   ;;  %s520_s13 = sphi %s548_s13, %s590_s13   ;;  %s516_s12 = sphi %s546_s12, %s589_s12  }
   0x3   : > { %p27_p1 = scmp.ge.s32.totalorder %s25_s15, 2  ;;  %p169_p2 = scmp.lt.s32.totalorder %s524_s14, 3 }
   0x5   : > { %s592_s15 = smov (%p27_p1, %s25_s15), 0  ;;  %p170_p3 = pnand %p447_p0, %p169_p2 }
   0x6   : > { %v501_v0 = vld [vmem:[%s586_s1] sm:$0xff] (!%p170_p3)   ;;  %s448_s18 = sshll.u32 (!%p170_p3), %s516_s12, 3  ;;  %vm253_vm0 = vcmask (!%p170_p3), 130048  }
   0x7   : > { %173 = sbr.rel (%p170_p3) target bundleno = 240 (0xf0), region = 32  ;;  %p204_p4 = scmp.lt.s32.totalorder (!%p170_p3), %s448_s18, 15  ;;  %465 = vmatprep.subr.bf16.mxu0 (!%p170_p3), %v501_v0  ;;  %475 = vmatprep.subr.bf16.mxu1 (!%p170_p3), %v501_v0  ;;  %v452_v13 = vld [vmem:[%s587_s2] ss:$0 sm:$0xff] (!%p170_p3) }
   0x8   : > { %466 = vmatpush3.bf16.msra.mxu0 (!%p170_p3), %v501_v0  ;;  %476 = vmatpush3.bf16.msra.mxu1 (!%p170_p3), %v501_v0 }
   0xe   : > { %s594_s18 = smov (!%p204_p4, %s448_s18), 15 }
   0xf   : > { %s449_s19 = sshll.u32 %s594_s18, 3 }
  0x10   : > { %s207_s22 = scalar_lea.vmem %s585_s0, %s449_s19  ;;  %s223_s27 = scalar_lea.vmem %s588_s3, %s449_s19 }
  0x11   : > { %v226_v1 = vld [vmem:[%s207_s22] sm:$0xff]  ;;  %v227_v2 = vld [vmem:[%s207_s22 + $0x8] sm:$0xff]  ;;  %v228_v6 = vld [vmem:[%s207_s22 + $0x10] sm:$0xff] }
  0x12   : > { %v230_v3 = vld [vmem:[%s207_s22 + $0x20] sm:$0xff]  ;;  %v234_v4 = vpack.c.bf16 %v227_v2, %v226_v1  ;;  %v231_v5 = vld [vmem:[%s207_s22 + $0x28] sm:$0xff]  ;;  %v229_v7 = vld [vmem:[%s207_s22 + $0x18] sm:$0xff] }
  0x13   : > { %v236_v8 = vpack.c.bf16 %v231_v5, %v230_v3  ;;  %v235_v9 = vpack.c.bf16 %v229_v7, %v228_v6  ;;  %v232_v10 = vld [vmem:[%s207_s22 + $0x30] sm:$0xff]  ;;  %v233_v11 = vld [vmem:[%s207_s22 + $0x38] sm:$0xff] }
  0x14   : > { %467 = vmatprep.mubr.msk.bf16.mxu0 %vm253_vm0, %v234_v4  ;;  %v237_v12 = vpack.c.bf16 %v233_v11, %v232_v10 }
  0x15   : > { %471 = vmatprep.mubr.msk.bf16.mxu1 %vm253_vm0, %v236_v8  ;;  %468 = vmatmul.mubr.msk.bf16.vlgmr.msra.gmra.mrb[0].mxu0 %vm253_vm0, %v235_v9 }
  0x16   : > { %472 = vmatmul.mubr.msk.bf16.vlgmr.msra.gmra.mrb[0].mxu1 %vm253_vm0, %v237_v12 }
  0xe8   : > { %v469_v14 = vpop.f32.mrb[0].mxu0 }
  0xe9   : > { %v309_v15 = vadd.f32 %v469_v14, %v452_v13  ;;  %v473_v16 = vpop.f32.mrb[0].mxu1  ;;  %v300_v17 = vpop.f32.mrb[1].mxu0 }
  0xea   : > { %v325_v18 = vadd.f32 %v473_v16, %v452_v13  ;;  %v301_v19 = vadd.f32 %v452_v13, %v300_v17  ;;  %v316_v20 = vpop.f32.mrb[1].mxu1  ;;  %v470_v21 = vpop.f32.mrb[2].mxu0 }
  0xeb   : > { %333 = vst [vmem:[%s223_s27 + $0x10] sm:$0xff] %v309_v15  ;;  %v317_v22 = vadd.f32 %v452_v13, %v316_v20  ;;  %v312_v23 = vadd.f32 %v470_v21, %v452_v13  ;;  %v474_v24 = vpop.f32.mrb[2].mxu1  ;;  %v303_v25 = vpop.f32.mrb[3].mxu0 }
  0xec   : > { %337 = vst [vmem:[%s223_s27 + $0x30] sm:$0xff] %v325_v18  ;;  %331 = vst [vmem:[%s223_s27] sm:$0xff] %v301_v19  ;;  %v328_v26 = vadd.f32 %v474_v24, %v452_v13  ;;  %v304_v27 = vadd.f32 %v452_v13, %v303_v25  ;;  %v319_v28 = vpop.f32.mrb[3].mxu1 }
  0xed   : > { %335 = vst [vmem:[%s223_s27 + $0x20] sm:$0xff] %v317_v22  ;;  %334 = vst [vmem:[%s223_s27 + $0x18] sm:$0xff] %v312_v23  ;;  %v320_v29 = vadd.f32 %v452_v13, %v319_v28 }
  0xee   : > { %338 = vst [vmem:[%s223_s27 + $0x38] sm:$0xff] %v328_v26  ;;  %332 = vst [vmem:[%s223_s27 + $0x8] sm:$0xff] %v304_v27 }
  0xef   : > { %336 = vst [vmem:[%s223_s27 + $0x28] sm:$0xff] %v320_v29 }
  0xf0 PF: > { %s13_s14 = sadd.s32 1, %s524_s14   ;;  %s589_s12 = smov %s520_s13 }
  0xf1   : > { %p10_p5 = scmp.ge.s32.totalorder %s13_s14, 4   ;;  %s590_s13 = smov %s592_s15 }
  0xf3   :  { %12 = sbr.rel (!%p10_p5) target bundleno = 2 (0x2), region = 68 }

// kernel: dit_forward.19
= control target key start
LH: loop header
LB: loop body
LE: loop exit
PB: predicated region body
PF: predicated region fallthrough
CT: control target
= control target key end

     0   :  { %s896_s18 = smov 0   ;;  %s898_s19 = smov 0   ;;  %s991_s0 = inlined_call_operand.vmem [shape: f32[2,64,128], index: 0, kind: input, shape index: {}]   ;;  %s992_s1 = inlined_call_operand.vmem [shape: f32[2,64,128], index: 1, kind: input, shape index: {}]   ;;  %s993_s2 = inlined_call_operand.vmem [shape: f32[2,1,128], index: 2, kind: input, shape index: {}]   ;;  %s994_s3 = inlined_call_operand.vmem [shape: bf16[128,128], index: 3, kind: input, shape index: {}]   ;;  %s995_s4 = inlined_call_operand.vmem [shape: f32[1,128], index: 4, kind: input, shape index: {}]   ;;  %s996_s5 = inlined_call_operand.vmem [shape: f32[2,64,128], index: 5, kind: output, shape index: {}]  }
   0x1   :  { %s900_s20 = smov 0  }
   0x2 LB: > { %s34_s21 = sadd.s32 1, %s860_s19  ;;  %p736_p0 = scmp.ge.s32.totalorder %s864_s20, 1  ;;  %s864_s20 = sphi %s900_s20, %s15_s20   ;;  %s860_s19 = sphi %s898_s19, %s998_s19   ;;  %s856_s18 = sphi %s896_s18, %s997_s18  }
   0x3   : > { %p36_p1 = scmp.ge.s32.totalorder %s34_s21, 2  ;;  %p269_p2 = scmp.lt.s32.totalorder %s864_s20, 3 }
   0x5   : > { %s1000_s21 = smov (%p36_p1, %s34_s21), 0  ;;  %p270_p3 = pnand %p736_p0, %p269_p2 }
   0x6   : > { %v834_v0 = vld [vmem:[%s994_s3] sm:$0xff] (!%p270_p3)   ;;  %p334_p4 = scmp.lt.s32.totalorder (!%p270_p3), %s856_s18, 1  ;;  %v835_v1 = vld [vmem:[%s994_s3 + $0x8] sm:$0xff] (!%p270_p3)   ;;  %v836_v2 = vld [vmem:[%s994_s3 + $0x10] sm:$0xff] (!%p270_p3)  }
   0x7   : > { %273 = sbr.rel (%p270_p3) target bundleno = 262 (0x106), region = 40  ;;  %770 = vmatprep.subr.bf16.mxu0 (!%p270_p3), %v834_v0  ;;  %794 = vmatprep.subr.bf16.mxu1 (!%p270_p3), %v834_v0  ;;  %v837_v3 = vld [vmem:[%s994_s3 + $0x18] sm:$0xff] (!%p270_p3)   ;;  %v838_v10 = vld [vmem:[%s994_s3 + $0x20] sm:$0xff] (!%p270_p3)   ;;  %v839_v11 = vld [vmem:[%s994_s3 + $0x28] sm:$0xff] (!%p270_p3)  }
   0x8   : > { %771 = vmatpush3.bf16.msra.mxu0 (!%p270_p3), %v834_v0  ;;  %802 = vmatpush3.bf16.msra.mxu1 (!%p270_p3), %v834_v0  ;;  %v840_v12 = vld [vmem:[%s994_s3 + $0x30] sm:$0xff] (!%p270_p3)   ;;  %v841_v13 = vld [vmem:[%s994_s3 + $0x38] sm:$0xff] (!%p270_p3)   ;;  %v743_v20 = vld [vmem:[%s995_s4] ss:$0 sm:$0xff] (!%p270_p3) }
   0x9   : > { %772 = vmatprep.subr.bf16.mxu0 (!%p270_p3), %v835_v1  ;;  %795 = vmatprep.subr.bf16.mxu1 (!%p270_p3), %v835_v1 }
   0xc   : > { %773 = vmatpush3.bf16.msra.mxu0 (!%p270_p3), %v835_v1  ;;  %803 = vmatpush3.bf16.msra.mxu1 (!%p270_p3), %v835_v1 }
   0xd   : > { %774 = vmatprep.subr.bf16.mxu0 (!%p270_p3), %v836_v2  ;;  %796 = vmatprep.subr.bf16.mxu1 (!%p270_p3), %v836_v2 }
   0xe   : > { %s1002_s18 = smov (!%p334_p4, %s856_s18), 1 }
   0xf   : > { %s926_s28 = sshll.u32 %s1002_s18, 6  ;;  %s361_s23 = scalar_lea.vmem %s993_s2, %s1002_s18 }
  0x10   : > { %s932_s6 = scalar_lea.vmem %s991_s0, %s926_s28  ;;  %775 = vmatpush3.bf16.msra.mxu0 %v836_v2  ;;  %804 = vmatpush3.bf16.msra.mxu1 %v836_v2  ;;  %s968_s29 = scalar_lea.vmem %s992_s1, %s926_s28  ;;  %v752_v22 = vld [vmem:[%s361_s23] ss:$0 sm:$0xff] }
  0x11   : > { %v383_v4 = vld [vmem:[%s932_s6] sm:$0xff]  ;;  %v384_v5 = vld [vmem:[%s932_s6 + $0x8] sm:$0xff]  ;;  %776 = vmatprep.subr.bf16.mxu0 %v837_v3  ;;  %797 = vmatprep.subr.bf16.mxu1 %v837_v3  ;;  %v385_v14 = vld [vmem:[%s932_s6 + $0x10] sm:$0xff] }
  0x12   : > { %v387_v6 = vld [vmem:[%s932_s6 + $0x20] sm:$0xff]  ;;  %v391_v7 = vpack.c.bf16 %v384_v5, %v383_v4  ;;  %v388_v8 = vld [vmem:[%s932_s6 + $0x28] sm:$0xff]  ;;  %v386_v15 = vld [vmem:[%s932_s6 + $0x18] sm:$0xff] }
  0x13   : > { %v393_v9 = vpack.c.bf16 %v388_v8, %v387_v6  ;;  %v389_v16 = vld [vmem:[%s932_s6 + $0x30] sm:$0xff]  ;;  %v390_v17 = vld [vmem:[%s932_s6 + $0x38] sm:$0xff]  ;;  %v392_v18 = vpack.c.bf16 %v386_v15, %v385_v14  ;;  %v531_v36 = vld [vmem:[%s968_s29] sm:$0xff]  ;;  %s380_s6 = scalar_lea.vmem %s996_s5, %s926_s28 }
  0x14   : > { %786 = vmatprep.mubr.bf16.mxu0 %v391_v7  ;;  %777 = vmatpush3.bf16.msra.mxu0 %v837_v3  ;;  %v394_v19 = vpack.c.bf16 %v390_v17, %v389_v16  ;;  %v533_v28 = vld [vmem:[%s968_s29 + $0x10] sm:$0xff]  ;;  %v535_v37 = vld [vmem:[%s968_s29 + $0x20] sm:$0xff]  ;;  %v534_v44 = vld [vmem:[%s968_s29 + $0x18] sm:$0xff] }
  0x15   : > { %790 = vmatprep.mubr.bf16.mxu1 %v393_v9  ;;  %805 = vmatpush3.bf16.msra.mxu1 %v837_v3  ;;  %v537_v29 = vld [vmem:[%s968_s29 + $0x30] sm:$0xff]  ;;  %v538_v45 = vld [vmem:[%s968_s29 + $0x38] sm:$0xff]  ;;  %v532_v52 = vld [vmem:[%s968_s29 + $0x8] sm:$0xff] }
  0x16   : > { %778 = vmatprep.subr.bf16.mxu0 %v838_v10  ;;  %798 = vmatprep.subr.bf16.mxu1 %v838_v10  ;;  %v536_v53 = vld [vmem:[%s968_s29 + $0x28] sm:$0xff] }
  0x18   : > { %779 = vmatpush3.bf16.msra.mxu0 %v838_v10 }
  0x19   : > { %806 = vmatpush3.bf16.msra.mxu1 %v838_v10  ;;  %780 = vmatprep.subr.bf16.mxu0 %v839_v11 }
  0x1a   : > { %799 = vmatprep.subr.bf16.mxu1 %v839_v11 }
  0x1c   : > { %781 = vmatpush3.bf16.msra.mxu0 %v839_v11 }
  0x1d   : > { %807 = vmatpush3.bf16.msra.mxu1 %v839_v11  ;;  %782 = vmatprep.subr.bf16.mxu0 %v840_v12 }
  0x1e   : > { %800 = vmatprep.subr.bf16.mxu1 %v840_v12 }
  0x20   : > { %783 = vmatpush3.bf16.msra.mxu0 %v840_v12 }
  0x21   : > { %808 = vmatpush3.bf16.msra.mxu1 %v840_v12  ;;  %784 = vmatprep.subr.bf16.mxu0 %v841_v13 }
  0x22   : > { %801 = vmatprep.subr.bf16.mxu1 %v841_v13 }
  0x24   : > { %785 = vmatpush3.bf16.msra.mxu0 %v841_v13 }
  0x25   : > { %809 = vmatpush3.bf16.msra.mxu1 %v841_v13 }
  0x27   : > { %787 = vmatmul.mubr.bf16.vlgmr.msra.gmra.mrb[0].mxu0 %v392_v18 }
  0x28   : > { %791 = vmatmul.mubr.bf16.vlgmr.msra.gmra.mrb[0].mxu1 %v394_v19 }
  0xfa   : > { %v788_v21 = vpop.f32.mrb[0].mxu0 }
  0xfb   : > { %v792_v23 = vpop.f32.mrb[0].mxu1  ;;  %v509_v24 = vadd.f32 %v788_v21, %v743_v20  ;;  %v500_v26 = vpop.f32.mrb[1].mxu0 }
  0xfc   : > { %v525_v25 = vadd.f32 %v792_v23, %v743_v20  ;;  %v516_v27 = vpop.f32.mrb[1].mxu1  ;;  %v501_v30 = vadd.f32 %v743_v20, %v500_v26  ;;  %v789_v32 = vpop.f32.mrb[2].mxu0 }
  0xfd   : > { %v517_v31 = vadd.f32 %v743_v20, %v516_v27  ;;  %v793_v33 = vpop.f32.mrb[2].mxu1  ;;  %v548_v34 = vmul.f32 %v752_v22, %v509_v24  ;;  %v512_v38 = vadd.f32 %v789_v32, %v743_v20  ;;  %v503_v40 = vpop.f32.mrb[3].mxu0 }
  0xfe   : > { %v552_v35 = vmul.f32 %v752_v22, %v525_v25  ;;  %v528_v39 = vadd.f32 %v793_v33, %v743_v20  ;;  %v519_v41 = vpop.f32.mrb[3].mxu1  ;;  %v546_v42 = vmul.f32 %v752_v22, %v501_v30  ;;  %v504_v46 = vadd.f32 %v743_v20, %v503_v40 }
  0xff   : > { %v550_v43 = vmul.f32 %v752_v22, %v517_v31  ;;  %v520_v47 = vadd.f32 %v743_v20, %v519_v41  ;;  %v556_v48 = vadd.f32 %v548_v34, %v533_v28  ;;  %v549_v50 = vmul.f32 %v752_v22, %v512_v38 }
 0x100   : > { %v560_v49 = vadd.f32 %v552_v35, %v537_v29  ;;  %v553_v51 = vmul.f32 %v752_v22, %v528_v39  ;;  %v554_v54 = vadd.f32 %v546_v42, %v531_v36  ;;  %v547_v56 = vmul.f32 %v752_v22, %v504_v46 }
 0x101   : > { %v558_v55 = vadd.f32 %v550_v43, %v535_v37  ;;  %v551_v57 = vmul.f32 %v752_v22, %v520_v47  ;;  %564 = vst [vmem:[%s380_s6 + $0x10] sm:$0xff] %v556_v48  ;;  %v557_v58 = vadd.f32 %v549_v50, %v534_v44 }
 0x102   : > { %568 = vst [vmem:[%s380_s6 + $0x30] sm:$0xff] %v560_v49  ;;  %v561_v59 = vadd.f32 %v553_v51, %v538_v45  ;;  %562 = vst [vmem:[%s380_s6] sm:$0xff] %v554_v54  ;;  %v555_v60 = vadd.f32 %v547_v56, %v532_v52 }
 0x103   : > { %566 = vst [vmem:[%s380_s6 + $0x20] sm:$0xff] %v558_v55  ;;  %v559_v61 = vadd.f32 %v551_v57, %v536_v53  ;;  %565 = vst [vmem:[%s380_s6 + $0x18] sm:$0xff] %v557_v58 }
 0x104   : > { %569 = vst [vmem:[%s380_s6 + $0x38] sm:$0xff] %v561_v59  ;;  %563 = vst [vmem:[%s380_s6 + $0x8] sm:$0xff] %v555_v60 }
 0x105   : > { %567 = vst [vmem:[%s380_s6 + $0x28] sm:$0xff] %v559_v61 }
 0x106 PF: > { %s15_s20 = sadd.s32 1, %s864_s20   ;;  %s997_s18 = smov %s860_s19 }
 0x107   : > { %p12_p5 = scmp.ge.s32.totalorder %s15_s20, 4   ;;  %s998_s19 = smov %s1000_s21 }
 0x109   :  { %14 = sbr.rel (!%p12_p5) target bundleno = 2 (0x2), region = 82 }

// kernel: dit_forward.17
= control target key start
LH: loop header
LB: loop body
LE: loop exit
PB: predicated region body
PF: predicated region fallthrough
CT: control target
= control target key end

     0   :  { %s1182_s18 = smov 0   ;;  %s1184_s19 = smov 0   ;;  %s1401_s0 = inlined_call_operand.vmem [shape: f32[2,64,128], index: 0, kind: input, shape index: {}]   ;;  %s1402_s1 = inlined_call_operand.vmem [shape: f32[2,1,128], index: 1, kind: input, shape index: {}]   ;;  %s1403_s2 = inlined_call_operand.vmem [shape: f32[2,1,128], index: 2, kind: input, shape index: {}]   ;;  %s1404_s3 = inlined_call_operand.vmem [shape: bf16[128,384], index: 3, kind: input, shape index: {}]   ;;  %s1405_s4 = inlined_call_operand.vmem [shape: f32[1,384], index: 4, kind: input, shape index: {}]   ;;  %s1406_s5 = inlined_call_operand.vmem [shape: f32[2,64,384], index: 5, kind: output, shape index: {}]  }
   0x1   :  { %s1186_s20 = smov 0  }
   0x2 LB: > { %s34_s21 = sadd.s32 1, %s1145_s19  ;;  %p985_p0 = scmp.ge.s32.totalorder %s1149_s20, 1  ;;  %s1149_s20 = sphi %s1186_s20, %s15_s20   ;;  %s1145_s19 = sphi %s1184_s19, %s1408_s19   ;;  %s1141_s18 = sphi %s1182_s18, %s1407_s18  }
   0x3   : > { %p36_p1 = scmp.ge.s32.totalorder %s34_s21, 2  ;;  %p254_p2 = scmp.lt.s32.totalorder %s1149_s20, 3 }
   0x5   : > { %s1410_s21 = smov (%p36_p1, %s34_s21), 0  ;;  %p255_p3 = pnand %p985_p0, %p254_p2 }
   0x6   : > { %p311_p4 = scmp.lt.s32.totalorder (!%p255_p3), %s1141_s18, 1  ;;  %v1079_v8 = vld [vmem:[%s1404_s3 + $0x4] ss:$12 sps:$4 sm:$0xff] (!%p255_p3)   ;;  %v1081_v9 = vld [vmem:[%s1404_s3] ss:$12 sps:$4 sm:$0xff] (!%p255_p3)   ;;  %v1151_v63 = vmov (!%p255_p3), 0  }
   0x7   : > { %258 = sbr.rel (%p255_p3) target bundleno = 577 (0x241), region = 40  ;;  %v1082_v10 = vld [vmem:[%s1404_s3 + $0x1c] ss:$12 sps:$4 sm:$0xff] (!%p255_p3)   ;;  %663 = vmatprep.subr.bf16.mxu0 (!%p255_p3), %v1079_v8  ;;  %v1085_v44 = vld [vmem:[%s1404_s3 + $0x18] ss:$12 sps:$4 sm:$0xff] (!%p255_p3)   ;;  %695 = vmatprep.mubr.bf16.mxu0 (!%p255_p3), %v1151_v63 }
   0x8   : > { %v1084_v11 = vld [vmem:[%s1404_s3 + $0x8] ss:$12 sps:$4 sm:$0xff] (!%p255_p3)   ;;  %664 = vmatpush1.bf16.msra.mxu0 (!%p255_p3), %v1081_v9  ;;  %v1088_v46 = vld [vmem:[%s1404_s3 + $0x20] ss:$12 sps:$4 sm:$0xff] (!%p255_p3)   ;;  %v1089_v47 = vld [vmem:[%s1404_s3 + $0x30] ss:$12 sps:$4 sm:$0xff] (!%p255_p3)  }
   0x9   : > { %1029 = vmatprep.subr.bf16.mxu1 (!%p255_p3), %v1084_v11  ;;  %665 = vmatprep.subr.bf16.mxu0 (!%p255_p3), %v1082_v10  ;;  %v1086_v45 = vld [vmem:[%s1404_s3 + $0x34] ss:$12 sps:$4 sm:$0xff] (!%p255_p3)   ;;  %v1090_v48 = vld [vmem:[%s1404_s3 + $0x4c] ss:$12 sps:$4 sm:$0xff] (!%p255_p3)   ;;  %v1094_v51 = vld [vmem:[%s1404_s3 + $0x64] ss:$12 sps:$4 sm:$0xff] (!%p255_p3)  }
   0xa   : > { %1030 = vmatpush3.bf16.msra.mxu1 (!%p255_p3), %v1084_v11  ;;  %v1092_v49 = vld [vmem:[%s1404_s3 + $0x38] ss:$12 sps:$4 sm:$0xff] (!%p255_p3)   ;;  %v1093_v50 = vld [vmem:[%s1404_s3 + $0x48] ss:$12 sps:$4 sm:$0xff] (!%p255_p3)   ;;  %v1096_v52 = vld [vmem:[%s1404_s3 + $0x50] ss:$12 sps:$4 sm:$0xff] (!%p255_p3)  }
   0xb   : > { %1031 = vmatprep.subr.bf16.mxu1 (!%p255_p3), %v1088_v46  ;;  %v1097_v53 = vld [vmem:[%s1404_s3 + $0x60] ss:$12 sps:$4 sm:$0xff] (!%p255_p3)   ;;  %v1098_v54 = vld [vmem:[%s1404_s3 + $0x7c] ss:$12 sps:$4 sm:$0xff] (!%p255_p3)   ;;  %v1101_v56 = vld [vmem:[%s1404_s3 + $0x78] ss:$12 sps:$4 sm:$0xff] (!%p255_p3)  }
   0xc   : > { %666 = vmatpush1.bf16.msra.mxu0 (!%p255_p3), %v1085_v44  ;;  %v1100_v55 = vld [vmem:[%s1404_s3 + $0x68] ss:$12 sps:$4 sm:$0xff] (!%p255_p3)   ;;  %v1104_v58 = vld [vmem:[%s1404_s3 + $0x80] ss:$12 sps:$4 sm:$0xff] (!%p255_p3)   ;;  %v1105_v59 = vld [vmem:[%s1404_s3 + $0x90] ss:$12 sps:$4 sm:$0xff] (!%p255_p3)  }
   0xd   : > { %667 = vmatprep.subr.bf16.mxu0 (!%p255_p3), %v1086_v45  ;;  %v1102_v57 = vld [vmem:[%s1404_s3 + $0x94] ss:$12 sps:$4 sm:$0xff] (!%p255_p3)   ;;  %v1106_v60 = vld [vmem:[%s1404_s3 + $0xac] ss:$12 sps:$4 sm:$0xff] (!%p255_p3)  }
   0xe   : > { %s1412_s18 = smov (!%p311_p4, %s1141_s18), 1  ;;  %1032 = vmatpush3.bf16.msra.mxu1 %v1088_v46  ;;  %v1108_v61 = vld [vmem:[%s1404_s3 + $0x98] ss:$12 sps:$4 sm:$0xff]   ;;  %v1109_v62 = vld [vmem:[%s1404_s3 + $0xa8] ss:$12 sps:$4 sm:$0xff]  }
   0xf   : > { %s1016_s22 = sshll.u32 %s1412_s18, 6  ;;  %1033 = vmatprep.subr.bf16.mxu1 %v1092_v49  ;;  %s325_s9 = scalar_lea.vmem %s1403_s2, %s1412_s18 }
  0x10   : > { %s318_s25 = scalar_lea.vmem %s1401_s0, %s1016_s22  ;;  %668 = vmatpush1.bf16.msra.mxu0 %v1089_v47  ;;  %s322_s12 = scalar_lea.vmem %s1402_s1, %s1412_s18 }
  0x11   : > { %v354_v0 = vld [vmem:[%s318_s25] sm:$0xff]  ;;  %v356_v1 = vld [vmem:[%s318_s25 + $0x10] sm:$0xff]  ;;  %v355_v2 = vld [vmem:[%s318_s25 + $0x8] sm:$0xff]  ;;  %669 = vmatprep.subr.bf16.mxu0 %v1090_v48  ;;  %s1053_s15 = smul.u32 192, %s1412_s18 }
  0x12   : > { %362 = vadd.xlane.f32.xlu0 %v354_v0  ;;  %366 = vadd.xlane.f32.xlu1 %v356_v1  ;;  %v357_v3 = vld [vmem:[%s318_s25 + $0x18] sm:$0xff]  ;;  %v358_v4 = vld [vmem:[%s318_s25 + $0x20] sm:$0xff]  ;;  %v359_v5 = vld [vmem:[%s318_s25 + $0x28] sm:$0xff] }
  0x13   : > { %v360_v6 = vld [vmem:[%s318_s25 + $0x30] sm:$0xff]  ;;  %v361_v7 = vld [vmem:[%s318_s25 + $0x38] sm:$0xff]  ;;  %1034 = vmatpush3.bf16.msra.mxu1 %v1092_v49  ;;  %v989_v45 = vld [vmem:[%s322_s12] ss:$0 sm:$0xff]  ;;  %s1350_s22 = scalar_lea.vmem %s1406_s5, %s1053_s15 }
  0x14   : > { %670 = vmatpush1.bf16.msra.mxu0 %v1093_v50  ;;  %1035 = vmatprep.subr.bf16.mxu1 %v1096_v52 }
  0x15   : > { %671 = vmatprep.subr.bf16.mxu0 %v1094_v51 }
  0x16   : > { %364 = vadd.xlane.f32.xlu0 %v355_v2  ;;  %368 = vadd.xlane.f32.xlu1 %v357_v3 }
  0x17   : > { %1036 = vmatpush3.bf16.msra.mxu1 %v1096_v52 }
  0x18   : > { %672 = vmatpush1.bf16.msra.mxu0 %v1097_v53  ;;  %1037 = vmatprep.subr.bf16.mxu1 %v1100_v55 }
  0x19   : > { %673 = vmatprep.subr.bf16.mxu0 %v1098_v54 }
  0x1a   : > { %370 = vadd.xlane.f32.xlu0 %v358_v4  ;;  %372 = vadd.xlane.f32.xlu1 %v359_v5 }
  0x1b   : > { %1038 = vmatpush3.bf16.msra.mxu1 %v1100_v55 }
  0x1c   : > { %674 = vmatpush1.bf16.msra.mxu0 %v1101_v56  ;;  %1039 = vmatprep.subr.bf16.mxu1 %v1104_v58 }
  0x1d   : > { %675 = vmatprep.subr.bf16.mxu0 %v1102_v57 }
  0x1e   : > { %374 = vadd.xlane.f32.xlu0 %v360_v6  ;;  %376 = vadd.xlane.f32.xlu1 %v361_v7 }
  0x1f   : > { %1040 = vmatpush3.bf16.msra.mxu1 %v1104_v58 }
  0x20   : > { %676 = vmatpush1.bf16.msra.mxu0 %v1105_v59  ;;  %1041 = vmatprep.subr.bf16.mxu1 %v1108_v61 }
  0x21   : > { %677 = vmatprep.subr.bf16.mxu0 %v1106_v60 }
  0x23   : > { %1042 = vmatpush3.bf16.msra.mxu1 %v1108_v61 }
  0x24   : > { %678 = vmatpush1.bf16.msra.mxu0 %v1109_v62 }
  0x9f   : > { %v363_v12 = vpop.xlane.xlu0 %362  ;;  %v367_v13 = vpop.xlane.xlu1 %366 }
  0xa0   : > { %v379_v14 = vmul.f32 0.0078125, %v363_v12  ;;  %v381_v15 = vmul.f32 0.0078125, %v367_v13 }
  0xa2   : > { %v1218_v16 = vsub.f32 %v354_v0, %v379_v14  ;;  %v1220_v17 = vsub.f32 %v356_v1, %v381_v15  ;;  %v1110_v0 = vld [vmem:[%s1404_s3 + $0xb0] ss:$12 sps:$4 sm:$0xff]   ;;  %v451_v14 = vld [vmem:[%s325_s9] sm:$0x1] }
  0xa3   : > { %v365_v18 = vpop.xlane.xlu0 %364  ;;  %v369_v19 = vpop.xlane.xlu1 %368  ;;  %1043 = vmatprep.subr.bf16.mxu1 %v1110_v0 }
  0xa4   : > { %v380_v20 = vmul.f32 0.0078125, %v365_v18  ;;  %v395_v21 = vmul.f32 %v1218_v16, %v1218_v16  ;;  %v382_v22 = vmul.f32 0.0078125, %v369_v19  ;;  %v397_v25 = vmul.f32 %v1220_v17, %v1220_v17  ;;  %1044 = vmatpush3.bf16.msra.mxu1 %v1110_v0 }
  0xa6   : > { %v1224_v23 = vsub.f32 %v355_v2, %v380_v20  ;;  %403 = vadd.xlane.f32.xlu0 %v395_v21  ;;  %v1226_v24 = vsub.f32 %v357_v3, %v382_v22  ;;  %v452_v21 = vadd.f32 1.0, %v451_v14 }
  0xa7   : > { %v371_v26 = vpop.xlane.xlu0 %370  ;;  %v373_v27 = vpop.xlane.xlu1 %372 }
  0xa8   : > { %v383_v28 = vmul.f32 0.0078125, %v371_v26  ;;  %v396_v29 = vmul.f32 %v1224_v23, %v1224_v23  ;;  %v384_v30 = vmul.f32 0.0078125, %v373_v27  ;;  %v398_v33 = vmul.f32 %v1226_v24, %v1226_v24 }
  0xaa   : > { %v1232_v31 = vsub.f32 %v358_v4, %v383_v28  ;;  %407 = vadd.xlane.f32.xlu0 %v397_v25  ;;  %405 = vadd.xlane.f32.xlu1 %v396_v29  ;;  %v1234_v32 = vsub.f32 %v359_v5, %v384_v30  ;;  %v454_v4 = vlaneseq }
  0xab   : > { %v375_v34 = vpop.xlane.xlu0 %374  ;;  %v377_v35 = vpop.xlane.xlu1 %376 }
  0xac   : > { %v385_v36 = vmul.f32 0.0078125, %v375_v34  ;;  %v399_v37 = vmul.f32 %v1232_v31, %v1232_v31  ;;  %v386_v38 = vmul.f32 0.0078125, %v377_v35  ;;  %v400_v41 = vmul.f32 %v1234_v32, %v1234_v32 }
  0xad   : > { %v1315_v11 = vshrl.u32 %v454_v4, 7 }
  0xae   : > { %v1240_v39 = vsub.f32 %v360_v6, %v385_v36  ;;  %409 = vadd.xlane.f32.xlu1 %v398_v33  ;;  %411 = vadd.xlane.f32.xlu0 %v399_v37  ;;  %v1242_v40 = vsub.f32 %v361_v7, %v386_v38 }
  0xaf   : > { %v456_v22 = vsub.s32 0, %v1315_v11 }
  0xb0   : > { %v401_v42 = vmul.f32 %v1240_v39, %v1240_v39  ;;  %v402_v43 = vmul.f32 %v1242_v40, %v1242_v40 }
  0xb1   : > { %v457_v34 = vrot.slane %v452_v21, %v456_v22 }
  0xb2   : > { %413 = vadd.xlane.f32.xlu1 %v400_v41  ;;  %415 = vadd.xlane.f32.xlu0 %v401_v42 }
  0xb6   : > { %417 = vadd.xlane.f32.xlu1 %v402_v43 }
 0x133   : > { %v404_v1 = vpop.xlane.xlu0 %403 }
 0x134   : > { %v419_v2 = vmul.f32 0.0078125, %v404_v1 }
 0x136   : > { %v427_v3 = vadd.f32 1e-06, %v419_v2 }
 0x137   : > { %v406_v5 = vpop.xlane.xlu1 %405  ;;  %v408_v6 = vpop.xlane.xlu0 %407 }
 0x138   : > { %1111 = vrsqrt.f32 %v427_v3  ;;  %v420_v7 = vmul.f32 0.0078125, %v406_v5  ;;  %v421_v8 = vmul.f32 0.0078125, %v408_v6 }
 0x13a   : > { %v428_v9 = vadd.f32 1e-06, %v420_v7  ;;  %v429_v10 = vadd.f32 1e-06, %v421_v8  ;;  %v530_v8 = vsub.s32 2, %v1315_v11 }
 0x13b   : > { %v410_v12 = vpop.xlane.xlu1 %409  ;;  %v412_v13 = vpop.xlane.xlu0 %411 }
 0x13c   : > { %1113 = vrsqrt.f32 %v428_v9  ;;  %v422_v15 = vmul.f32 0.0078125, %v410_v12  ;;  %v423_v18 = vmul.f32 0.0078125, %v412_v13 }
 0x13d   : > { %1115 = vrsqrt.f32 %v429_v10 }
 0x13e   : > { %v430_v19 = vadd.f32 1e-06, %v422_v15  ;;  %v431_v20 = vadd.f32 1e-06, %v423_v18 }
 0x13f   : > { %v414_v25 = vpop.xlane.xlu1 %413  ;;  %v416_v26 = vpop.xlane.xlu0 %415 }
 0x140   : > { %1117 = vrsqrt.f32 %v430_v19  ;;  %v424_v27 = vmul.f32 0.0078125, %v414_v25  ;;  %v425_v28 = vmul.f32 0.0078125, %v416_v26 }
 0x141   : > { %1119 = vrsqrt.f32 %v431_v20 }
 0x142   : > { %v1112_v29 = vpop.eup %1111  ;;  %v432_v30 = vadd.f32 1e-06, %v424_v27  ;;  %v433_v33 = vadd.f32 1e-06, %v425_v28 }
 0x143   : > { %v418_v35 = vpop.xlane.xlu1 %417  ;;  %v443_v36 = vmul.f32 %v1112_v29, %v1218_v16 }
 0x144   : > { %1121 = vrsqrt.f32 %v432_v30  ;;  %v426_v37 = vmul.f32 0.0078125, %v418_v35 }
 0x145   : > { %1123 = vrsqrt.f32 %v433_v33  ;;  %v459_v44 = vmul.f32 %v457_v34, %v443_v36 }
 0x146   : > { %v1114_v38 = vpop.eup %1113  ;;  %v434_v41 = vadd.f32 1e-06, %v426_v37 }
 0x147   : > { %v1116_v42 = vpop.eup %1115  ;;  %v444_v43 = vmul.f32 %v1114_v38, %v1224_v23  ;;  %v474_v50 = vadd.f32 %v989_v45, %v459_v44 }
 0x148   : > { %1125 = vrsqrt.f32 %v434_v41  ;;  %v445_v46 = vmul.f32 %v1116_v42, %v1220_v17 }
 0x149   : > { %v460_v47 = vmul.f32 %v457_v34, %v444_v43 }
 0x14a   : > { %v1118_v48 = vpop.eup %1117  ;;  %v461_v16 = vmul.f32 %v457_v34, %v445_v46 }
 0x14b   : > { %v1120_v49 = vpop.eup %1119  ;;  %v475_v51 = vadd.f32 %v989_v45, %v460_v47  ;;  %v446_v52 = vmul.f32 %v1118_v48, %v1226_v24 }
 0x14c   : > { %v447_v53 = vmul.f32 %v1120_v49, %v1232_v31  ;;  %v476_v57 = vadd.f32 %v989_v45, %v461_v16 }
 0x14d   : > { %v482_v54 = vpack.c.bf16 %v475_v51, %v474_v50  ;;  %v462_v55 = vmul.f32 %v457_v34, %v446_v52 }
 0x14e   : > { %v1122_v56 = vpop.eup %1121  ;;  %v463_v59 = vmul.f32 %v457_v34, %v447_v53 }
 0x14f   : > { %v1124_v23 = vpop.eup %1123  ;;  %696 = vmatmul.mubr.bf16.vlgmr.msra.gmra.mrb[0].mxu0 %v482_v54  ;;  %1045 = vmatprep.mubr.bf16.mxu1 %v482_v54  ;;  %v477_v58 = vadd.f32 %v989_v45, %v462_v55  ;;  %v448_v17 = vmul.f32 %v1122_v56, %v1234_v32 }
 0x150   : > { %705 = vmatprep.mubr.bf16.mxu0 %v1151_v63  ;;  %v449_v60 = vmul.f32 %v1124_v23, %v1240_v39  ;;  %v478_v31 = vadd.f32 %v989_v45, %v463_v59  ;;  %v518_v39 = vld [vmem:[%s1405_s4] sm:$0x7] }
 0x151   : > { %v483_v61 = vpack.c.bf16 %v477_v58, %v476_v57  ;;  %v464_v62 = vmul.f32 %v457_v34, %v448_v17  ;;  %v1342_v7 = vrot.slane %v518_v39, %v456_v22  ;;  %v531_v13 = vrot.slane %v518_v39, %v530_v8 }
 0x152   : > { %v1126_v24 = vpop.eup %1125  ;;  %v465_v2 = vmul.f32 %v457_v34, %v449_v60 }
 0x153   : > { %1046 = vmatmul.mubr.bf16.vlgmr.msra.gmra.mrb[0].mxu1 %v483_v61  ;;  %v479_v0 = vadd.f32 %v989_v45, %v464_v62  ;;  %v450_v1 = vmul.f32 %v1126_v24, %v1242_v40  ;;  %v526_v40 = vsub.s32 1, %v1315_v11 }
 0x154   : > { %v480_v32 = vadd.f32 %v989_v45, %v465_v2 }
 0x155   : > { %v484_v3 = vpack.c.bf16 %v479_v0, %v478_v31  ;;  %v466_v4 = vmul.f32 %v457_v34, %v450_v1  ;;  %v1345_v9 = vrot.slane %v518_v39, %v526_v40 }
 0x157   : > { %706 = vmatmul.mubr.bf16.gmra.mrb[4].mxu0 %v483_v61  ;;  %1049 = vmatprep.mubr.bf16.mxu1 %v484_v3  ;;  %v481_v5 = vadd.f32 %v989_v45, %v466_v4 }
 0x158   : > { %715 = vmatprep.mubr.bf16.mxu0 %v1151_v63 }
 0x159   : > { %v485_v6 = vpack.c.bf16 %v481_v5, %v480_v32 }
 0x15b   : > { %1050 = vmatmul.mubr.bf16.gmra.mrb[4].mxu1 %v485_v6 }
 0x15f   : > { %716 = vmatmul.mubr.bf16.gmra.mrb[8].mxu0 %v484_v3 }
 0x160   : > { %725 = vmatprep.mubr.bf16.mxu0 %v1151_v63 }
 0x167   : > { %726 = vmatmul.mubr.bf16.gmra.mrb[12].mxu0 %v485_v6 }
 0x222   : > { %v697_v63 = vpop.f32.mrb[0].mxu0 }
 0x223   : > { %v698_v10 = vadd.f32 %v697_v63, %v1342_v7  ;;  %v699_v12 = vpop.f32.mrb[1].mxu0 }
 0x224   : > { %v700_v14 = vadd.f32 %v699_v12, %v1345_v9  ;;  %v701_v11 = vpop.f32.mrb[2].mxu0 }
 0x225   : > { %801 = vst [vmem:[%s1350_s22] sm:$0xff] %v698_v10  ;;  %v702_v15 = vadd.f32 %v701_v11, %v1342_v7  ;;  %v703_v18 = vpop.f32.mrb[3].mxu0 }
 0x226   : > { %802 = vst [vmem:[%s1350_s22 + $0x8] sm:$0xff] %v700_v14  ;;  %v704_v19 = vadd.f32 %v703_v18, %v1345_v9  ;;  %v1047_v20 = vpop.f32.mrb[0].mxu1 }
 0x227   : > { %804 = vst [vmem:[%s1350_s22 + $0x18] sm:$0xff] %v702_v15  ;;  %v779_v21 = vadd.f32 %v1047_v20, %v531_v13  ;;  %v770_v22 = vpop.f32.mrb[1].mxu1 }
 0x228   : > { %805 = vst [vmem:[%s1350_s22 + $0x20] sm:$0xff] %v704_v19  ;;  %v771_v25 = vadd.f32 %v770_v22, %v531_v13  ;;  %v1048_v26 = vpop.f32.mrb[2].mxu1 }
 0x229   : > { %809 = vst [vmem:[%s1350_s22 + $0x40] sm:$0xff] %v779_v21  ;;  %v782_v27 = vadd.f32 %v1048_v26, %v531_v13  ;;  %v773_v28 = vpop.f32.mrb[3].mxu1 }
 0x22a   : > { %803 = vst [vmem:[%s1350_s22 + $0x10] sm:$0xff] %v771_v25  ;;  %v774_v29 = vadd.f32 %v773_v28, %v531_v13  ;;  %v707_v30 = vpop.f32.mrb[4].mxu0 }
 0x22b   : > { %812 = vst [vmem:[%s1350_s22 + $0x58] sm:$0xff] %v782_v27  ;;  %v708_v33 = vadd.f32 %v707_v30, %v1342_v7  ;;  %v709_v34 = vpop.f32.mrb[5].mxu0 }
 0x22c   : > { %806 = vst [vmem:[%s1350_s22 + $0x28] sm:$0xff] %v774_v29  ;;  %v710_v35 = vadd.f32 %v709_v34, %v1345_v9  ;;  %v711_v36 = vpop.f32.mrb[6].mxu0 }
 0x22d   : > { %807 = vst [vmem:[%s1350_s22 + $0x30] sm:$0xff] %v708_v33  ;;  %v712_v37 = vadd.f32 %v711_v36, %v1342_v7  ;;  %v713_v38 = vpop.f32.mrb[7].mxu0 }
 0x22e   : > { %808 = vst [vmem:[%s1350_s22 + $0x38] sm:$0xff] %v710_v35  ;;  %v714_v41 = vadd.f32 %v713_v38, %v1345_v9  ;;  %v1051_v42 = vpop.f32.mrb[4].mxu1 }
 0x22f   : > { %810 = vst [vmem:[%s1350_s22 + $0x48] sm:$0xff] %v712_v37  ;;  %v795_v43 = vadd.f32 %v1051_v42, %v531_v13  ;;  %v786_v44 = vpop.f32.mrb[5].mxu1 }
 0x230   : > { %811 = vst [vmem:[%s1350_s22 + $0x50] sm:$0xff] %v714_v41  ;;  %v787_v45 = vadd.f32 %v786_v44, %v531_v13  ;;  %v1052_v46 = vpop.f32.mrb[6].mxu1 }
 0x231   : > { %821 = vst [vmem:[%s1350_s22 + $0xa0] sm:$0xff] %v795_v43  ;;  %v798_v47 = vadd.f32 %v1052_v46, %v531_v13  ;;  %v789_v48 = vpop.f32.mrb[7].mxu1 }
 0x232   : > { %815 = vst [vmem:[%s1350_s22 + $0x70] sm:$0xff] %v787_v45  ;;  %v790_v16 = vadd.f32 %v789_v48, %v531_v13  ;;  %v717_v49 = vpop.f32.mrb[8].mxu0 }
 0x233   : > { %824 = vst [vmem:[%s1350_s22 + $0xb8] sm:$0xff] %v798_v47  ;;  %v718_v50 = vadd.f32 %v717_v49, %v1342_v7  ;;  %v719_v51 = vpop.f32.mrb[9].mxu0 }
 0x234   : > { %818 = vst [vmem:[%s1350_s22 + $0x88] sm:$0xff] %v790_v16  ;;  %v720_v52 = vadd.f32 %v719_v51, %v1345_v9  ;;  %v721_v53 = vpop.f32.mrb[10].mxu0 }
 0x235   : > { %813 = vst [vmem:[%s1350_s22 + $0x60] sm:$0xff] %v718_v50  ;;  %v722_v54 = vadd.f32 %v721_v53, %v1342_v7  ;;  %v723_v55 = vpop.f32.mrb[11].mxu0 }
 0x236   : > { %814 = vst [vmem:[%s1350_s22 + $0x68] sm:$0xff] %v720_v52  ;;  %v724_v56 = vadd.f32 %v723_v55, %v1345_v9 }
 0x237   : > { %816 = vst [vmem:[%s1350_s22 + $0x78] sm:$0xff] %v722_v54 }
 0x238   : > { %817 = vst [vmem:[%s1350_s22 + $0x80] sm:$0xff] %v724_v56 }
 0x23a   : > { %v727_v57 = vpop.f32.mrb[12].mxu0 }
 0x23b   : > { %v728_v23 = vadd.f32 %v727_v57, %v1342_v7  ;;  %v729_v58 = vpop.f32.mrb[13].mxu0 }
 0x23c   : > { %v730_v17 = vadd.f32 %v729_v58, %v1345_v9  ;;  %v731_v59 = vpop.f32.mrb[14].mxu0 }
 0x23d   : > { %819 = vst [vmem:[%s1350_s22 + $0x90] sm:$0xff] %v728_v23  ;;  %v732_v60 = vadd.f32 %v731_v59, %v1342_v7  ;;  %v733_v61 = vpop.f32.mrb[15].mxu0 }
 0x23e   : > { %820 = vst [vmem:[%s1350_s22 + $0x98] sm:$0xff] %v730_v17  ;;  %v734_v62 = vadd.f32 %v733_v61, %v1345_v9 }
 0x23f   : > { %822 = vst [vmem:[%s1350_s22 + $0xa8] sm:$0xff] %v732_v60 }
 0x240   : > { %823 = vst [vmem:[%s1350_s22 + $0xb0] sm:$0xff] %v734_v62 }
 0x241 PF: > { %s15_s20 = sadd.s32 1, %s1149_s20   ;;  %s1407_s18 = smov %s1145_s19 }
 0x242   : > { %p12_p5 = scmp.ge.s32.totalorder %s15_s20, 4   ;;  %s1408_s19 = smov %s1410_s21 }
 0x244   :  { %14 = sbr.rel (!%p12_p5) target bundleno = 2 (0x2), region = 82 }

// kernel: dit_forward.18
= control target key start
LH: loop header
LB: loop body
LE: loop exit
PB: predicated region body
PF: predicated region fallthrough
CT: control target
= control target key end

     0   :  { %s2285_s12 = smov 0   ;;  %s2287_s13 = smov 0   ;;  %s2852_s0 = inlined_call_operand.vmem [shape: f32[2,64,384], index: 0, kind: input, shape index: {}, may-alias: {0,1,2}]   ;;  %s2853_s1 = inlined_call_operand.vmem [shape: f32[2,64,384], index: 1, kind: input, shape index: {}, may-alias: {0,1,2}]   ;;  %s2854_s2 = inlined_call_operand.vmem [shape: f32[2,64,384], index: 2, kind: input, shape index: {}, may-alias: {0,1,2}]   ;;  %s2855_s3 = inlined_call_operand.vmem [shape: f32[2,64,128], index: 3, kind: output, shape index: {}]  }
   0x1   :  { %s2289_s14 = smov 0  }
   0x2 LB: > { %s1807_s15 = sadd.s32 4294967295, %s2260_s14   ;;  %s2302_s16 = sadd.s32 1, %s2260_s14   ;;  %s2260_s14 = sphi %s2289_s14, %s2859_s14   ;;  %s2256_s13 = sphi %s2287_s13, %s2858_s13   ;;  %s2252_s12 = sphi %s2285_s12, %s2857_s12  }
   0x3   : > { %s17_s17 = ssub.s32 %s2260_s14, %s2302_s16  ;;  %s20_s18 = sadd.s32 1, %s2256_s13 }
   0x4   : > { %p18_p0 = scmp.eq.s32.totalorder %s17_s17, 0  ;;  %p27_p1 = scmp.ne.s32.totalorder %s2256_s13, %s2252_s12 }
   0x5   : > { %p28_p2 = scmp.eq.s32.totalorder %s2260_s14, 0  ;;  %p1810_p4 = scmp.ge.s32.totalorder %s2260_s14, 2 }
   0x6   : > { %s2311_s19 = scalar_select %p18_p0, %s2256_s13, %s20_s18  }
   0x7   : > { %p2313_p3 = por %p28_p2, %p27_p1  ;;  %131 = sbr.rel (%p1810_p4) target bundleno = 41 (0x29), region = 16 }
   0xe   : > { %134 = sbr.rel (!%p2313_p3) target bundleno = 23 (0x17), region = 20  ;;  %s136_s21 = sand.u32 (%p2313_p3), 1, %s2256_s13  }
   0xf   : > { %s2082_s22 = smul.u32 (%p2313_p3), 192, %s2260_s14  ;;  %s1811_s23 = sshll.u32 (%p2313_p3), %s136_s21, 6 }
  0x10   : > { %s138_s27 = scalar_lea.vmem (%p2313_p3), [#allocation2], %s1811_s23 }
  0x11   : > { %s141_s26 = scalar_lea.vmem (%p2313_p3), %s2852_s0, %s2082_s22 }
  0x12   : > { %v183_v0 = vld [vmem:[%s141_s26] sm:$0xff] (%p2313_p3)  ;;  %v185_v1 = vld [vmem:[%s141_s26 + $0x18] sm:$0xff] (%p2313_p3)  ;;  %v187_v2 = vld [vmem:[%s141_s26 + $0x30] sm:$0xff] (%p2313_p3) }
  0x13   : > { %184 = vst [vmem:[%s138_s27] sm:$0xff] (%p2313_p3), %v183_v0  ;;  %186 = vst [vmem:[%s138_s27 + $0x8] sm:$0xff] (%p2313_p3), %v185_v1  ;;  %v189_v3 = vld [vmem:[%s141_s26 + $0x48] sm:$0xff] (%p2313_p3)  ;;  %v191_v4 = vld [vmem:[%s141_s26 + $0x60] sm:$0xff] (%p2313_p3) }
  0x14   : > { %188 = vst [vmem:[%s138_s27 + $0x10] sm:$0xff] (%p2313_p3), %v187_v2  ;;  %v193_v5 = vld [vmem:[%s141_s26 + $0x78] sm:$0xff] (%p2313_p3)  ;;  %190 = vst [vmem:[%s138_s27 + $0x18] sm:$0xff] (%p2313_p3), %v189_v3  ;;  %v195_v6 = vld [vmem:[%s141_s26 + $0x90] sm:$0xff] (%p2313_p3) }
  0x15   : > { %192 = vst [vmem:[%s138_s27 + $0x20] sm:$0xff] %v191_v4  ;;  %194 = vst [vmem:[%s138_s27 + $0x28] sm:$0xff] %v193_v5  ;;  %v197_v7 = vld [vmem:[%s141_s26 + $0xa8] sm:$0xff] }
  0x16   : > { %196 = vst [vmem:[%s138_s27 + $0x30] sm:$0xff] %v195_v6  ;;  %198 = vst [vmem:[%s138_s27 + $0x38] sm:$0xff] %v197_v7 }
  0x17 PF: > { %204 = sbr.rel (!%p2313_p3) target bundleno = 32 (0x20), region = 58  ;;  %s206_s28 = sand.u32 (%p2313_p3), 1, %s2256_s13  }
  0x18   : > { %s1814_s29 = smul.u32 (%p2313_p3), 192, %s2260_s14  ;;  %s1813_s30 = sshll.u32 (%p2313_p3), %s206_s28, 6 }
  0x19   : > { %s208_s7 = scalar_lea.vmem (%p2313_p3), [#allocation3], %s1813_s30 }
  0x1a   : > { %s1735_s6 = scalar_lea.vmem (%p2313_p3), %s2853_s1, %s1814_s29 }
  0x1b   : > { %v1815_v8 = vld [vmem:[%s1735_s6 + $0x8] sm:$0xff] (%p2313_p3)  ;;  %v1816_v9 = vld [vmem:[%s1735_s6 + $0x20] sm:$0xff] (%p2313_p3)  ;;  %v1817_v10 = vld [vmem:[%s1735_s6 + $0x38] sm:$0xff] (%p2313_p3) }
  0x1c   : > { %255 = vst [vmem:[%s208_s7] sm:$0xff] (%p2313_p3), %v1815_v8  ;;  %257 = vst [vmem:[%s208_s7 + $0x8] sm:$0xff] (%p2313_p3), %v1816_v9  ;;  %v1818_v11 = vld [vmem:[%s1735_s6 + $0x50] sm:$0xff] (%p2313_p3)  ;;  %v1819_v12 = vld [vmem:[%s1735_s6 + $0x68] sm:$0xff] (%p2313_p3) }
  0x1d   : > { %259 = vst [vmem:[%s208_s7 + $0x10] sm:$0xff] (%p2313_p3), %v1817_v10  ;;  %v1820_v13 = vld [vmem:[%s1735_s6 + $0x80] sm:$0xff] (%p2313_p3)  ;;  %261 = vst [vmem:[%s208_s7 + $0x18] sm:$0xff] (%p2313_p3), %v1818_v11  ;;  %v1821_v14 = vld [vmem:[%s1735_s6 + $0x98] sm:$0xff] (%p2313_p3) }
  0x1e   : > { %263 = vst [vmem:[%s208_s7 + $0x20] sm:$0xff] %v1819_v12  ;;  %265 = vst [vmem:[%s208_s7 + $0x28] sm:$0xff] %v1820_v13  ;;  %v1822_v15 = vld [vmem:[%s1735_s6 + $0xb0] sm:$0xff] }
  0x1f   : > { %267 = vst [vmem:[%s208_s7 + $0x30] sm:$0xff] %v1821_v14  ;;  %269 = vst [vmem:[%s208_s7 + $0x38] sm:$0xff] %v1822_v15 }
  0x20 PF: > { %275 = sbr.rel (!%p2313_p3) target bundleno = 41 (0x29), region = 96  ;;  %s277_s8 = sand.u32 (%p2313_p3), 1, %s2256_s13  }
  0x21   : > { %s1824_s9 = smul.u32 (%p2313_p3), 192, %s2260_s14  ;;  %s1823_s10 = sshll.u32 (%p2313_p3), %s277_s8, 6 }
  0x22   : > { %s279_s21 = scalar_lea.vmem (%p2313_p3), [#allocation4], %s1823_s10 }
  0x23   : > { %s1741_s18 = scalar_lea.vmem (%p2313_p3), %s2854_s2, %s1824_s9 }
  0x24   : > { %v1825_v16 = vld [vmem:[%s1741_s18 + $0x10] sm:$0xff] (%p2313_p3)  ;;  %v1826_v17 = vld [vmem:[%s1741_s18 + $0x28] sm:$0xff] (%p2313_p3)  ;;  %v1827_v18 = vld [vmem:[%s1741_s18 + $0x40] sm:$0xff] (%p2313_p3) }
  0x25   : > { %326 = vst [vmem:[%s279_s21] sm:$0xff] (%p2313_p3), %v1825_v16  ;;  %328 = vst [vmem:[%s279_s21 + $0x8] sm:$0xff] (%p2313_p3), %v1826_v17  ;;  %v1828_v19 = vld [vmem:[%s1741_s18 + $0x58] sm:$0xff] (%p2313_p3)  ;;  %v1829_v20 = vld [vmem:[%s1741_s18 + $0x70] sm:$0xff] (%p2313_p3) }
  0x26   : > { %330 = vst [vmem:[%s279_s21 + $0x10] sm:$0xff] (%p2313_p3), %v1827_v18  ;;  %v1830_v21 = vld [vmem:[%s1741_s18 + $0x88] sm:$0xff] (%p2313_p3)  ;;  %332 = vst [vmem:[%s279_s21 + $0x18] sm:$0xff] (%p2313_p3), %v1828_v19  ;;  %v1831_v22 = vld [vmem:[%s1741_s18 + $0xa0] sm:$0xff] (%p2313_p3) }
  0x27   : > { %334 = vst [vmem:[%s279_s21 + $0x20] sm:$0xff] %v1829_v20  ;;  %336 = vst [vmem:[%s279_s21 + $0x28] sm:$0xff] %v1830_v21  ;;  %v1832_v23 = vld [vmem:[%s1741_s18 + $0xb8] sm:$0xff] }
  0x28   : > { %338 = vst [vmem:[%s279_s21 + $0x30] sm:$0xff] %v1831_v22  ;;  %340 = vst [vmem:[%s279_s21 + $0x38] sm:$0xff] %v1832_v23 }
  0x29 PF: > { %p1833_p5 = scmp.ge.s32.totalorder %s2260_s14, 1  ;;  %p345_p6 = scmp.lt.s32.totalorder %s2260_s14, 3 }
  0x2b   : > { %p346_p7 = pnand %p1833_p5, %p345_p6 }
  0x2c   : > { %s352_s20 = sand.u32 (!%p346_p7), 1, %s2252_s12   ;;  %vm447_vm0 = vcmask (!%p346_p7), 261120   ;;  %vm537_vm1 = vcmask (!%p346_p7), 523264   ;;  %s2262_s25 = smov (!%p346_p7), 96   ;;  %vm1689_vm2 = vcmask (!%p346_p7), 785408  }
  0x2d   : > { %349 = sbr.rel (%p346_p7) target bundleno = 2845 (0xb1d), region = 134  ;;  %s2342_s22 = sshll.u32 (!%p346_p7), %s352_s20, 6 }
  0x2e   : > { %s361_s23 = scalar_lea.vmem (!%p346_p7), [#allocation3], %s2342_s22  ;;  %s2350_s24 = scalar_lea.vmem (!%p346_p7), [#allocation2], %s2342_s22 }
  0x2f   : > { %v411_v24 = vld [vmem:[%s361_s23] sm:$0xff] (!%p346_p7)  ;;  %v412_v25 = vld [vmem:[%s361_s23 + $0x8] sm:$0xff] (!%p346_p7)  ;;  %v413_v26 = vld [vmem:[%s361_s23 + $0x10] sm:$0xff] (!%p346_p7)  ;;  %s368_s12 = scalar_lea.vmem (!%p346_p7), [#allocation4], %s2342_s22  ;;  %s2263_s26 = smov (!%p346_p7), 64  }
  0x30   : > { %v2345_v27 = vpack.c.bf16 (!%p346_p7), %v412_v25, %v411_v24  ;;  %v414_v28 = vld [vmem:[%s361_s23 + $0x18] sm:$0xff] (!%p346_p7)  ;;  %v403_v30 = vld [vmem:[%s2350_s24] sm:$0xff] (!%p346_p7)  ;;  %v404_v32 = vld [vmem:[%s2350_s24 + $0x8] sm:$0xff] (!%p346_p7)  ;;  %s2264_s27 = smov (!%p346_p7), 32   ;;  %p397_p8 = scmp.lt.s32.totalorder (!%p346_p7), %s1807_s15, 1 }
  0x31   : > { %v2347_v29 = vpack.c.bf16 (!%p346_p7), %v414_v28, %v413_v26  ;;  %v427_v33 = vmul.f32 (!%p346_p7), 0.17677669, %v403_v30  ;;  %v428_v34 = vmul.f32 (!%p346_p7), 0.17677669, %v404_v32  ;;  %v415_v35 = vld [vmem:[%s361_s23 + $0x20] sm:$0xff] (!%p346_p7)  ;;  %v416_v36 = vld [vmem:[%s361_s23 + $0x28] sm:$0xff] (!%p346_p7) }
  0x32   : > { %2066 = vmatprep.subr.msk.bf16.mxu0 (!%p346_p7), %vm447_vm0, %v2345_v27  ;;  %v461_v31 = vsel (!%p346_p7), %vm447_vm0, %v2345_v27, 0  ;;  %v2366_v39 = vpack.c.bf16 (!%p346_p7), %v416_v36, %v415_v35  ;;  %v417_v40 = vld [vmem:[%s361_s23 + $0x30] sm:$0xff] (!%p346_p7)  ;;  %v418_v41 = vld [vmem:[%s361_s23 + $0x38] sm:$0xff] (!%p346_p7)  ;;  %v407_v47 = vld [vmem:[%s2350_s24 + $0x20] sm:$0xff] (!%p346_p7) }
  0x33   : > { %1939 = vmatpush3.bf16.xpose.msra.mxu0 (!%p346_p7), %v461_v31  ;;  %v2360_v37 = vpack.c.bf16 (!%p346_p7), %v428_v34, %v427_v33  ;;  %v464_v38 = vsel (!%p346_p7), %vm447_vm0, %v2347_v29, 0  ;;  %v2372_v43 = vpack.c.bf16 (!%p346_p7), %v418_v41, %v417_v40  ;;  %v405_v44 = vld [vmem:[%s2350_s24 + $0x10] sm:$0xff] (!%p346_p7)  ;;  %v406_v45 = vld [vmem:[%s2350_s24 + $0x18] sm:$0xff] (!%p346_p7)  ;;  %v408_v48 = vld [vmem:[%s2350_s24 + $0x28] sm:$0xff] (!%p346_p7)  ;;  %v431_v51 = vmul.f32 (!%p346_p7), 0.17677669, %v407_v47 }
  0x34   : > { %2067 = vmatprep.subr.msk.bf16.mxu0 %vm447_vm0, %v2347_v29  ;;  %v467_v42 = vsel %vm447_vm0, %v2366_v39, 0  ;;  %v429_v49 = vmul.f32 0.17677669, %v405_v44  ;;  %v430_v50 = vmul.f32 0.17677669, %v406_v45  ;;  %v409_v55 = vld [vmem:[%s2350_s24 + $0x30] sm:$0xff] }
  0x35   : > { %1946 = vmatprep.mubr.msk.bf16.mxu0 %vm447_vm0, %v2360_v37  ;;  %v470_v46 = vsel %vm447_vm0, %v2372_v43, 0  ;;  %v432_v52 = vmul.f32 0.17677669, %v408_v48  ;;  %v410_v56 = vld [vmem:[%s2350_s24 + $0x38] sm:$0xff]  ;;  %v433_v57 = vmul.f32 0.17677669, %v409_v55 }
  0x36   : > { %v2382_v53 = vpack.c.bf16 %v430_v50, %v429_v49  ;;  %v434_v58 = vmul.f32 0.17677669, %v410_v56  ;;  %v420_v47 = vld [vmem:[%s368_s12 + $0x8] sm:$0xff]  ;;  %v421_v50 = vld [vmem:[%s368_s12 + $0x10] sm:$0xff]  ;;  %v423_v55 = vld [vmem:[%s368_s12 + $0x20] sm:$0xff]  ;;  %s2861_s15 = smov (!%p397_p8, %s1807_s15), 1 }
  0x37   : > { %v2384_v54 = vpack.c.bf16 %v432_v52, %v431_v51  ;;  %v422_v51 = vld [vmem:[%s368_s12 + $0x18] sm:$0xff]  ;;  %v424_v56 = vld [vmem:[%s368_s12 + $0x28] sm:$0xff]  ;;  %s1873_s28 = sshll.u32 %s2861_s15, 6 }
  0x38   : > { %v2392_v59 = vpack.c.bf16 %v434_v58, %v433_v57  ;;  %v2439_v52 = vpack.c.bf16 %v422_v51, %v421_v50  ;;  %v2443_v57 = vpack.c.bf16 %v424_v56, %v423_v55  ;;  %v425_v58 = vld [vmem:[%s368_s12 + $0x30] sm:$0xff]  ;;  %s2802_s4 = scalar_lea.vmem %s2855_s3, %s1873_s28 }
  0x3b   : > { %1941 = vmatpush3.bf16.xpose.msra.mxu0 %v464_v38 }
  0x3c   : > { %2068 = vmatprep.subr.msk.bf16.mxu0 %vm447_vm0, %v2366_v39 }
  0x43   : > { %1943 = vmatpush3.bf16.xpose.msra.mxu0 %v467_v42 }
  0x44   : > { %2069 = vmatprep.subr.msk.bf16.mxu0 %vm447_vm0, %v2372_v43 }
  0x4b   : > { %1945 = vmatpush3.bf16.xpose.msra.mxu0 %v470_v46  ;;  %v419_v46 = vld [vmem:[%s368_s12] sm:$0xff] }
  0x4c   : > { %v2433_v48 = vpack.c.bf16 %v420_v47, %v419_v46 }
  0x4e   : > { %1954 = vmatprep.subr.bf16.mxu1 %v2433_v48 }
  0x4f   : > { %1955 = vmatpush3.bf16.msra.mxu1 %v2433_v48 }
  0x50   : > { %1956 = vmatprep.subr.bf16.mxu1 %v2439_v52 }
  0x52   : > { %1947 = vmatmul.mubr.msk.bf16.vlgmr.msra.gmra.mrb[0].mxu0 %vm447_vm0, %v2382_v53 }
  0x53   : > { %1950 = vmatprep.mubr.msk.bf16.mxu0 %vm447_vm0, %v2384_v54  ;;  %1957 = vmatpush3.bf16.msra.mxu1 %v2439_v52 }
  0x54   : > { %1958 = vmatprep.subr.bf16.mxu1 %v2443_v57 }
  0x57   : > { %1959 = vmatpush3.bf16.msra.mxu1 %v2443_v57 }
  0x5a   : > { %1951 = vmatmul.mubr.msk.bf16.gmra.mrb[4].mxu0 %vm447_vm0, %v2392_v59 }
 0x125   : > { %v1948_v60 = vpop.f32.mrb[0].mxu0 }
 0x126   : > { %v506_v61 = vpop.f32.mrb[1].mxu0  ;;  %v544_v62 = vsel %vm537_vm1, %v1948_v60, -inf }
 0x127   : > { %545 = vmax.xlane.f32.xlu1 %v544_v62  ;;  %v1949_v63 = vpop.f32.mrb[2].mxu0  ;;  %v538_v0 = vsel %vm537_vm1, %v506_v61, -inf }
 0x128   : > { %539 = vmax.xlane.f32.xlu0 %v538_v0  ;;  %v509_v1 = vpop.f32.mrb[3].mxu0  ;;  %v547_v2 = vsel %vm537_vm1, %v1949_v63, -inf }
 0x129   : > { %v541_v3 = vsel %vm537_vm1, %v509_v1, -inf }
 0x12b   : > { %548 = vmax.xlane.f32.xlu1 %v547_v2 }
 0x12c   : > { %542 = vmax.xlane.f32.xlu0 %v541_v3 }
 0x12d   : > { %v1952_v4 = vpop.f32.mrb[4].mxu0 }
 0x12e   : > { %v522_v5 = vpop.f32.mrb[5].mxu0  ;;  %v556_v10 = vsel %vm537_vm1, %v1952_v4, -inf }
 0x12f   : > { %v2400_v6 = vpop.f32.mrb[6].mxu0  ;;  %v550_v7 = vsel %vm537_vm1, %v522_v5, -inf }
 0x130   : > { %551 = vmax.xlane.f32.xlu0 %v550_v7  ;;  %v2403_v8 = vpop.f32.mrb[7].mxu0  ;;  %v559_v11 = vsel %vm537_vm1, %v2400_v6, -inf }
 0x131   : > { %v553_v9 = vsel %vm537_vm1, %v2403_v8, -inf }
 0x132   : > { %554 = vmax.xlane.f32.xlu1 %v553_v9 }
 0x134   : > { %557 = vmax.xlane.f32.xlu0 %v556_v10 }
 0x136   : > { %560 = vmax.xlane.f32.xlu1 %v559_v11 }
 0x1b4   : > { %v546_v12 = vpop.xlane.xlu1 %545 }
 0x1b5   : > { %v564_v13 = vsub.f32 %v1948_v60, %v546_v12  ;;  %v540_v14 = vpop.xlane.xlu0 %539  ;;  %v426_v60 = vld [vmem:[%s368_s12 + $0x38] sm:$0xff] }
 0x1b6   : > { %v562_v15 = vsub.f32 %v506_v61, %v540_v14  ;;  %v2449_v61 = vpack.c.bf16 %v426_v60, %v425_v58 }
 0x1b7   : > { %v574_v16 = vmul.f32 1.442695, %v564_v13 }
 0x1b8   : > { %v570_v17 = vmul.f32 1.442695, %v562_v15  ;;  %v549_v18 = vpop.xlane.xlu1 %548  ;;  %1960 = vmatprep.subr.bf16.mxu1 %v2449_v61 }
 0x1b9   : > { %2110 = vpow2.f32 %v574_v16  ;;  %v565_v19 = vsub.f32 %v1949_v63, %v549_v18  ;;  %v543_v20 = vpop.xlane.xlu0 %542  ;;  %1961 = vmatpush3.bf16.msra.mxu1 %v2449_v61 }
 0x1ba   : > { %v563_v21 = vsub.f32 %v509_v1, %v543_v20  ;;  %2112 = vpow2.f32 %v570_v17 }
 0x1bb   : > { %v576_v22 = vmul.f32 1.442695, %v565_v19 }
 0x1bc   : > { %v572_v23 = vmul.f32 1.442695, %v563_v21 }
 0x1bd   : > { %2114 = vpow2.f32 %v576_v22  ;;  %v552_v24 = vpop.xlane.xlu0 %551 }
 0x1be   : > { %2116 = vpow2.f32 %v572_v23  ;;  %v566_v25 = vsub.f32 %v522_v5, %v552_v24 }
 0x1bf   : > { %v555_v62 = vpop.xlane.xlu1 %554 }
 0x1c0   : > { %v578_v31 = vmul.f32 1.442695, %v566_v25  ;;  %v567_v1 = vsub.f32 %v2403_v8, %v555_v62 }
 0x1c1   : > { %v558_v26 = vpop.xlane.xlu0 %557 }
 0x1c2   : > { %v568_v28 = vsub.f32 %v1952_v4, %v558_v26  ;;  %v580_v3 = vmul.f32 1.442695, %v567_v1 }
 0x1c3   : > { %v2410_v30 = vpop.eup %2110  ;;  %v561_v63 = vpop.xlane.xlu1 %560 }
 0x1c4   : > { %v582_v32 = vmul.f32 1.442695, %v568_v28  ;;  %v592_v33 = vsel %vm537_vm1, %v2410_v30, 0.0  ;;  %v2414_v34 = vpop.eup %2112  ;;  %v569_v0 = vsub.f32 %v2400_v6, %v561_v63 }
 0x1c5   : > { %593 = vadd.xlane.f32.xlu0 %v592_v33  ;;  %v586_v36 = vsel %vm537_vm1, %v2414_v34, 0.0 }
 0x1c6   : > { %2118 = vpow2.f32 %v582_v32  ;;  %v584_v2 = vmul.f32 1.442695, %v569_v0 }
 0x1c7   : > { %v2416_v35 = vpop.eup %2114  ;;  %2120 = vpow2.f32 %v578_v31 }
 0x1c8   : > { %v595_v38 = vsel %vm537_vm1, %v2416_v35, 0.0  ;;  %v2422_v40 = vpop.eup %2116  ;;  %2122 = vpow2.f32 %v584_v2 }
 0x1c9   : > { %587 = vadd.xlane.f32.xlu0 %v586_v36  ;;  %596 = vadd.xlane.f32.xlu1 %v595_v38  ;;  %v589_v41 = vsel %vm537_vm1, %v2422_v40, 0.0  ;;  %2124 = vpow2.f32 %v580_v3 }
 0x1cd   : > { %590 = vadd.xlane.f32.xlu1 %v589_v41 }
 0x1d0   : > { %v2426_v42 = vpop.eup %2118 }
 0x1d1   : > { %v604_v44 = vsel %vm537_vm1, %v2426_v42, 0.0  ;;  %v2430_v45 = vpop.eup %2120 }
 0x1d2   : > { %605 = vadd.xlane.f32.xlu0 %v604_v44  ;;  %v598_v49 = vsel %vm537_vm1, %v2430_v45, 0.0  ;;  %v2123_v4 = vpop.eup %2122 }
 0x1d3   : > { %v607_v5 = vsel %vm537_vm1, %v2123_v4, 0.0  ;;  %v2125_v7 = vpop.eup %2124 }
 0x1d4   : > { %v601_v9 = vsel %vm537_vm1, %v2125_v7, 0.0 }
 0x1d6   : > { %599 = vadd.xlane.f32.xlu0 %v598_v49 }
 0x1de   : > { %725 = vrot.lane.b32.xlu1 %v2347_v29, %s2262_s25 }
 0x1e2   : > { %727 = vrot.lane.b32.xlu1 %v2366_v39, %s2262_s25 }
 0x1ec   : > { %723 = vrot.lane.b32.xlu0 %v2345_v27, %s2262_s25 }
 0x1f0   : > { %711 = vrot.lane.b32.xlu0 %v2360_v37, %s2262_s25 }
 0x1f4   : > { %715 = vrot.lane.b32.xlu0 %v2384_v54, %s2262_s25 }
 0x206   : > { %608 = vadd.xlane.f32.xlu1 %v607_v5 }
 0x20a   : > { %602 = vadd.xlane.f32.xlu1 %v601_v9 }
 0x21b   : > { %729 = vrot.lane.b32.xlu1 %v2372_v43, %s2262_s25 }
 0x21f   : > { %713 = vrot.lane.b32.xlu1 %v2382_v53, %s2262_s25 }
 0x223   : > { %717 = vrot.lane.b32.xlu1 %v2392_v59, %s2262_s25 }
 0x252   : > { %v594_v6 = vpop.xlane.xlu0 %593 }
 0x256   : > { %v588_v8 = vpop.xlane.xlu0 %587  ;;  %v597_v10 = vpop.xlane.xlu1 %596 }
 0x257   : > { %2126 = vrcp.f32 %v597_v10 }
 0x258   : > { %2128 = vrcp.f32 %v588_v8 }
 0x259   : > { %2130 = vrcp.f32 %v594_v6 }
 0x25a   : > { %v591_v11 = vpop.xlane.xlu1 %590 }
 0x25b   : > { %2132 = vrcp.f32 %v591_v11 }
 0x25e   : > { %v726_v26 = vpop.permute.xlu1 %725 }
 0x25f   : > { %v606_v12 = vpop.xlane.xlu0 %605  ;;  %v747_v28 = vsel %vm447_vm0, %v726_v26, 0 }
 0x261   : > { %v2127_v13 = vpop.eup %2126 }
 0x262   : > { %v2129_v14 = vpop.eup %2128  ;;  %v621_v18 = vmul.f32 %v2127_v13, %v2416_v35  ;;  %v728_v31 = vpop.permute.xlu1 %727 }
 0x263   : > { %v600_v15 = vpop.xlane.xlu0 %599  ;;  %v2131_v16 = vpop.eup %2130  ;;  %v618_v19 = vmul.f32 %v2129_v14, %v2414_v34 }
 0x264   : > { %v620_v22 = vmul.f32 %v2131_v16, %v2410_v30  ;;  %v750_v30 = vsel %vm447_vm0, %v728_v31, 0 }
 0x265   : > { %v2133_v17 = vpop.eup %2132 }
 0x266   : > { %v619_v20 = vmul.f32 %v2133_v17, %v2422_v40  ;;  %v627_v24 = vpack.c.bf16 %v621_v18, %v620_v22 }
 0x267   : > { %v724_v21 = vpop.permute.xlu0 %723 }
 0x268   : > { %v626_v23 = vpack.c.bf16 %v619_v20, %v618_v19  ;;  %2070 = vmatprep.subr.msk.bf16.mxu1 %vm447_vm0, %v724_v21  ;;  %v744_v25 = vsel %vm447_vm0, %v724_v21, 0 }
 0x26a   : > { %1962 = vmatprep.mubr.msk.bf16.mxu1 %vm537_vm1, %v626_v23 }
 0x26b   : > { %1963 = vmatmul.mubr.msk.bf16.vlgmr.msra.gmra.mrb[0].mxu1 %vm537_vm1, %v627_v24  ;;  %v712_v55 = vpop.permute.xlu0 %711 }
 0x26c   : > { %1971 = vmatpush3.bf16.xpose.msra.mxu1 %v744_v25 }
 0x26d   : > { %2071 = vmatprep.subr.msk.bf16.mxu1 %vm447_vm0, %v726_v26 }
 0x26f   : > { %v716_v58 = vpop.permute.xlu0 %715 }
 0x274   : > { %1973 = vmatpush3.bf16.xpose.msra.mxu1 %v747_v28 }
 0x275   : > { %2072 = vmatprep.subr.msk.bf16.mxu1 %vm447_vm0, %v728_v31 }
 0x27c   : > { %1975 = vmatpush3.bf16.xpose.msra.mxu1 %v750_v30 }
 0x293   : > { %v609_v32 = vpop.xlane.xlu1 %608 }
 0x294   : > { %2134 = vrcp.f32 %v609_v32 }
 0x295   : > { %2136 = vrcp.f32 %v600_v15 }
 0x296   : > { %2138 = vrcp.f32 %v606_v12 }
 0x297   : > { %v603_v33 = vpop.xlane.xlu1 %602 }
 0x298   : > { %2140 = vrcp.f32 %v603_v33 }
 0x29b   : > { %v730_v34 = vpop.permute.xlu1 %729 }
 0x29c   : > { %2073 = vmatprep.subr.msk.bf16.mxu1 %vm447_vm0, %v730_v34  ;;  %v753_v35 = vsel %vm447_vm0, %v730_v34, 0 }
 0x29d   : > { %1977 = vmatpush3.bf16.xpose.msra.mxu1 %v753_v35 }
 0x29e   : > { %v2135_v36 = vpop.eup %2134 }
 0x29f   : > { %v2137_v38 = vpop.eup %2136  ;;  %v625_v44 = vmul.f32 %v2135_v36, %v2123_v4  ;;  %v714_v56 = vpop.permute.xlu1 %713 }
 0x2a0   : > { %v2139_v40 = vpop.eup %2138  ;;  %v622_v46 = vmul.f32 %v2137_v38, %v2430_v45 }
 0x2a1   : > { %v624_v49 = vmul.f32 %v2139_v40, %v2426_v42 }
 0x2a2   : > { %v2141_v41 = vpop.eup %2140 }
 0x2a3   : > { %v623_v47 = vmul.f32 %v2141_v41, %v2125_v7  ;;  %v629_v51 = vpack.c.bf16 %v625_v44, %v624_v49  ;;  %v718_v60 = vpop.permute.xlu1 %717 }
 0x2a5   : > { %v628_v50 = vpack.c.bf16 %v623_v47, %v622_v46 }
 0x2a7   : > { %1966 = vmatprep.mubr.msk.bf16.mxu1 %vm537_vm1, %v628_v50 }
 0x2a8   : > { %1967 = vmatmul.mubr.msk.bf16.gmra.mrb[4].mxu1 %vm537_vm1, %v629_v51 }
 0x2a9   : > { %1978 = vmatprep.mubr.msk.bf16.mxu1 %vm447_vm0, %v712_v55 }
 0x2b0   : > { %1979 = vmatmul.mubr.msk.bf16.vlgmr.msra.gmra.mrb[8].mxu1 %vm447_vm0, %v714_v56 }
 0x2b1   : > { %1982 = vmatprep.mubr.msk.bf16.mxu1 %vm447_vm0, %v716_v58 }
 0x2b8   : > { %1983 = vmatmul.mubr.msk.bf16.gmra.mrb[12].mxu1 %vm447_vm0, %v718_v60 }
 0x33e   : > { %v2493_v45 = vpop.f32.mrb[0].mxu1 }
 0x33f   : > { %v2495_v42 = vpop.f32.mrb[1].mxu1 }
 0x340   : > { %v2497_v62 = vpop.f32.mrb[2].mxu1 }
 0x341   : > { %v2499_v63 = vpop.f32.mrb[3].mxu1 }
 0x37b   : > { %v2501_v0 = vpop.f32.mrb[4].mxu1 }
 0x37c   : > { %v2503_v1 = vpop.f32.mrb[5].mxu1 }
 0x37d   : > { %v2505_v2 = vpop.f32.mrb[6].mxu1 }
 0x37e   : > { %v2507_v3 = vpop.f32.mrb[7].mxu1 }
 0x383   : > { %v1980_v4 = vpop.f32.mrb[8].mxu1 }
 0x384   : > { %v789_v5 = vpop.f32.mrb[9].mxu1  ;;  %v826_v7 = vsel %vm537_vm1, %v1980_v4, -inf }
 0x385   : > { %827 = vmax.xlane.f32.xlu0 %v826_v7  ;;  %v1981_v9 = vpop.f32.mrb[10].mxu1  ;;  %v820_v10 = vsel %vm537_vm1, %v789_v5, -inf }
 0x386   : > { %v792_v6 = vpop.f32.mrb[11].mxu1  ;;  %v829_v12 = vsel %vm537_vm1, %v1981_v9, -inf }
 0x387   : > { %v823_v8 = vsel %vm537_vm1, %v792_v6, -inf }
 0x388   : > { %824 = vmax.xlane.f32.xlu1 %v823_v8 }
 0x389   : > { %821 = vmax.xlane.f32.xlu0 %v820_v10 }
 0x38b   : > { %v1984_v11 = vpop.f32.mrb[12].mxu1 }
 0x38c   : > { %v805_v13 = vpop.f32.mrb[13].mxu1  ;;  %v838_v15 = vsel %vm537_vm1, %v1984_v11, -inf }
 0x38d   : > { %830 = vmax.xlane.f32.xlu0 %v829_v12  ;;  %v2513_v14 = vpop.f32.mrb[14].mxu1  ;;  %v832_v17 = vsel %vm537_vm1, %v805_v13, -inf }
 0x38e   : > { %v2516_v16 = vpop.f32.mrb[15].mxu1  ;;  %v841_v18 = vsel %vm537_vm1, %v2513_v14, -inf }
 0x38f   : > { %v835_v19 = vsel %vm537_vm1, %v2516_v16, -inf }
 0x391   : > { %839 = vmax.xlane.f32.xlu0 %v838_v15 }
 0x395   : > { %833 = vmax.xlane.f32.xlu0 %v832_v17 }
 0x399   : > { %918 = vrot.lane.b32.xlu1 %v2439_v52, %s2262_s25 }
 0x39d   : > { %920 = vrot.lane.b32.xlu1 %v2443_v57, %s2262_s25 }
 0x3ab   : > { %916 = vrot.lane.b32.xlu0 %v2433_v48, %s2262_s25 }
 0x3c1   : > { %842 = vmax.xlane.f32.xlu1 %v841_v18 }
 0x3c5   : > { %836 = vmax.xlane.f32.xlu1 %v835_v19 }
 0x3d6   : > { %922 = vrot.lane.b32.xlu1 %v2449_v61, %s2262_s25 }
 0x412   : > { %v828_v20 = vpop.xlane.xlu0 %827 }
 0x413   : > { %v846_v21 = vsub.f32 %v1980_v4, %v828_v20 }
 0x415   : > { %v856_v22 = vmul.f32 1.442695, %v846_v21  ;;  %v825_v23 = vpop.xlane.xlu1 %824 }
 0x416   : > { %v822_v24 = vpop.xlane.xlu0 %821  ;;  %v845_v26 = vsub.f32 %v792_v6, %v825_v23 }
 0x417   : > { %2142 = vpow2.f32 %v856_v22  ;;  %v844_v25 = vsub.f32 %v789_v5, %v822_v24 }
 0x418   : > { %v854_v32 = vmul.f32 1.442695, %v845_v26 }
 0x419   : > { %v852_v28 = vmul.f32 1.442695, %v844_v25  ;;  %v919_v49 = vpop.permute.xlu1 %918 }
 0x41a   : > { %v831_v31 = vpop.xlane.xlu0 %830 }
 0x41b   : > { %2144 = vpow2.f32 %v852_v28  ;;  %v847_v30 = vsub.f32 %v1981_v9, %v831_v31 }
 0x41d   : > { %v858_v33 = vmul.f32 1.442695, %v847_v30  ;;  %v921_v60 = vpop.permute.xlu1 %920 }
 0x41e   : > { %v840_v34 = vpop.xlane.xlu0 %839 }
 0x41f   : > { %2146 = vpow2.f32 %v858_v33  ;;  %v850_v35 = vsub.f32 %v1984_v11, %v840_v34 }
 0x420   : > { %2148 = vpow2.f32 %v854_v32 }
 0x421   : > { %v2531_v36 = vpop.eup %2142  ;;  %v864_v38 = vmul.f32 1.442695, %v850_v35 }
 0x422   : > { %v834_v40 = vpop.xlane.xlu0 %833  ;;  %v874_v41 = vsel %vm537_vm1, %v2531_v36, 0.0 }
 0x423   : > { %2150 = vpow2.f32 %v864_v38  ;;  %v848_v44 = vsub.f32 %v805_v13, %v834_v40  ;;  %875 = vadd.xlane.f32.xlu0 %v874_v41 }
 0x425   : > { %v2535_v46 = vpop.eup %2144  ;;  %v860_v47 = vmul.f32 1.442695, %v848_v44 }
 0x426   : > { %v917_v50 = vpop.permute.xlu0 %916  ;;  %v868_v51 = vsel %vm537_vm1, %v2535_v46, 0.0 }
 0x427   : > { %2152 = vpow2.f32 %v860_v47  ;;  %869 = vadd.xlane.f32.xlu0 %v868_v51  ;;  %1986 = vmatprep.subr.bf16.mxu0 %v917_v50 }
 0x428   : > { %1987 = vmatpush3.bf16.msra.mxu0 %v917_v50 }
 0x429   : > { %v2147_v55 = vpop.eup %2146  ;;  %1988 = vmatprep.subr.bf16.mxu0 %v919_v49 }
 0x42a   : > { %v877_v56 = vsel %vm537_vm1, %v2147_v55, 0.0  ;;  %v2149_v58 = vpop.eup %2148 }
 0x42b   : > { %878 = vadd.xlane.f32.xlu1 %v877_v56  ;;  %v871_v7 = vsel %vm537_vm1, %v2149_v58, 0.0 }
 0x42c   : > { %1989 = vmatpush3.bf16.msra.mxu0 %v919_v49 }
 0x42d   : > { %v2540_v4 = vpop.eup %2150  ;;  %1990 = vmatprep.subr.bf16.mxu0 %v921_v60 }
 0x42e   : > { %v886_v5 = vsel %vm537_vm1, %v2540_v4, 0.0 }
 0x42f   : > { %887 = vadd.xlane.f32.xlu0 %v886_v5  ;;  %872 = vadd.xlane.f32.xlu1 %v871_v7 }
 0x430   : > { %1991 = vmatpush3.bf16.msra.mxu0 %v921_v60 }
 0x431   : > { %v2545_v9 = vpop.eup %2152 }
 0x432   : > { %v880_v6 = vsel %vm537_vm1, %v2545_v9, 0.0 }
 0x433   : > { %881 = vadd.xlane.f32.xlu0 %v880_v6 }
 0x440   : > { %1015 = vrot.lane.b32.xlu1 %v2347_v29, %s2263_s26 }
 0x444   : > { %1017 = vrot.lane.b32.xlu1 %v2366_v39, %s2263_s26 }
 0x44e   : > { %v843_v8 = vpop.xlane.xlu1 %842 }
 0x44f   : > { %v851_v10 = vsub.f32 %v2513_v14, %v843_v8 }
 0x451   : > { %v866_v11 = vmul.f32 1.442695, %v851_v10 }
 0x452   : > { %v837_v12 = vpop.xlane.xlu1 %836 }
 0x453   : > { %2154 = vpow2.f32 %v866_v11  ;;  %v849_v13 = vsub.f32 %v2516_v16, %v837_v12 }
 0x455   : > { %v862_v15 = vmul.f32 1.442695, %v849_v13 }
 0x456   : > { %v923_v17 = vpop.permute.xlu1 %922 }
 0x457   : > { %1992 = vmatprep.subr.bf16.mxu0 %v923_v17  ;;  %2156 = vpow2.f32 %v862_v15 }
 0x458   : > { %1993 = vmatpush3.bf16.msra.mxu0 %v923_v17 }
 0x45d   : > { %v2155_v18 = vpop.eup %2154 }
 0x45e   : > { %v889_v19 = vsel %vm537_vm1, %v2155_v18, 0.0 }
 0x45f   : > { %890 = vadd.xlane.f32.xlu0 %v889_v19 }
 0x461   : > { %v2157_v20 = vpop.eup %2156 }
 0x462   : > { %v883_v21 = vsel %vm537_vm1, %v2157_v20, 0.0 }
 0x468   : > { %884 = vadd.xlane.f32.xlu1 %v883_v21 }
 0x475   : > { %1013 = vrot.lane.b32.xlu0 %v2345_v27, %s2263_s26 }
 0x479   : > { %1019 = vrot.lane.b32.xlu1 %v2372_v43, %s2263_s26  ;;  %1005 = vrot.lane.b32.xlu0 %v2360_v37, %s2263_s26 }
 0x47d   : > { %1007 = vrot.lane.b32.xlu1 %v2382_v53, %s2263_s26  ;;  %1009 = vrot.lane.b32.xlu0 %v2384_v54, %s2263_s26 }
 0x481   : > { %1011 = vrot.lane.b32.xlu1 %v2392_v59, %s2263_s26 }
 0x4b0   : > { %v876_v14 = vpop.xlane.xlu0 %875 }
 0x4b4   : > { %v870_v22 = vpop.xlane.xlu0 %869 }
 0x4b8   : > { %v879_v16 = vpop.xlane.xlu1 %878 }
 0x4b9   : > { %2158 = vrcp.f32 %v879_v16 }
 0x4ba   : > { %2160 = vrcp.f32 %v870_v22 }
 0x4bb   : > { %2162 = vrcp.f32 %v876_v14 }
 0x4bc   : > { %v873_v23 = vpop.xlane.xlu1 %872  ;;  %v888_v38 = vpop.xlane.xlu0 %887 }
 0x4bd   : > { %2164 = vrcp.f32 %v873_v23 }
 0x4c0   : > { %v882_v40 = vpop.xlane.xlu0 %881  ;;  %v1016_v41 = vpop.permute.xlu1 %1015 }
 0x4c3   : > { %v2159_v24 = vpop.eup %2158 }
 0x4c4   : > { %v2161_v25 = vpop.eup %2160  ;;  %v903_v31 = vmul.f32 %v2159_v24, %v2147_v55  ;;  %v1018_v49 = vpop.permute.xlu1 %1017 }
 0x4c5   : > { %v2163_v26 = vpop.eup %2162  ;;  %v900_v30 = vmul.f32 %v2161_v25, %v2535_v46  ;;  %v1037_v46 = vsel %vm447_vm0, %v1016_v41, 0  ;;  %v1040_v7 = vsel %vm447_vm0, %v1018_v49, 0 }
 0x4c6   : > { %v902_v33 = vmul.f32 %v2163_v26, %v2531_v36 }
 0x4c7   : > { %v2165_v28 = vpop.eup %2164 }
 0x4c8   : > { %v901_v32 = vmul.f32 %v2165_v28, %v2149_v58  ;;  %v909_v35 = vpack.c.bf16 %v903_v31, %v902_v33 }
 0x4ca   : > { %v908_v34 = vpack.c.bf16 %v901_v32, %v900_v30 }
 0x4cc   : > { %1994 = vmatprep.mubr.msk.bf16.mxu0 %vm537_vm1, %v908_v34 }
 0x4cd   : > { %1995 = vmatmul.mubr.msk.bf16.vlgmr.msra.gmra.mrb[8].mxu0 %vm537_vm1, %v909_v35 }
 0x4ec   : > { %v891_v44 = vpop.xlane.xlu0 %890 }
 0x4ed   : > { %2166 = vrcp.f32 %v891_v44 }
 0x4ee   : > { %2168 = vrcp.f32 %v882_v40 }
 0x4ef   : > { %2170 = vrcp.f32 %v888_v38 }
 0x4f0   : > { %v1014_v47 = vpop.permute.xlu0 %1013 }
 0x4f1   : > { %v1034_v50 = vsel %vm447_vm0, %v1014_v47, 0  ;;  %2074 = vmatprep.subr.msk.bf16.mxu0 %vm447_vm0, %v1014_v47 }
 0x4f2   : > { %2003 = vmatpush3.bf16.xpose.msra.mxu0 %v1034_v50 }
 0x4f3   : > { %2075 = vmatprep.subr.msk.bf16.mxu0 %vm447_vm0, %v1016_v41 }
 0x4f4   : > { %v1006_v13 = vpop.permute.xlu0 %1005 }
 0x4f5   : > { %v885_v36 = vpop.xlane.xlu1 %884 }
 0x4f6   : > { %2172 = vrcp.f32 %v885_v36 }
 0x4f7   : > { %v2167_v51 = vpop.eup %2166 }
 0x4f8   : > { %v2169_v55 = vpop.eup %2168  ;;  %v907_v60 = vmul.f32 %v2167_v51, %v2155_v18 }
 0x4f9   : > { %v2171_v56 = vpop.eup %2170  ;;  %v1020_v5 = vpop.permute.xlu1 %1019  ;;  %v904_v6 = vmul.f32 %v2169_v55, %v2545_v9 }
 0x4fa   : > { %2005 = vmatpush3.bf16.xpose.msra.mxu0 %v1037_v46  ;;  %v906_v10 = vmul.f32 %v2171_v56, %v2540_v4  ;;  %v1043_v15 = vsel %vm447_vm0, %v1020_v5, 0  ;;  %v1010_v9 = vpop.permute.xlu0 %1009 }
 0x4fb   : > { %2076 = vmatprep.subr.msk.bf16.mxu0 %vm447_vm0, %v1018_v49 }
 0x4fc   : > { %v911_v12 = vpack.c.bf16 %v907_v60, %v906_v10 }
 0x4fd   : > { %v1008_v17 = vpop.permute.xlu1 %1007 }
 0x500   : > { %v2173_v58 = vpop.eup %2172 }
 0x501   : > { %v905_v8 = vmul.f32 %v2173_v58, %v2157_v20  ;;  %v1012_v4 = vpop.permute.xlu1 %1011 }
 0x502   : > { %2007 = vmatpush3.bf16.xpose.msra.mxu0 %v1040_v7 }
 0x503   : > { %v910_v11 = vpack.c.bf16 %v905_v8, %v904_v6  ;;  %2077 = vmatprep.subr.msk.bf16.mxu0 %vm447_vm0, %v1020_v5 }
 0x505   : > { %1998 = vmatprep.mubr.msk.bf16.mxu0 %vm537_vm1, %v910_v11 }
 0x506   : > { %1999 = vmatmul.mubr.msk.bf16.gmra.mrb[12].mxu0 %vm537_vm1, %v911_v12 }
 0x507   : > { %2010 = vmatprep.mubr.msk.bf16.mxu0 %vm447_vm0, %v1006_v13 }
 0x50a   : > { %2009 = vmatpush3.bf16.xpose.msra.mxu0 %v1043_v15 }
 0x511   : > { %2011 = vmatmul.mubr.msk.bf16.vlgmr.msra.gmra.mrb[16].mxu0 %vm447_vm0, %v1008_v17 }
 0x512   : > { %2014 = vmatprep.mubr.msk.bf16.mxu0 %vm447_vm0, %v1010_v9 }
 0x519   : > { %2015 = vmatmul.mubr.msk.bf16.gmra.mrb[20].mxu0 %vm447_vm0, %v1012_v4 }
 0x5a0   : > { %v2589_v18 = vpop.f32.mrb[8].mxu0 }
 0x5a1   : > { %v2591_v19 = vpop.f32.mrb[9].mxu0 }
 0x5a2   : > { %v2593_v20 = vpop.f32.mrb[10].mxu0 }
 0x5a3   : > { %v2595_v21 = vpop.f32.mrb[11].mxu0 }
 0x5d9   : > { %v2597_v14 = vpop.f32.mrb[12].mxu0 }
 0x5da   : > { %v2599_v16 = vpop.f32.mrb[13].mxu0 }
 0x5db   : > { %v2601_v22 = vpop.f32.mrb[14].mxu0 }
 0x5dc   : > { %v2603_v23 = vpop.f32.mrb[15].mxu0 }
 0x5e4   : > { %v2012_v24 = vpop.f32.mrb[16].mxu0 }
 0x5e5   : > { %v1079_v25 = vpop.f32.mrb[17].mxu0  ;;  %v1116_v26 = vsel %vm537_vm1, %v2012_v24, -inf }
 0x5e6   : > { %1117 = vmax.xlane.f32.xlu0 %v1116_v26  ;;  %v2013_v28 = vpop.f32.mrb[18].mxu0  ;;  %v1110_v32 = vsel %vm537_vm1, %v1079_v25, -inf }
 0x5e7   : > { %v1082_v31 = vpop.f32.mrb[19].mxu0  ;;  %v1119_v34 = vsel %vm537_vm1, %v2013_v28, -inf }
 0x5e8   : > { %v1113_v30 = vsel %vm537_vm1, %v1082_v31, -inf }
 0x5e9   : > { %1114 = vmax.xlane.f32.xlu1 %v1113_v30 }
 0x5ea   : > { %1111 = vmax.xlane.f32.xlu0 %v1110_v32 }
 0x5ec   : > { %v2016_v33 = vpop.f32.mrb[20].mxu0 }
 0x5ed   : > { %v1095_v35 = vpop.f32.mrb[21].mxu0  ;;  %v1128_v40 = vsel %vm537_vm1, %v2016_v33, -inf }
 0x5ee   : > { %1120 = vmax.xlane.f32.xlu0 %v1119_v34  ;;  %v2609_v38 = vpop.f32.mrb[22].mxu0  ;;  %v1122_v44 = vsel %vm537_vm1, %v1095_v35, -inf }
 0x5ef   : > { %v2612_v41 = vpop.f32.mrb[23].mxu0  ;;  %v1131_v47 = vsel %vm537_vm1, %v2609_v38, -inf }
 0x5f0   : > { %v1125_v49 = vsel %vm537_vm1, %v2612_v41, -inf }
 0x5f2   : > { %1129 = vmax.xlane.f32.xlu0 %v1128_v40 }
 0x5f6   : > { %1123 = vmax.xlane.f32.xlu0 %v1122_v44 }
 0x5fa   : > { %1204 = vrot.lane.b32.xlu1 %v2439_v52, %s2263_s26 }
 0x5fe   : > { %1206 = vrot.lane.b32.xlu1 %v2443_v57, %s2263_s26 }
 0x60c   : > { %1202 = vrot.lane.b32.xlu0 %v2433_v48, %s2263_s26 }
 0x622   : > { %1132 = vmax.xlane.f32.xlu1 %v1131_v47 }
 0x626   : > { %1126 = vmax.xlane.f32.xlu1 %v1125_v49 }
 0x637   : > { %1208 = vrot.lane.b32.xlu1 %v2449_v61, %s2263_s26 }
 0x673   : > { %v1118_v50 = vpop.xlane.xlu0 %1117 }
 0x674   : > { %v1136_v36 = vsub.f32 %v2012_v24, %v1118_v50 }
 0x676   : > { %v1146_v46 = vmul.f32 1.442695, %v1136_v36  ;;  %v1115_v51 = vpop.xlane.xlu1 %1114 }
 0x677   : > { %v1112_v55 = vpop.xlane.xlu0 %1111  ;;  %v1135_v58 = vsub.f32 %v1082_v31, %v1115_v51 }
 0x678   : > { %2174 = vpow2.f32 %v1146_v46  ;;  %v1134_v56 = vsub.f32 %v1079_v25, %v1112_v55 }
 0x679   : > { %v1144_v6 = vmul.f32 1.442695, %v1135_v58 }
 0x67a   : > { %v1142_v60 = vmul.f32 1.442695, %v1134_v56  ;;  %v1205_v25 = vpop.permute.xlu1 %1204 }
 0x67b   : > { %v1121_v5 = vpop.xlane.xlu0 %1120 }
 0x67c   : > { %2176 = vpow2.f32 %v1142_v60  ;;  %v1137_v7 = vsub.f32 %v2013_v28, %v1121_v5 }
 0x67e   : > { %v1148_v8 = vmul.f32 1.442695, %v1137_v7 }
 0x67f   : > { %v1130_v10 = vpop.xlane.xlu0 %1129 }
 0x680   : > { %2178 = vpow2.f32 %v1148_v8  ;;  %v1140_v11 = vsub.f32 %v2016_v33, %v1130_v10  ;;  %v1207_v33 = vpop.permute.xlu1 %1206 }
 0x681   : > { %2180 = vpow2.f32 %v1144_v6 }
 0x682   : > { %v2627_v12 = vpop.eup %2174  ;;  %v1154_v13 = vmul.f32 1.442695, %v1140_v11 }
 0x683   : > { %v1124_v15 = vpop.xlane.xlu0 %1123  ;;  %v1164_v17 = vsel %vm537_vm1, %v2627_v12, 0.0 }
 0x684   : > { %2182 = vpow2.f32 %v1154_v13  ;;  %v1138_v9 = vsub.f32 %v1095_v35, %v1124_v15  ;;  %1165 = vadd.xlane.f32.xlu0 %v1164_v17 }
 0x686   : > { %v2631_v4 = vpop.eup %2176  ;;  %v1150_v24 = vmul.f32 1.442695, %v1138_v9 }
 0x687   : > { %v1203_v26 = vpop.permute.xlu0 %1202  ;;  %v1158_v28 = vsel %vm537_vm1, %v2631_v4, 0.0 }
 0x688   : > { %2184 = vpow2.f32 %v1150_v24  ;;  %1159 = vadd.xlane.f32.xlu0 %v1158_v28  ;;  %2018 = vmatprep.subr.bf16.mxu1 %v1203_v26 }
 0x689   : > { %2019 = vmatpush3.bf16.msra.mxu1 %v1203_v26 }
 0x68a   : > { %v2179_v31 = vpop.eup %2178  ;;  %2020 = vmatprep.subr.bf16.mxu1 %v1205_v25 }
 0x68b   : > { %v1167_v30 = vsel %vm537_vm1, %v2179_v31, 0.0  ;;  %v2181_v32 = vpop.eup %2180 }
 0x68c   : > { %1168 = vadd.xlane.f32.xlu1 %v1167_v30  ;;  %v1161_v40 = vsel %vm537_vm1, %v2181_v32, 0.0 }
 0x68d   : > { %2021 = vmatpush3.bf16.msra.mxu1 %v1205_v25 }
 0x68e   : > { %v2636_v34 = vpop.eup %2182  ;;  %2022 = vmatprep.subr.bf16.mxu1 %v1207_v33 }
 0x68f   : > { %v1176_v35 = vsel %vm537_vm1, %v2636_v34, 0.0 }
 0x690   : > { %1177 = vadd.xlane.f32.xlu0 %v1176_v35  ;;  %1162 = vadd.xlane.f32.xlu1 %v1161_v40 }
 0x691   : > { %2023 = vmatpush3.bf16.msra.mxu1 %v1207_v33 }
 0x692   : > { %v2641_v44 = vpop.eup %2184 }
 0x693   : > { %v1170_v47 = vsel %vm537_vm1, %v2641_v44, 0.0 }
 0x694   : > { %1171 = vadd.xlane.f32.xlu0 %v1170_v47 }
 0x6a1   : > { %1301 = vrot.lane.b32.xlu1 %v2347_v29, %s2264_s27 }
 0x6a5   : > { %1303 = vrot.lane.b32.xlu1 %v2366_v39, %s2264_s27 }
 0x6af   : > { %v1133_v49 = vpop.xlane.xlu1 %1132 }
 0x6b0   : > { %v1141_v50 = vsub.f32 %v2609_v38, %v1133_v49 }
 0x6b2   : > { %v1156_v36 = vmul.f32 1.442695, %v1141_v50 }
 0x6b3   : > { %v1127_v46 = vpop.xlane.xlu1 %1126 }
 0x6b4   : > { %2186 = vpow2.f32 %v1156_v36  ;;  %v1139_v51 = vsub.f32 %v2612_v41, %v1127_v46 }
 0x6b6   : > { %v1152_v55 = vmul.f32 1.442695, %v1139_v51 }
 0x6b7   : > { %v1209_v56 = vpop.permute.xlu1 %1208 }
 0x6b8   : > { %2024 = vmatprep.subr.bf16.mxu1 %v1209_v56  ;;  %2188 = vpow2.f32 %v1152_v55 }
 0x6b9   : > { %2025 = vmatpush3.bf16.msra.mxu1 %v1209_v56 }
 0x6be   : > { %v2187_v58 = vpop.eup %2186 }
 0x6bf   : > { %v1179_v60 = vsel %vm537_vm1, %v2187_v58, 0.0 }
 0x6c0   : > { %1180 = vadd.xlane.f32.xlu0 %v1179_v60 }
 0x6c2   : > { %v2189_v29 = vpop.eup %2188 }
 0x6c3   : > { %v1173_v39 = vsel %vm537_vm1, %v2189_v29, 0.0 }
 0x6c9   : > { %1174 = vadd.xlane.f32.xlu1 %v1173_v39 }
 0x6d6   : > { %1299 = vrot.lane.b32.xlu0 %v2345_v27, %s2264_s27 }
 0x6da   : > { %1305 = vrot.lane.b32.xlu1 %v2372_v43, %s2264_s27  ;;  %1291 = vrot.lane.b32.xlu0 %v2360_v37, %s2264_s27 }
 0x6de   : > { %1293 = vrot.lane.b32.xlu1 %v2382_v53, %s2264_s27  ;;  %1295 = vrot.lane.b32.xlu0 %v2384_v54, %s2264_s27 }
 0x6e2   : > { %1297 = vrot.lane.b32.xlu1 %v2392_v59, %s2264_s27 }
 0x711   : > { %v1166_v38 = vpop.xlane.xlu0 %1165 }
 0x715   : > { %v1160_v5 = vpop.xlane.xlu0 %1159 }
 0x719   : > { %v1169_v41 = vpop.xlane.xlu1 %1168 }
 0x71a   : > { %2190 = vrcp.f32 %v1169_v41 }
 0x71b   : > { %2192 = vrcp.f32 %v1160_v5 }
 0x71c   : > { %2194 = vrcp.f32 %v1166_v38 }
 0x71d   : > { %v1163_v27 = vpop.xlane.xlu1 %1162  ;;  %v1178_v13 = vpop.xlane.xlu0 %1177 }
 0x71e   : > { %2196 = vrcp.f32 %v1163_v27 }
 0x721   : > { %v1172_v15 = vpop.xlane.xlu0 %1171  ;;  %v1302_v17 = vpop.permute.xlu1 %1301 }
 0x724   : > { %v2191_v43 = vpop.eup %2190 }
 0x725   : > { %v2193_v7 = vpop.eup %2192  ;;  %v1193_v8 = vmul.f32 %v2191_v43, %v2179_v31  ;;  %v1304_v25 = vpop.permute.xlu1 %1303 }
 0x726   : > { %v2195_v37 = vpop.eup %2194  ;;  %v1190_v53 = vmul.f32 %v2193_v7, %v2631_v4  ;;  %v1323_v4 = vsel %vm447_vm0, %v1302_v17, 0  ;;  %v1326_v40 = vsel %vm447_vm0, %v1304_v25, 0 }
 0x727   : > { %v1192_v54 = vmul.f32 %v2195_v37, %v2627_v12 }
 0x728   : > { %v2197_v6 = vpop.eup %2196 }
 0x729   : > { %v1191_v10 = vmul.f32 %v2197_v6, %v2181_v32  ;;  %v1199_v59 = vpack.c.bf16 %v1193_v8, %v1192_v54 }
 0x72b   : > { %v1198_v11 = vpack.c.bf16 %v1191_v10, %v1190_v53 }
 0x72d   : > { %2026 = vmatprep.mubr.msk.bf16.mxu1 %vm537_vm1, %v1198_v11 }
 0x72e   : > { %2027 = vmatmul.mubr.msk.bf16.vlgmr.msra.gmra.mrb[16].mxu1 %vm537_vm1, %v1199_v59 }
 0x74d   : > { %v1181_v9 = vpop.xlane.xlu0 %1180 }
 0x74e   : > { %2198 = vrcp.f32 %v1181_v9 }
 0x74f   : > { %2200 = vrcp.f32 %v1172_v15 }
 0x750   : > { %2202 = vrcp.f32 %v1178_v13 }
 0x751   : > { %v1300_v24 = vpop.permute.xlu0 %1299 }
 0x752   : > { %v1320_v26 = vsel %vm447_vm0, %v1300_v24, 0  ;;  %2078 = vmatprep.subr.msk.bf16.mxu1 %vm447_vm0, %v1300_v24 }
 0x753   : > { %2035 = vmatpush3.bf16.xpose.msra.mxu1 %v1320_v26 }
 0x754   : > { %2079 = vmatprep.subr.msk.bf16.mxu1 %vm447_vm0, %v1302_v17 }
 0x755   : > { %v1292_v51 = vpop.permute.xlu0 %1291 }
 0x756   : > { %v1175_v12 = vpop.xlane.xlu1 %1174 }
 0x757   : > { %2204 = vrcp.f32 %v1175_v12 }
 0x758   : > { %v2199_v28 = vpop.eup %2198 }
 0x759   : > { %v2201_v31 = vpop.eup %2200  ;;  %v1197_v33 = vmul.f32 %v2199_v28, %v2187_v58 }
 0x75a   : > { %v2203_v30 = vpop.eup %2202  ;;  %v1306_v35 = vpop.permute.xlu1 %1305  ;;  %v1194_v47 = vmul.f32 %v2201_v31, %v2641_v44 }
 0x75b   : > { %2037 = vmatpush3.bf16.xpose.msra.mxu1 %v1323_v4  ;;  %v1196_v50 = vmul.f32 %v2203_v30, %v2636_v34  ;;  %v1329_v55 = vsel %vm447_vm0, %v1306_v35, 0  ;;  %v1296_v44 = vpop.permute.xlu0 %1295 }
 0x75c   : > { %2080 = vmatprep.subr.msk.bf16.mxu1 %vm447_vm0, %v1304_v25 }
 0x75d   : > { %v1201_v46 = vpack.c.bf16 %v1197_v33, %v1196_v50 }
 0x75e   : > { %v1294_v56 = vpop.permute.xlu1 %1293 }
 0x761   : > { %v2205_v32 = vpop.eup %2204 }
 0x762   : > { %v1195_v49 = vmul.f32 %v2205_v32, %v2189_v29  ;;  %v1298_v34 = vpop.permute.xlu1 %1297 }
 0x763   : > { %2039 = vmatpush3.bf16.xpose.msra.mxu1 %v1326_v40 }
 0x764   : > { %v1200_v36 = vpack.c.bf16 %v1195_v49, %v1194_v47  ;;  %2081 = vmatprep.subr.msk.bf16.mxu1 %vm447_vm0, %v1306_v35 }
 0x766   : > { %2030 = vmatprep.mubr.msk.bf16.mxu1 %vm537_vm1, %v1200_v36 }
 0x767   : > { %2031 = vmatmul.mubr.msk.bf16.gmra.mrb[20].mxu1 %vm537_vm1, %v1201_v46 }
 0x768   : > { %2042 = vmatprep.mubr.msk.bf16.mxu1 %vm447_vm0, %v1292_v51 }
 0x76b   : > { %2041 = vmatpush3.bf16.xpose.msra.mxu1 %v1329_v55 }
 0x772   : > { %2043 = vmatmul.mubr.msk.bf16.vlgmr.msra.gmra.mrb[24].mxu1 %vm447_vm0, %v1294_v56 }
 0x773   : > { %2046 = vmatprep.mubr.msk.bf16.mxu1 %vm447_vm0, %v1296_v44 }
 0x77a   : > { %2047 = vmatmul.mubr.msk.bf16.gmra.mrb[28].mxu1 %vm447_vm0, %v1298_v34 }
 0x801   : > { %v2685_v58 = vpop.f32.mrb[16].mxu1 }
 0x802   : > { %v2687_v60 = vpop.f32.mrb[17].mxu1 }
 0x803   : > { %v2689_v29 = vpop.f32.mrb[18].mxu1 }
 0x804   : > { %v2691_v39 = vpop.f32.mrb[19].mxu1 }
 0x83a   : > { %v2693_v38 = vpop.f32.mrb[20].mxu1 }
 0x83b   : > { %v2695_v41 = vpop.f32.mrb[21].mxu1 }
 0x83c   : > { %v2697_v5 = vpop.f32.mrb[22].mxu1 }
 0x83d   : > { %v2699_v27 = vpop.f32.mrb[23].mxu1 }
 0x845   : > { %v2044_v43 = vpop.f32.mrb[24].mxu1 }
 0x846   : > { %v1365_v7 = vpop.f32.mrb[25].mxu1  ;;  %v1402_v10 = vsel %vm537_vm1, %v2044_v43, -inf }
 0x847   : > { %v2045_v37 = vpop.f32.mrb[26].mxu1  ;;  %v1396_v6 = vsel %vm537_vm1, %v1365_v7, -inf }
 0x848   : > { %1397 = vmax.xlane.f32.xlu0 %v1396_v6  ;;  %v1368_v8 = vpop.f32.mrb[27].mxu1  ;;  %v1405_v13 = vsel %vm537_vm1, %v2045_v37, -inf }
 0x849   : > { %v1399_v53 = vsel %vm537_vm1, %v1368_v8, -inf }
 0x84a   : > { %1400 = vmax.xlane.f32.xlu1 %v1399_v53 }
 0x84c   : > { %1403 = vmax.xlane.f32.xlu0 %v1402_v10 }
 0x84d   : > { %v2048_v54 = vpop.f32.mrb[28].mxu1 }
 0x84e   : > { %v1381_v11 = vpop.f32.mrb[29].mxu1  ;;  %v1414_v25 = vsel %vm537_vm1, %v2048_v54, -inf }
 0x84f   : > { %v2704_v59 = vpop.f32.mrb[30].mxu1  ;;  %v1408_v9 = vsel %vm537_vm1, %v1381_v11, -inf }
 0x850   : > { %1406 = vmax.xlane.f32.xlu0 %v1405_v13  ;;  %v1384_v15 = vpop.f32.mrb[31].mxu1  ;;  %v1417_v24 = vsel %vm537_vm1, %v2704_v59, -inf }
 0x851   : > { %v1411_v17 = vsel %vm537_vm1, %v1384_v15, -inf }
 0x852   : > { %1412 = vmax.xlane.f32.xlu1 %v1411_v17 }
 0x854   : > { %1409 = vmax.xlane.f32.xlu0 %v1408_v9 }
 0x856   : > { %1418 = vmax.xlane.f32.xlu1 %v1417_v24 }
 0x858   : > { %1415 = vmax.xlane.f32.xlu0 %v1414_v25 }
 0x8d5   : > { %v1398_v26 = vpop.xlane.xlu0 %1397 }
 0x8d6   : > { %v1420_v12 = vsub.f32 %v1365_v7, %v1398_v26 }
 0x8d7   : > { %v1401_v4 = vpop.xlane.xlu1 %1400 }
 0x8d8   : > { %v1428_v30 = vmul.f32 1.442695, %v1420_v12  ;;  %v1421_v32 = vsub.f32 %v1368_v8, %v1401_v4 }
 0x8d9   : > { %v1404_v28 = vpop.xlane.xlu0 %1403 }
 0x8da   : > { %v1422_v31 = vsub.f32 %v2044_v43, %v1404_v28  ;;  %v1430_v47 = vmul.f32 1.442695, %v1421_v32 }
 0x8dc   : > { %v1432_v33 = vmul.f32 1.442695, %v1422_v31 }
 0x8dd   : > { %v1407_v35 = vpop.xlane.xlu0 %1406 }
 0x8de   : > { %2206 = vpow2.f32 %v1432_v33  ;;  %v1423_v40 = vsub.f32 %v2045_v37, %v1407_v35 }
 0x8df   : > { %2208 = vpow2.f32 %v1428_v30  ;;  %v1413_v17 = vpop.xlane.xlu1 %1412 }
 0x8e0   : > { %v1434_v49 = vmul.f32 1.442695, %v1423_v40  ;;  %v1425_v25 = vsub.f32 %v1384_v15, %v1413_v17 }
 0x8e1   : > { %v1410_v50 = vpop.xlane.xlu0 %1409 }
 0x8e2   : > { %2210 = vpow2.f32 %v1434_v49  ;;  %v1424_v36 = vsub.f32 %v1381_v11, %v1410_v50 }
 0x8e3   : > { %2212 = vpow2.f32 %v1430_v47  ;;  %v1419_v9 = vpop.xlane.xlu1 %1418 }
 0x8e4   : > { %v1436_v56 = vmul.f32 1.442695, %v1424_v36  ;;  %v1427_v24 = vsub.f32 %v2704_v59, %v1419_v9 }
 0x8e5   : > { %v1416_v46 = vpop.xlane.xlu0 %1415 }
 0x8e6   : > { %v1426_v51 = vsub.f32 %v2048_v54, %v1416_v46  ;;  %v1442_v26 = vmul.f32 1.442695, %v1427_v24 }
 0x8e8   : > { %v2712_v55 = vpop.eup %2206  ;;  %v1440_v44 = vmul.f32 1.442695, %v1426_v51 }
 0x8e9   : > { %v1450_v34 = vsel %vm537_vm1, %v2712_v55, 0.0  ;;  %v2716_v43 = vpop.eup %2208 }
 0x8ea   : > { %2214 = vpow2.f32 %v1440_v44  ;;  %1451 = vadd.xlane.f32.xlu0 %v1450_v34  ;;  %v1444_v37 = vsel %vm537_vm1, %v2716_v43, 0.0 }
 0x8eb   : > { %2216 = vpow2.f32 %v1436_v56 }
 0x8ec   : > { %v2718_v7 = vpop.eup %2210  ;;  %2218 = vpow2.f32 %v1442_v26 }
 0x8ed   : > { %v1453_v6 = vsel %vm537_vm1, %v2718_v7, 0.0  ;;  %v2213_v8 = vpop.eup %2212 }
 0x8ee   : > { %1445 = vadd.xlane.f32.xlu0 %v1444_v37  ;;  %1454 = vadd.xlane.f32.xlu1 %v1453_v6  ;;  %v1447_v53 = vsel %vm537_vm1, %v2213_v8, 0.0 }
 0x8f2   : > { %1448 = vadd.xlane.f32.xlu1 %v1447_v53 }
 0x8f4   : > { %v2725_v10 = vpop.eup %2214 }
 0x8f5   : > { %v1462_v54 = vsel %vm537_vm1, %v2725_v10, 0.0  ;;  %v2729_v11 = vpop.eup %2216 }
 0x8f6   : > { %1463 = vadd.xlane.f32.xlu0 %v1462_v54  ;;  %v1456_v13 = vsel %vm537_vm1, %v2729_v11, 0.0 }
 0x8fa   : > { %1457 = vadd.xlane.f32.xlu0 %v1456_v13 }
 0x903   : > { %1490 = vrot.lane.b32.xlu1 %v2439_v52, %s2264_s27  ;;  %v1438_v52 = vmul.f32 1.442695, %v1425_v25 }
 0x905   : > { %2220 = vpow2.f32 %v1438_v52 }
 0x907   : > { %1492 = vrot.lane.b32.xlu1 %v2443_v57, %s2264_s27 }
 0x910   : > { %1488 = vrot.lane.b32.xlu0 %v2433_v48, %s2264_s27  ;;  %v2219_v48 = vpop.eup %2218 }
 0x911   : > { %v1465_v57 = vsel %vm537_vm1, %v2219_v48, 0.0 }
 0x914   : > { %1585 = vrot.lane.b32.xlu0 %v2591_v19, %s2264_s27 }
 0x918   : > { %1589 = vrot.lane.b32.xlu0 %v2589_v18, %s2264_s27  ;;  %v2221_v18 = vpop.eup %2220 }
 0x919   : > { %v1459_v19 = vsel %vm537_vm1, %v2221_v18, 0.0 }
 0x91c   : > { %1593 = vrot.lane.b32.xlu0 %v2599_v16, %s2264_s27 }
 0x920   : > { %1597 = vrot.lane.b32.xlu0 %v2597_v14, %s2264_s27 }
 0x924   : > { %1617 = vrot.lane.b32.xlu0 %v2687_v60, %s2263_s26 }
 0x928   : > { %1621 = vrot.lane.b32.xlu0 %v2685_v58, %s2263_s26 }
 0x92b   : > { %1466 = vadd.xlane.f32.xlu1 %v1465_v57 }
 0x92c   : > { %1625 = vrot.lane.b32.xlu0 %v2695_v41, %s2263_s26 }
 0x92f   : > { %1460 = vadd.xlane.f32.xlu1 %v1459_v19 }
 0x930   : > { %1629 = vrot.lane.b32.xlu0 %v2693_v38, %s2263_s26 }
 0x940   : > { %1494 = vrot.lane.b32.xlu1 %v2449_v61, %s2264_s27 }
 0x944   : > { %1587 = vrot.lane.b32.xlu1 %v2595_v21, %s2264_s27 }
 0x948   : > { %1591 = vrot.lane.b32.xlu1 %v2593_v20, %s2264_s27 }
 0x94c   : > { %1595 = vrot.lane.b32.xlu1 %v2603_v23, %s2264_s27 }
 0x950   : > { %1599 = vrot.lane.b32.xlu1 %v2601_v22, %s2264_s27 }
 0x954   : > { %1619 = vrot.lane.b32.xlu1 %v2691_v39, %s2263_s26 }
 0x958   : > { %1623 = vrot.lane.b32.xlu1 %v2689_v29, %s2263_s26 }
 0x95c   : > { %1627 = vrot.lane.b32.xlu1 %v2699_v27, %s2263_s26 }
 0x960   : > { %1631 = vrot.lane.b32.xlu1 %v2697_v5, %s2263_s26 }
 0x977   : > { %v1452_v61 = vpop.xlane.xlu0 %1451 }
 0x97b   : > { %v1446_v20 = vpop.xlane.xlu0 %1445  ;;  %v1455_v21 = vpop.xlane.xlu1 %1454 }
 0x97c   : > { %2222 = vrcp.f32 %v1446_v20 }
 0x97f   : > { %v1449_v14 = vpop.xlane.xlu1 %1448 }
 0x980   : > { %2224 = vrcp.f32 %v1449_v14 }
 0x981   : > { %2226 = vrcp.f32 %v1455_v21 }
 0x982   : > { %2228 = vrcp.f32 %v1452_v61 }
 0x983   : > { %v1464_v16 = vpop.xlane.xlu0 %1463  ;;  %v1491_v60 = vpop.permute.xlu1 %1490 }
 0x986   : > { %v2223_v23 = vpop.eup %2222 }
 0x987   : > { %v1458_v22 = vpop.xlane.xlu0 %1457  ;;  %v1476_v29 = vmul.f32 %v2223_v23, %v2716_v43  ;;  %v1493_v5 = vpop.permute.xlu1 %1492 }
 0x98a   : > { %v2225_v58 = vpop.eup %2224 }
 0x98b   : > { %v1489_v39 = vpop.permute.xlu0 %1488  ;;  %v1477_v38 = vmul.f32 %v2225_v58, %v2213_v8  ;;  %v2227_v59 = vpop.eup %2226 }
 0x98c   : > { %2050 = vmatprep.subr.bf16.mxu0 %v1489_v39  ;;  %v2229_v12 = vpop.eup %2228  ;;  %v1479_v4 = vmul.f32 %v2227_v59, %v2718_v7 }
 0x98d   : > { %2051 = vmatpush3.bf16.msra.mxu0 %v1489_v39  ;;  %v1484_v41 = vpack.c.bf16 %v1477_v38, %v1476_v29  ;;  %v1478_v31 = vmul.f32 %v2229_v12, %v2712_v55 }
 0x98e   : > { %2052 = vmatprep.subr.bf16.mxu0 %v1491_v60 }
 0x98f   : > { %2058 = vmatprep.mubr.msk.bf16.mxu0 %vm537_vm1, %v1484_v41  ;;  %v1485_v30 = vpack.c.bf16 %v1479_v4, %v1478_v31  ;;  %v1586_v8 = vpop.permute.xlu0 %1585 }
 0x990   : > { %v1673_v23 = vsel %vm447_vm0, %v2495_v42, %v1586_v8 }
 0x991   : > { %2053 = vmatpush3.bf16.msra.mxu0 %v1491_v60 }
 0x992   : > { %2054 = vmatprep.subr.bf16.mxu0 %v1493_v5 }
 0x995   : > { %2055 = vmatpush3.bf16.msra.mxu0 %v1493_v5 }
 0x9b8   : > { %v1467_v27 = vpop.xlane.xlu1 %1466 }
 0x9b9   : > { %2230 = vrcp.f32 %v1467_v27 }
 0x9ba   : > { %2232 = vrcp.f32 %v1458_v22 }
 0x9bb   : > { %2234 = vrcp.f32 %v1464_v16 }
 0x9bc   : > { %v1461_v15 = vpop.xlane.xlu1 %1460 }
 0x9bd   : > { %2236 = vrcp.f32 %v1461_v15 }
 0x9c0   : > { %v1495_v28 = vpop.permute.xlu1 %1494 }
 0x9c1   : > { %2056 = vmatprep.subr.bf16.mxu0 %v1495_v28 }
 0x9c2   : > { %2057 = vmatpush3.bf16.msra.mxu0 %v1495_v28 }
 0x9c3   : > { %v2231_v32 = vpop.eup %2230 }
 0x9c4   : > { %v2233_v33 = vpop.eup %2232  ;;  %v1483_v47 = vmul.f32 %v2231_v32, %v2219_v48  ;;  %v1588_v53 = vpop.permute.xlu1 %1587 }
 0x9c5   : > { %2059 = vmatmul.mubr.msk.bf16.vlgmr.msra.gmra.mrb[24].mxu0 %vm537_vm1, %v1485_v30  ;;  %v2235_v35 = vpop.eup %2234  ;;  %v1480_v49 = vmul.f32 %v2233_v33, %v2729_v11 }
 0x9c6   : > { %v1482_v36 = vmul.f32 %v2235_v35, %v2725_v10  ;;  %v1590_v10 = vpop.permute.xlu0 %1589 }
 0x9c7   : > { %v2237_v40 = vpop.eup %2236  ;;  %v1675_v61 = vsel %vm447_vm0, %v2493_v45, %v1590_v10 }
 0x9c8   : > { %v1481_v50 = vmul.f32 %v2237_v40, %v2221_v18  ;;  %v1487_v51 = vpack.c.bf16 %v1483_v47, %v1482_v36  ;;  %v1592_v54 = vpop.permute.xlu1 %1591 }
 0x9c9   : > { %v1676_v14 = vsel %vm447_vm0, %v2497_v62, %v1592_v54  ;;  %v1674_v62 = vsel %vm447_vm0, %v2499_v63, %v1588_v53 }
 0x9ca   : > { %v1486_v46 = vpack.c.bf16 %v1481_v50, %v1480_v49  ;;  %v1594_v11 = vpop.permute.xlu0 %1593 }
 0x9cb   : > { %v1677_v42 = vsel %vm447_vm0, %v2503_v1, %v1594_v11 }
 0x9cc   : > { %2062 = vmatprep.mubr.msk.bf16.mxu0 %vm537_vm1, %v1486_v46  ;;  %v1596_v13 = vpop.permute.xlu1 %1595 }
 0x9cd   : > { %2063 = vmatmul.mubr.msk.bf16.gmra.mrb[28].mxu0 %vm537_vm1, %v1487_v51  ;;  %v1678_v63 = vsel %vm447_vm0, %v2507_v3, %v1596_v13 }
 0x9ce   : > { %v1598_v17 = vpop.permute.xlu0 %1597 }
 0x9cf   : > { %v1679_v28 = vsel %vm447_vm0, %v2501_v0, %v1598_v17 }
 0x9d0   : > { %v1600_v9 = vpop.permute.xlu1 %1599 }
 0x9d1   : > { %v1680_v32 = vsel %vm447_vm0, %v2505_v2, %v1600_v9 }
 0x9d2   : > { %v1618_v24 = vpop.permute.xlu0 %1617 }
 0x9d3   : > { %v1681_v60 = vsel %vm537_vm1, %v1673_v23, %v1618_v24 }
 0x9d4   : > { %v1620_v25 = vpop.permute.xlu1 %1619 }
 0x9d5   : > { %v1682_v38 = vsel %vm537_vm1, %v1674_v62, %v1620_v25 }
 0x9d6   : > { %v1622_v26 = vpop.permute.xlu0 %1621 }
 0x9d7   : > { %v1683_v20 = vsel %vm537_vm1, %v1675_v61, %v1622_v26 }
 0x9d8   : > { %v1624_v52 = vpop.permute.xlu1 %1623 }
 0x9d9   : > { %v1684_v22 = vsel %vm537_vm1, %v1676_v14, %v1624_v52 }
 0x9da   : > { %v1626_v48 = vpop.permute.xlu0 %1625 }
 0x9db   : > { %v1685_v27 = vsel %vm537_vm1, %v1677_v42, %v1626_v48 }
 0x9dc   : > { %v1628_v57 = vpop.permute.xlu1 %1627 }
 0x9dd   : > { %v1686_v12 = vsel %vm537_vm1, %v1678_v63, %v1628_v57 }
 0x9de   : > { %v1630_v18 = vpop.permute.xlu0 %1629 }
 0x9df   : > { %v1687_v31 = vsel %vm537_vm1, %v1679_v28, %v1630_v18 }
 0x9e0   : > { %v1632_v19 = vpop.permute.xlu1 %1631 }
 0x9e1   : > { %v1688_v33 = vsel %vm537_vm1, %v1680_v32, %v1632_v19 }
 0xa98   : > { %v2060_v55 = vpop.f32.mrb[24].mxu0 }
 0xa99   : > { %1653 = vrot.lane.b32.xlu0 %v2060_v55, %s2262_s25  ;;  %v1546_v56 = vpop.f32.mrb[25].mxu0 }
 0xa9a   : > { %v2061_v44 = vpop.f32.mrb[26].mxu0 }
 0xa9b   : > { %1655 = vrot.lane.b32.xlu1 %v2061_v44, %s2262_s25  ;;  %v1549_v34 = vpop.f32.mrb[27].mxu0 }
 0xa9d   : > { %1649 = vrot.lane.b32.xlu0 %v1546_v56, %s2262_s25 }
 0xa9f   : > { %1651 = vrot.lane.b32.xlu1 %v1549_v34, %s2262_s25 }
 0xaa0   : > { %v2064_v43 = vpop.f32.mrb[28].mxu0 }
 0xaa1   : > { %v1562_v7 = vpop.f32.mrb[29].mxu0 }
 0xaa2   : > { %1657 = vrot.lane.b32.xlu0 %v1562_v7, %s2262_s25  ;;  %v2065_v37 = vpop.f32.mrb[30].mxu0 }
 0xaa3   : > { %v1565_v6 = vpop.f32.mrb[31].mxu0 }
 0xaa4   : > { %1659 = vrot.lane.b32.xlu1 %v1565_v6, %s2262_s25 }
 0xaa6   : > { %1661 = vrot.lane.b32.xlu0 %v2064_v43, %s2262_s25 }
 0xaa8   : > { %1663 = vrot.lane.b32.xlu1 %v2065_v37, %s2262_s25 }
 0xb0b   : > { %v1654_v21 = vpop.permute.xlu0 %1653 }
 0xb0c   : > { %v1692_v16 = vsel %vm1689_vm2, %v1683_v20, %v1654_v21 }
 0xb0d   : > { %1700 = vst [vmem:[%s2802_s4 + $0x10] sm:$0xff] %v1692_v16  ;;  %v1656_v45 = vpop.permute.xlu1 %1655 }
 0xb0e   : > { %v1693_v58 = vsel %vm1689_vm2, %v1684_v22, %v1656_v45 }
 0xb0f   : > { %1701 = vst [vmem:[%s2802_s4 + $0x18] sm:$0xff] %v1693_v58  ;;  %v1650_v39 = vpop.permute.xlu0 %1649 }
 0xb10   : > { %v1690_v29 = vsel %vm1689_vm2, %v1681_v60, %v1650_v39 }
 0xb11   : > { %1698 = vst [vmem:[%s2802_s4] sm:$0xff] %v1690_v29  ;;  %v1652_v41 = vpop.permute.xlu1 %1651 }
 0xb12   : > { %v1691_v5 = vsel %vm1689_vm2, %v1682_v38, %v1652_v41 }
 0xb13   : > { %1699 = vst [vmem:[%s2802_s4 + $0x8] sm:$0xff] %v1691_v5 }
 0xb14   : > { %v1658_v59 = vpop.permute.xlu0 %1657 }
 0xb15   : > { %v1694_v15 = vsel %vm1689_vm2, %v1685_v27, %v1658_v59 }
 0xb16   : > { %1702 = vst [vmem:[%s2802_s4 + $0x20] sm:$0xff] %v1694_v15  ;;  %v1660_v4 = vpop.permute.xlu1 %1659 }
 0xb17   : > { %v1695_v1 = vsel %vm1689_vm2, %v1686_v12, %v1660_v4 }
 0xb18   : > { %1703 = vst [vmem:[%s2802_s4 + $0x28] sm:$0xff] %v1695_v1  ;;  %v1662_v30 = vpop.permute.xlu0 %1661 }
 0xb19   : > { %v1696_v3 = vsel %vm1689_vm2, %v1687_v31, %v1662_v30 }
 0xb1a   : > { %1704 = vst [vmem:[%s2802_s4 + $0x30] sm:$0xff] %v1696_v3  ;;  %v1664_v35 = vpop.permute.xlu1 %1663 }
 0xb1b   : > { %v1697_v40 = vsel %vm1689_vm2, %v1688_v33, %v1664_v35 }
 0xb1c   : > { %1705 = vst [vmem:[%s2802_s4 + $0x38] sm:$0xff] %v1697_v40 }
 0xb1d PF: > { %p10_p9 = scmp.ge.s32.totalorder %s2302_s16, 4   ;;  %s2857_s12 = smov %s2256_s13 }
 0xb1e   : > { %s2858_s13 = smov %s2311_s19  ;;  %s2859_s14 = smov %s2302_s16 }
 0xb1f   :  { %12 = sbr.rel (!%p10_p9) target bundleno = 2 (0x2), region = 197 }

// kernel: dit_forward.20
= control target key start
LH: loop header
LB: loop body
LE: loop exit
PB: predicated region body
PF: predicated region fallthrough
CT: control target
= control target key end

     0   :  { %s1576_s18 = smov 0   ;;  %s1578_s19 = smov 0   ;;  %s2121_s0 = inlined_call_operand.vmem [shape: f32[2,64,128], index: 0, kind: input, shape index: {}]   ;;  %s2122_s1 = inlined_call_operand.vmem [shape: f32[2,1,128], index: 1, kind: input, shape index: {}]   ;;  %s2123_s2 = inlined_call_operand.vmem [shape: f32[2,1,128], index: 2, kind: input, shape index: {}]   ;;  %s2124_s3 = inlined_call_operand.vmem [shape: bf16[128,512], index: 3, kind: input, shape index: {}]   ;;  %s2125_s4 = inlined_call_operand.vmem [shape: f32[1,512], index: 4, kind: input, shape index: {}]   ;;  %s2126_s5 = inlined_call_operand.vmem [shape: f32[2,64,512], index: 5, kind: output, shape index: {}]  }
   0x1   :  { %s1580_s20 = smov 0  }
   0x2 LB: > { %s34_s21 = sadd.s32 1, %s1539_s19  ;;  %p1326_p0 = scmp.ge.s32.totalorder %s1543_s20, 1  ;;  %s1543_s20 = sphi %s1580_s20, %s15_s20   ;;  %s1539_s19 = sphi %s1578_s19, %s2128_s19   ;;  %s1535_s18 = sphi %s1576_s18, %s2127_s18  }
   0x3   : > { %p36_p1 = scmp.ge.s32.totalorder %s34_s21, 2  ;;  %p254_p2 = scmp.lt.s32.totalorder %s1543_s20, 3 }
   0x5   : > { %s2130_s21 = smov (%p36_p1, %s34_s21), 0  ;;  %p255_p3 = pnand %p1326_p0, %p254_p2 }
   0x6   : > { %p311_p4 = scmp.lt.s32.totalorder (!%p255_p3), %s1535_s18, 1  ;;  %v1393_v8 = vld [vmem:[%s2124_s3 + $0x4] ss:$16 sps:$4 sm:$0xff] (!%p255_p3)   ;;  %v1395_v9 = vld [vmem:[%s2124_s3 + $0xc] ss:$16 sps:$4 sm:$0xff] (!%p255_p3)  }
   0x7   : > { %258 = sbr.rel (%p255_p3) target bundleno = 645 (0x285), region = 40  ;;  %v1397_v10 = vld [vmem:[%s2124_s3] ss:$16 sps:$4 sm:$0xff] (!%p255_p3)   ;;  %v1398_v11 = vld [vmem:[%s2124_s3 + $0x8] ss:$16 sps:$4 sm:$0xff] (!%p255_p3)   ;;  %700 = vmatprep.subr.bf16.mxu0 (!%p255_p3), %v1393_v8  ;;  %773 = vmatprep.subr.bf16.mxu1 (!%p255_p3), %v1395_v9  ;;  %v1545_v8 = vmov (!%p255_p3), 0  }
   0x8   : > { %v1399_v12 = vld [vmem:[%s2124_s3 + $0x24] ss:$16 sps:$4 sm:$0xff] (!%p255_p3)   ;;  %v1401_v13 = vld [vmem:[%s2124_s3 + $0x2c] ss:$16 sps:$4 sm:$0xff] (!%p255_p3)   ;;  %701 = vmatpush1.bf16.msra.mxu0 (!%p255_p3), %v1397_v10  ;;  %774 = vmatpush1.bf16.msra.mxu1 (!%p255_p3), %v1398_v11  ;;  %v1403_v46 = vld [vmem:[%s2124_s3 + $0x20] ss:$16 sps:$4 sm:$0xff] (!%p255_p3)  }
   0x9   : > { %702 = vmatprep.subr.bf16.mxu0 (!%p255_p3), %v1399_v12  ;;  %775 = vmatprep.subr.bf16.mxu1 (!%p255_p3), %v1401_v13  ;;  %v1404_v47 = vld [vmem:[%s2124_s3 + $0x28] ss:$16 sps:$4 sm:$0xff] (!%p255_p3)   ;;  %v1405_v48 = vld [vmem:[%s2124_s3 + $0x44] ss:$16 sps:$4 sm:$0xff] (!%p255_p3)   ;;  %v1407_v49 = vld [vmem:[%s2124_s3 + $0x4c] ss:$16 sps:$4 sm:$0xff] (!%p255_p3)   ;;  %v454_v12 = vlaneseq (!%p255_p3) }
   0xa   : > { %v1409_v50 = vld [vmem:[%s2124_s3 + $0x40] ss:$16 sps:$4 sm:$0xff] (!%p255_p3)   ;;  %v1410_v51 = vld [vmem:[%s2124_s3 + $0x48] ss:$16 sps:$4 sm:$0xff] (!%p255_p3)   ;;  %v1411_v52 = vld [vmem:[%s2124_s3 + $0x64] ss:$16 sps:$4 sm:$0xff] (!%p255_p3)   ;;  %732 = vmatprep.mubr.bf16.mxu0 (!%p255_p3), %v1545_v8  ;;  %805 = vmatprep.mubr.bf16.mxu1 (!%p255_p3), %v1545_v8 }
   0xb   : > { %v1413_v53 = vld [vmem:[%s2124_s3 + $0x6c] ss:$16 sps:$4 sm:$0xff] (!%p255_p3)   ;;  %v1415_v54 = vld [vmem:[%s2124_s3 + $0x60] ss:$16 sps:$4 sm:$0xff] (!%p255_p3)   ;;  %v1416_v55 = vld [vmem:[%s2124_s3 + $0x68] ss:$16 sps:$4 sm:$0xff] (!%p255_p3)  }
   0xc   : > { %703 = vmatpush1.bf16.msra.mxu0 (!%p255_p3), %v1403_v46  ;;  %776 = vmatpush1.bf16.msra.mxu1 (!%p255_p3), %v1404_v47  ;;  %v1417_v56 = vld [vmem:[%s2124_s3 + $0x84] ss:$16 sps:$4 sm:$0xff] (!%p255_p3)   ;;  %v1419_v57 = vld [vmem:[%s2124_s3 + $0x8c] ss:$16 sps:$4 sm:$0xff] (!%p255_p3)   ;;  %v1421_v58 = vld [vmem:[%s2124_s3 + $0x80] ss:$16 sps:$4 sm:$0xff] (!%p255_p3)  }
   0xd   : > { %704 = vmatprep.subr.bf16.mxu0 (!%p255_p3), %v1405_v48  ;;  %777 = vmatprep.subr.bf16.mxu1 (!%p255_p3), %v1407_v49  ;;  %v1422_v59 = vld [vmem:[%s2124_s3 + $0x88] ss:$16 sps:$4 sm:$0xff] (!%p255_p3)   ;;  %v1423_v60 = vld [vmem:[%s2124_s3 + $0xa4] ss:$16 sps:$4 sm:$0xff] (!%p255_p3)   ;;  %v1425_v61 = vld [vmem:[%s2124_s3 + $0xac] ss:$16 sps:$4 sm:$0xff] (!%p255_p3)  }
   0xe   : > { %s2132_s18 = smov (!%p311_p4, %s1535_s18), 1  ;;  %v1427_v62 = vld [vmem:[%s2124_s3 + $0xa0] ss:$16 sps:$4 sm:$0xff]   ;;  %v1428_v63 = vld [vmem:[%s2124_s3 + $0xa8] ss:$16 sps:$4 sm:$0xff]  }
   0xf   : > { %s1366_s22 = sshll.u32 %s2132_s18, 6  ;;  %s325_s29 = scalar_lea.vmem %s2123_s2, %s2132_s18 }
  0x10   : > { %s318_s25 = scalar_lea.vmem %s2121_s0, %s1366_s22  ;;  %705 = vmatpush1.bf16.msra.mxu0 %v1409_v50  ;;  %778 = vmatpush1.bf16.msra.mxu1 %v1410_v51  ;;  %s322_s7 = scalar_lea.vmem %s2122_s1, %s2132_s18 }
  0x11   : > { %v354_v0 = vld [vmem:[%s318_s25] sm:$0xff]  ;;  %v356_v1 = vld [vmem:[%s318_s25 + $0x10] sm:$0xff]  ;;  %v355_v2 = vld [vmem:[%s318_s25 + $0x8] sm:$0xff]  ;;  %706 = vmatprep.subr.bf16.mxu0 %v1411_v52  ;;  %779 = vmatprep.subr.bf16.mxu1 %v1413_v53  ;;  %s1367_s10 = sshll.u32 %s2132_s18, 8 }
  0x12   : > { %362 = vadd.xlane.f32.xlu0 %v354_v0  ;;  %366 = vadd.xlane.f32.xlu1 %v356_v1  ;;  %v357_v3 = vld [vmem:[%s318_s25 + $0x18] sm:$0xff]  ;;  %v358_v4 = vld [vmem:[%s318_s25 + $0x20] sm:$0xff]  ;;  %v359_v5 = vld [vmem:[%s318_s25 + $0x28] sm:$0xff]  ;;  %s1888_s12 = scalar_lea.vmem %s2126_s5, %s1367_s10 }
  0x13   : > { %v360_v6 = vld [vmem:[%s318_s25 + $0x30] sm:$0xff]  ;;  %v361_v7 = vld [vmem:[%s318_s25 + $0x38] sm:$0xff]  ;;  %v1331_v52 = vld [vmem:[%s322_s7] ss:$0 sm:$0xff] }
  0x14   : > { %707 = vmatpush1.bf16.msra.mxu0 %v1415_v54  ;;  %780 = vmatpush1.bf16.msra.mxu1 %v1416_v55 }
  0x15   : > { %708 = vmatprep.subr.bf16.mxu0 %v1417_v56  ;;  %781 = vmatprep.subr.bf16.mxu1 %v1419_v57 }
  0x16   : > { %364 = vadd.xlane.f32.xlu0 %v355_v2  ;;  %368 = vadd.xlane.f32.xlu1 %v357_v3 }
  0x18   : > { %709 = vmatpush1.bf16.msra.mxu0 %v1421_v58  ;;  %782 = vmatpush1.bf16.msra.mxu1 %v1422_v59 }
  0x19   : > { %710 = vmatprep.subr.bf16.mxu0 %v1423_v60  ;;  %783 = vmatprep.subr.bf16.mxu1 %v1425_v61 }
  0x1a   : > { %370 = vadd.xlane.f32.xlu0 %v358_v4  ;;  %372 = vadd.xlane.f32.xlu1 %v359_v5 }
  0x1c   : > { %711 = vmatpush1.bf16.msra.mxu0 %v1427_v62  ;;  %784 = vmatpush1.bf16.msra.mxu1 %v1428_v63 }
  0x1e   : > { %374 = vadd.xlane.f32.xlu0 %v360_v6  ;;  %376 = vadd.xlane.f32.xlu1 %v361_v7 }
  0x9f   : > { %v363_v14 = vpop.xlane.xlu0 %362  ;;  %v367_v15 = vpop.xlane.xlu1 %366 }
  0xa0   : > { %v379_v16 = vmul.f32 0.0078125, %v363_v14  ;;  %v381_v17 = vmul.f32 0.0078125, %v367_v15 }
  0xa2   : > { %v1618_v18 = vsub.f32 %v354_v0, %v379_v16  ;;  %v1620_v19 = vsub.f32 %v356_v1, %v381_v17  ;;  %v1429_v0 = vld [vmem:[%s2124_s3 + $0xc4] ss:$16 sps:$4 sm:$0xff]   ;;  %v1431_v1 = vld [vmem:[%s2124_s3 + $0xcc] ss:$16 sps:$4 sm:$0xff]  }
  0xa3   : > { %v365_v20 = vpop.xlane.xlu0 %364  ;;  %v369_v21 = vpop.xlane.xlu1 %368  ;;  %712 = vmatprep.subr.bf16.mxu0 %v1429_v0  ;;  %785 = vmatprep.subr.bf16.mxu1 %v1431_v1 }
  0xa4   : > { %v380_v22 = vmul.f32 0.0078125, %v365_v20  ;;  %v395_v23 = vmul.f32 %v1618_v18, %v1618_v18  ;;  %v382_v24 = vmul.f32 0.0078125, %v369_v21  ;;  %v397_v27 = vmul.f32 %v1620_v19, %v1620_v19 }
  0xa5   : > { %v1734_v21 = vshrl.u32 %v454_v12, 7 }
  0xa6   : > { %v1624_v25 = vsub.f32 %v355_v2, %v380_v22  ;;  %403 = vadd.xlane.f32.xlu0 %v395_v23  ;;  %v1626_v26 = vsub.f32 %v357_v3, %v382_v24  ;;  %v1433_v2 = vld [vmem:[%s2124_s3 + $0xc0] ss:$16 sps:$4 sm:$0xff]   ;;  %v1434_v3 = vld [vmem:[%s2124_s3 + $0xc8] ss:$16 sps:$4 sm:$0xff]  }
  0xa7   : > { %v371_v28 = vpop.xlane.xlu0 %370  ;;  %v373_v29 = vpop.xlane.xlu1 %372  ;;  %713 = vmatpush1.bf16.msra.mxu0 %v1433_v2  ;;  %786 = vmatpush1.bf16.msra.mxu1 %v1434_v3  ;;  %v451_v24 = vld [vmem:[%s325_s29] sm:$0x1] }
  0xa8   : > { %v383_v30 = vmul.f32 0.0078125, %v371_v28  ;;  %v396_v31 = vmul.f32 %v1624_v25, %v1624_v25  ;;  %v384_v32 = vmul.f32 0.0078125, %v373_v29  ;;  %v398_v35 = vmul.f32 %v1626_v26, %v1626_v26 }
  0xaa   : > { %v1632_v33 = vsub.f32 %v358_v4, %v383_v30  ;;  %407 = vadd.xlane.f32.xlu0 %v397_v27  ;;  %405 = vadd.xlane.f32.xlu1 %v396_v31  ;;  %v1634_v34 = vsub.f32 %v359_v5, %v384_v32  ;;  %v1435_v4 = vld [vmem:[%s2124_s3 + $0xe4] ss:$16 sps:$4 sm:$0xff]   ;;  %v1437_v5 = vld [vmem:[%s2124_s3 + $0xec] ss:$16 sps:$4 sm:$0xff]   ;;  %v452_v30 = vadd.f32 1.0, %v451_v24  ;;  %v456_v31 = vsub.s32 0, %v1734_v21 }
  0xab   : > { %v375_v36 = vpop.xlane.xlu0 %374  ;;  %v377_v37 = vpop.xlane.xlu1 %376  ;;  %714 = vmatprep.subr.bf16.mxu0 %v1435_v4  ;;  %787 = vmatprep.subr.bf16.mxu1 %v1437_v5 }
  0xac   : > { %v385_v38 = vmul.f32 0.0078125, %v375_v36  ;;  %v399_v39 = vmul.f32 %v1632_v33, %v1632_v33  ;;  %v386_v40 = vmul.f32 0.0078125, %v377_v37  ;;  %v400_v43 = vmul.f32 %v1634_v34, %v1634_v34 }
  0xae   : > { %v1640_v41 = vsub.f32 %v360_v6, %v385_v38  ;;  %409 = vadd.xlane.f32.xlu1 %v398_v35  ;;  %411 = vadd.xlane.f32.xlu0 %v399_v39  ;;  %v1642_v42 = vsub.f32 %v361_v7, %v386_v40  ;;  %v1439_v6 = vld [vmem:[%s2124_s3 + $0xe0] ss:$16 sps:$4 sm:$0xff]   ;;  %v1440_v7 = vld [vmem:[%s2124_s3 + $0xe8] ss:$16 sps:$4 sm:$0xff]   ;;  %v457_v39 = vrot.slane %v452_v30, %v456_v31 }
  0xaf   : > { %715 = vmatpush1.bf16.msra.mxu0 %v1439_v6  ;;  %788 = vmatpush1.bf16.msra.mxu1 %v1440_v7 }
  0xb0   : > { %v401_v44 = vmul.f32 %v1640_v41, %v1640_v41  ;;  %v402_v45 = vmul.f32 %v1642_v42, %v1642_v42 }
  0xb2   : > { %413 = vadd.xlane.f32.xlu1 %v400_v43  ;;  %415 = vadd.xlane.f32.xlu0 %v401_v44 }
  0xb6   : > { %417 = vadd.xlane.f32.xlu1 %v402_v45 }
 0x133   : > { %v404_v9 = vpop.xlane.xlu0 %403 }
 0x134   : > { %v419_v10 = vmul.f32 0.0078125, %v404_v9 }
 0x136   : > { %v427_v11 = vadd.f32 1e-06, %v419_v10 }
 0x137   : > { %v406_v13 = vpop.xlane.xlu1 %405  ;;  %v408_v14 = vpop.xlane.xlu0 %407 }
 0x138   : > { %1441 = vrsqrt.f32 %v427_v11  ;;  %v420_v15 = vmul.f32 0.0078125, %v406_v13  ;;  %v421_v16 = vmul.f32 0.0078125, %v408_v14 }
 0x13a   : > { %v428_v17 = vadd.f32 1e-06, %v420_v15  ;;  %v429_v20 = vadd.f32 1e-06, %v421_v16  ;;  %v530_v15 = vsub.s32 2, %v1734_v21  ;;  %v534_v16 = vsub.s32 3, %v1734_v21 }
 0x13b   : > { %v410_v22 = vpop.xlane.xlu1 %409  ;;  %v412_v23 = vpop.xlane.xlu0 %411 }
 0x13c   : > { %1443 = vrsqrt.f32 %v428_v17  ;;  %v422_v27 = vmul.f32 0.0078125, %v410_v22  ;;  %v423_v29 = vmul.f32 0.0078125, %v412_v23 }
 0x13d   : > { %1445 = vrsqrt.f32 %v429_v20 }
 0x13e   : > { %v430_v28 = vadd.f32 1e-06, %v422_v27  ;;  %v431_v37 = vadd.f32 1e-06, %v423_v29 }
 0x13f   : > { %v414_v32 = vpop.xlane.xlu1 %413  ;;  %v416_v40 = vpop.xlane.xlu0 %415 }
 0x140   : > { %1447 = vrsqrt.f32 %v430_v28  ;;  %v424_v35 = vmul.f32 0.0078125, %v414_v32  ;;  %v425_v47 = vmul.f32 0.0078125, %v416_v40 }
 0x142   : > { %v1442_v36 = vpop.eup %1441  ;;  %v432_v38 = vadd.f32 1e-06, %v424_v35  ;;  %v433_v55 = vadd.f32 1e-06, %v425_v47 }
 0x143   : > { %v418_v43 = vpop.xlane.xlu1 %417  ;;  %v443_v44 = vmul.f32 %v1442_v36, %v1618_v18 }
 0x144   : > { %1449 = vrsqrt.f32 %v432_v38  ;;  %v426_v45 = vmul.f32 0.0078125, %v418_v43 }
 0x145   : > { %1451 = vrsqrt.f32 %v431_v37  ;;  %v459_v49 = vmul.f32 %v457_v39, %v443_v44 }
 0x146   : > { %v1444_v46 = vpop.eup %1443  ;;  %v434_v51 = vadd.f32 1e-06, %v426_v45 }
 0x147   : > { %v444_v48 = vmul.f32 %v1444_v46, %v1624_v25  ;;  %v1446_v50 = vpop.eup %1445  ;;  %v474_v56 = vadd.f32 %v1331_v52, %v459_v49 }
 0x148   : > { %v445_v57 = vmul.f32 %v1446_v50, %v1620_v19  ;;  %1453 = vrsqrt.f32 %v434_v51 }
 0x149   : > { %v460_v53 = vmul.f32 %v457_v39, %v444_v48  ;;  %1455 = vrsqrt.f32 %v433_v55 }
 0x14a   : > { %v1448_v54 = vpop.eup %1447  ;;  %v461_v25 = vmul.f32 %v457_v39, %v445_v57 }
 0x14b   : > { %v475_v18 = vadd.f32 %v1331_v52, %v460_v53  ;;  %v446_v58 = vmul.f32 %v1448_v54, %v1626_v26 }
 0x14c   : > { %v476_v1 = vadd.f32 %v1331_v52, %v461_v25 }
 0x14d   : > { %v482_v59 = vpack.c.bf16 %v475_v18, %v474_v56  ;;  %v462_v60 = vmul.f32 %v457_v39, %v446_v58 }
 0x14e   : > { %v1450_v61 = vpop.eup %1449 }
 0x14f   : > { %733 = vmatmul.mubr.bf16.vlgmr.msra.gmra.mrb[0].mxu0 %v482_v59  ;;  %806 = vmatmul.mubr.bf16.vlgmr.msra.gmra.mrb[0].mxu1 %v482_v59  ;;  %v1452_v62 = vpop.eup %1451  ;;  %v477_v63 = vadd.f32 %v1331_v52, %v462_v60  ;;  %v448_v0 = vmul.f32 %v1450_v61, %v1634_v34 }
 0x150   : > { %742 = vmatprep.mubr.bf16.mxu0 %v1545_v8  ;;  %815 = vmatprep.mubr.bf16.mxu1 %v1545_v8  ;;  %v447_v19 = vmul.f32 %v1452_v62, %v1632_v33 }
 0x151   : > { %v483_v26 = vpack.c.bf16 %v477_v63, %v476_v1  ;;  %v464_v2 = vmul.f32 %v457_v39, %v448_v0 }
 0x152   : > { %v1454_v3 = vpop.eup %1453  ;;  %v463_v4 = vmul.f32 %v457_v39, %v447_v19 }
 0x153   : > { %v1456_v5 = vpop.eup %1455  ;;  %v479_v6 = vadd.f32 %v1331_v52, %v464_v2  ;;  %v450_v7 = vmul.f32 %v1454_v3, %v1642_v42  ;;  %v526_v42 = vsub.s32 1, %v1734_v21 }
 0x154   : > { %v478_v9 = vadd.f32 %v1331_v52, %v463_v4  ;;  %v449_v34 = vmul.f32 %v1456_v5, %v1640_v41  ;;  %v518_v41 = vld [vmem:[%s2125_s4] sm:$0xf] }
 0x155   : > { %v466_v11 = vmul.f32 %v457_v39, %v450_v7  ;;  %v1765_v17 = vrot.slane %v518_v41, %v456_v31  ;;  %v1769_v20 = vrot.slane %v518_v41, %v526_v42  ;;  %v1771_v22 = vrot.slane %v518_v41, %v534_v16 }
 0x156   : > { %v484_v10 = vpack.c.bf16 %v479_v6, %v478_v9  ;;  %v465_v33 = vmul.f32 %v457_v39, %v449_v34 }
 0x157   : > { %743 = vmatmul.mubr.bf16.gmra.mrb[4].mxu0 %v483_v26  ;;  %816 = vmatmul.mubr.bf16.gmra.mrb[4].mxu1 %v483_v26  ;;  %v481_v12 = vadd.f32 %v1331_v52, %v466_v11 }
 0x158   : > { %752 = vmatprep.mubr.bf16.mxu0 %v1545_v8  ;;  %825 = vmatprep.mubr.bf16.mxu1 %v1545_v8  ;;  %v480_v13 = vadd.f32 %v1331_v52, %v465_v33 }
 0x15a   : > { %v485_v14 = vpack.c.bf16 %v481_v12, %v480_v13 }
 0x15f   : > { %753 = vmatmul.mubr.bf16.gmra.mrb[8].mxu0 %v484_v10  ;;  %826 = vmatmul.mubr.bf16.gmra.mrb[8].mxu1 %v484_v10 }
 0x160   : > { %762 = vmatprep.mubr.bf16.mxu0 %v1545_v8  ;;  %835 = vmatprep.mubr.bf16.mxu1 %v1545_v8  ;;  %v1767_v8 = vrot.slane %v518_v41, %v530_v15 }
 0x167   : > { %763 = vmatmul.mubr.bf16.gmra.mrb[12].mxu0 %v485_v14  ;;  %836 = vmatmul.mubr.bf16.gmra.mrb[12].mxu1 %v485_v14 }
 0x222   : > { %v734_v23 = vpop.f32.mrb[0].mxu0  ;;  %v807_v24 = vpop.f32.mrb[0].mxu1 }
 0x223   : > { %v735_v27 = vadd.f32 %v734_v23, %v1765_v17  ;;  %v808_v28 = vadd.f32 %v807_v24, %v1767_v8  ;;  %v736_v29 = vpop.f32.mrb[1].mxu0  ;;  %v809_v30 = vpop.f32.mrb[1].mxu1 }
 0x224   : > { %v1776_v32 = vadd.f32 %v736_v29, %v1769_v20  ;;  %v1779_v21 = vadd.f32 %v809_v30, %v1771_v22  ;;  %v738_v31 = vpop.f32.mrb[2].mxu0  ;;  %v811_v35 = vpop.f32.mrb[2].mxu1 }
 0x225   : > { %v878_v36 = vmul.f32 0.044715, %v735_v27  ;;  %v880_v37 = vmul.f32 0.044715, %v808_v28  ;;  %v1784_v44 = vadd.f32 %v738_v31, %v1765_v17  ;;  %v1787_v45 = vadd.f32 %v811_v35, %v1767_v8  ;;  %v740_v46 = vpop.f32.mrb[3].mxu0  ;;  %v813_v47 = vpop.f32.mrb[3].mxu1 }
 0x226   : > { %v879_v38 = vmul.f32 0.044715, %v1776_v32  ;;  %v881_v39 = vmul.f32 0.044715, %v1779_v21  ;;  %v1792_v50 = vadd.f32 %v740_v46, %v1769_v20  ;;  %v1800_v61 = vadd.f32 %v813_v47, %v1771_v22 }
 0x227   : > { %v910_v40 = vmul.f32 %v878_v36, %v735_v27  ;;  %v912_v43 = vmul.f32 %v880_v37, %v808_v28  ;;  %v882_v53 = vmul.f32 0.044715, %v1784_v44  ;;  %v884_v56 = vmul.f32 0.044715, %v1787_v45 }
 0x228   : > { %v911_v48 = vmul.f32 %v879_v38, %v1776_v32  ;;  %v913_v49 = vmul.f32 %v881_v39, %v1779_v21  ;;  %v883_v19 = vmul.f32 0.044715, %v1792_v50  ;;  %v1808_v3 = vmul.f32 0.5, %v735_v27 }
 0x229   : > { %v942_v51 = vmul.f32 %v910_v40, %v735_v27  ;;  %v944_v52 = vmul.f32 %v912_v43, %v808_v28  ;;  %v914_v60 = vmul.f32 %v882_v53, %v1784_v44  ;;  %v916_v1 = vmul.f32 %v884_v56, %v1787_v45 }
 0x22a   : > { %v943_v54 = vmul.f32 %v911_v48, %v1776_v32  ;;  %v945_v55 = vmul.f32 %v913_v49, %v1779_v21  ;;  %v744_v18 = vpop.f32.mrb[4].mxu0  ;;  %v817_v57 = vpop.f32.mrb[4].mxu1  ;;  %v915_v11 = vmul.f32 %v883_v19, %v1792_v50  ;;  %v885_v13 = vmul.f32 0.044715, %v1800_v61 }
 0x22b   : > { %v974_v58 = vadd.f32 %v942_v51, %v735_v27  ;;  %v976_v59 = vadd.f32 %v944_v52, %v808_v28  ;;  %v746_v25 = vpop.f32.mrb[5].mxu0  ;;  %v819_v62 = vpop.f32.mrb[5].mxu1  ;;  %v946_v6 = vmul.f32 %v914_v60, %v1784_v44  ;;  %v948_v10 = vmul.f32 %v916_v1, %v1787_v45 }
 0x22c   : > { %v975_v63 = vadd.f32 %v943_v54, %v1776_v32  ;;  %v977_v0 = vadd.f32 %v945_v55, %v1779_v21  ;;  %v748_v26 = vpop.f32.mrb[6].mxu0  ;;  %v1806_v2 = vpop.f32.mrb[6].mxu1  ;;  %v1820_v14 = vadd.f32 %v744_v18, %v1765_v17  ;;  %v947_v41 = vmul.f32 %v915_v11, %v1792_v50 }
 0x22d   : > { %v1006_v4 = vmul.f32 0.7978846, %v974_v58  ;;  %v1008_v5 = vmul.f32 0.7978846, %v976_v59  ;;  %v1811_v7 = vpop.f32.mrb[7].mxu0  ;;  %v1815_v33 = vpop.f32.mrb[7].mxu1  ;;  %v978_v12 = vadd.f32 %v946_v6, %v1784_v44  ;;  %v980_v15 = vadd.f32 %v948_v10, %v1787_v45 }
 0x22e   : > { %v1007_v9 = vmul.f32 0.7978846, %v975_v63  ;;  %v1009_v34 = vmul.f32 0.7978846, %v977_v0  ;;  %v1825_v42 = vadd.f32 %v817_v57, %v1767_v8  ;;  %v1827_v16 = vmul.f32 0.5, %v808_v28 }
 0x22f   : > { %1457 = vtanh.f32 %v1006_v4  ;;  %v1010_v23 = vmul.f32 0.7978846, %v978_v12  ;;  %v917_v24 = vmul.f32 %v885_v13, %v1800_v61  ;;  %v1012_v27 = vmul.f32 0.7978846, %v980_v15 }
 0x230   : > { %1459 = vtanh.f32 %v1008_v5  ;;  %v979_v29 = vadd.f32 %v947_v41, %v1792_v50  ;;  %v886_v30 = vmul.f32 0.044715, %v1820_v14  ;;  %v1837_v36 = vmul.f32 0.5, %v1776_v32 }
 0x231   : > { %1461 = vtanh.f32 %v1007_v9  ;;  %v949_v28 = vmul.f32 %v917_v24, %v1800_v61  ;;  %v888_v37 = vmul.f32 0.044715, %v1825_v42  ;;  %v1847_v46 = vadd.f32 %v746_v25, %v1769_v20 }
 0x232   : > { %1463 = vtanh.f32 %v1009_v34  ;;  %v1832_v31 = vpop.f32.mrb[8].mxu0  ;;  %v1834_v35 = vpop.f32.mrb[8].mxu1  ;;  %v1011_v40 = vmul.f32 0.7978846, %v979_v29  ;;  %v918_v43 = vmul.f32 %v886_v30, %v1820_v14  ;;  %v1856_v51 = vadd.f32 %v819_v62, %v1771_v22 }
 0x233   : > { %1465 = vtanh.f32 %v1010_v23  ;;  %v1841_v38 = vpop.f32.mrb[9].mxu0  ;;  %v1843_v39 = vpop.f32.mrb[9].mxu1  ;;  %v981_v48 = vadd.f32 %v949_v28, %v1800_v61  ;;  %v920_v49 = vmul.f32 %v888_v37, %v1825_v42  ;;  %v1859_v52 = vadd.f32 %v748_v26, %v1765_v17 }
 0x234   : > { %1467 = vtanh.f32 %v1012_v27  ;;  %v1849_v47 = vpop.f32.mrb[10].mxu0  ;;  %v1851_v32 = vpop.f32.mrb[10].mxu1  ;;  %v849_v55 = vmul.f32 0.5, %v1779_v21  ;;  %v950_v56 = vmul.f32 %v918_v43, %v1820_v14  ;;  %v887_v18 = vmul.f32 0.044715, %v1847_v46 }
 0x235   : > { %v1861_v53 = vpop.f32.mrb[11].mxu0  ;;  %v1863_v54 = vpop.f32.mrb[11].mxu1  ;;  %1469 = vtanh.f32 %v1011_v40  ;;  %v850_v57 = vmul.f32 0.5, %v1784_v44  ;;  %v1013_v58 = vmul.f32 0.7978846, %v981_v48  ;;  %v952_v59 = vmul.f32 %v920_v49, %v1825_v42 }
 0x236   : > { %v889_v60 = vmul.f32 0.044715, %v1856_v51  ;;  %v852_v25 = vmul.f32 0.5, %v1787_v45  ;;  %v982_v62 = vadd.f32 %v950_v56, %v1820_v14  ;;  %v919_v63 = vmul.f32 %v887_v18, %v1847_v46 }
 0x237   : > { %v890_v21 = vmul.f32 0.044715, %v1859_v52  ;;  %v851_v1 = vmul.f32 0.5, %v1792_v50  ;;  %1471 = vtanh.f32 %v1013_v58  ;;  %v984_v44 = vadd.f32 %v952_v59, %v1825_v42 }
 0x238   : > { %v921_v19 = vmul.f32 %v889_v60, %v1856_v51  ;;  %v1014_v5 = vmul.f32 0.7978846, %v982_v62  ;;  %v951_v6 = vmul.f32 %v919_v63, %v1847_v46  ;;  %v1893_v13 = vadd.f32 %v1806_v2, %v1767_v8 }
 0x239   : > { %v1458_v0 = vpop.eup %1457  ;;  %v922_v45 = vmul.f32 %v890_v21, %v1859_v52  ;;  %v1016_v11 = vmul.f32 0.7978846, %v984_v44 }
 0x23a   : > { %v1460_v26 = vpop.eup %1459  ;;  %v1070_v4 = vadd.f32 1.0, %v1458_v0  ;;  %v1881_v9 = vpop.f32.mrb[12].mxu0  ;;  %v953_v12 = vmul.f32 %v921_v19, %v1856_v51  ;;  %1473 = vtanh.f32 %v1014_v5  ;;  %v983_v29 = vadd.f32 %v951_v6, %v1847_v46 }
 0x23b   : > { %v1883_v34 = vpop.f32.mrb[12].mxu1  ;;  %v1462_v10 = vpop.eup %1461  ;;  %v1072_v50 = vadd.f32 1.0, %v1460_v26  ;;  %1475 = vtanh.f32 %v1016_v11  ;;  %v954_v59 = vmul.f32 %v922_v45, %v1859_v52  ;;  %v892_v63 = vmul.f32 0.044715, %v1893_v13 }
 0x23c   : > { %v1895_v15 = vpop.f32.mrb[13].mxu0  ;;  %v1897_v41 = vpop.f32.mrb[13].mxu1  ;;  %v1102_v24 = vmul.f32 %v1070_v4, %v1808_v3  ;;  %v1071_v27 = vadd.f32 1.0, %v1462_v10  ;;  %v985_v43 = vadd.f32 %v953_v12, %v1856_v51  ;;  %v1015_v58 = vmul.f32 0.7978846, %v983_v29 }
 0x23d   : > { %v1464_v23 = vpop.eup %1463  ;;  %v1901_v30 = vpop.f32.mrb[14].mxu0  ;;  %v1104_v2 = vmul.f32 %v1072_v50, %v1827_v16  ;;  %v986_v44 = vadd.f32 %v954_v59, %v1859_v52  ;;  %v853_v4 = vmul.f32 0.5, %v1800_v61  ;;  %v1929_v6 = vadd.f32 %v1815_v33, %v1771_v22 }
 0x23e   : > { %v1903_v28 = vpop.f32.mrb[14].mxu1  ;;  %v1466_v37 = vpop.eup %1465  ;;  %v1073_v40 = vadd.f32 1.0, %v1464_v23  ;;  %1134 = vst [vmem:[%s1888_s12] sm:$0xff] %v1102_v24  ;;  %v1103_v56 = vmul.f32 %v1071_v27, %v1837_v36  ;;  %v1017_v62 = vmul.f32 0.7978846, %v985_v43  ;;  %1477 = vtanh.f32 %v1015_v58 }
 0x23f   : > { %v1907_v48 = vpop.f32.mrb[15].mxu0  ;;  %v1909_v3 = vpop.f32.mrb[15].mxu1  ;;  %v1074_v18 = vadd.f32 1.0, %v1466_v37  ;;  %1136 = vst [vmem:[%s1888_s12 + $0x10] sm:$0xff] %v1104_v2  ;;  %v1920_v36 = vadd.f32 %v1811_v7, %v1769_v20  ;;  %v1018_v5 = vmul.f32 0.7978846, %v986_v44  ;;  %v1935_v10 = vadd.f32 %v1832_v31, %v1765_v17 }
 0x240   : > { %v1468_v49 = vpop.eup %1467  ;;  %v1105_v16 = vmul.f32 %v1073_v40, %v849_v55  ;;  %1135 = vst [vmem:[%s1888_s12 + $0x8] sm:$0xff] %v1103_v56  ;;  %1479 = vtanh.f32 %v1017_v62  ;;  %v924_v55 = vmul.f32 %v892_v63, %v1893_v13  ;;  %v1939_v50 = vadd.f32 %v1834_v35, %v1767_v8 }
 0x241   : > { %v1076_v60 = vadd.f32 1.0, %v1468_v49  ;;  %v1470_v21 = vpop.eup %1469  ;;  %v1106_v0 = vmul.f32 %v1074_v18, %v850_v57  ;;  %v891_v57 = vmul.f32 0.044715, %v1920_v36  ;;  %v854_v11 = vmul.f32 0.5, %v1820_v14 }
 0x242   : > { %1137 = vst [vmem:[%s1888_s12 + $0x18] sm:$0xff] %v1105_v16  ;;  %v1075_v26 = vadd.f32 1.0, %v1470_v21  ;;  %v1472_v45 = vpop.eup %1471  ;;  %1481 = vtanh.f32 %v1018_v5  ;;  %v893_v23 = vmul.f32 0.044715, %v1929_v6  ;;  %v894_v31 = vmul.f32 0.044715, %v1935_v10 }
 0x243   : > { %v1108_v19 = vmul.f32 %v1076_v60, %v852_v25  ;;  %1138 = vst [vmem:[%s1888_s12 + $0x20] sm:$0xff] %v1106_v0  ;;  %v956_v25 = vmul.f32 %v924_v55, %v1893_v13  ;;  %v1077_v61 = vadd.f32 1.0, %v1472_v45  ;;  %v923_v33 = vmul.f32 %v891_v57, %v1920_v36 }
 0x244   : > { %v1107_v7 = vmul.f32 %v1075_v26, %v851_v1  ;;  %v856_v1 = vmul.f32 0.5, %v1825_v42  ;;  %v1474_v24 = vpop.eup %1473  ;;  %v855_v35 = vmul.f32 0.5, %v1847_v46  ;;  %v896_v14 = vmul.f32 0.044715, %v1939_v50 }
 0x245   : > { %1140 = vst [vmem:[%s1888_s12 + $0x30] sm:$0xff] %v1108_v19  ;;  %v988_v12 = vadd.f32 %v956_v25, %v1893_v13  ;;  %v1109_v27 = vmul.f32 %v1077_v61, %v853_v4  ;;  %v955_v29 = vmul.f32 %v923_v33, %v1920_v36  ;;  %v1476_v37 = vpop.eup %1475  ;;  %v1078_v2 = vadd.f32 1.0, %v1474_v24 }
 0x246   : > { %1139 = vst [vmem:[%s1888_s12 + $0x28] sm:$0xff] %v1107_v7  ;;  %v925_v43 = vmul.f32 %v893_v23, %v1929_v6  ;;  %v926_v42 = vmul.f32 %v894_v31, %v1935_v10  ;;  %v1080_v49 = vadd.f32 1.0, %v1476_v37  ;;  %v928_v18 = vmul.f32 %v896_v14, %v1939_v50 }
 0x247   : > { %v1020_v40 = vmul.f32 0.7978846, %v988_v12  ;;  %1141 = vst [vmem:[%s1888_s12 + $0x38] sm:$0xff] %v1109_v27  ;;  %v987_v56 = vadd.f32 %v955_v29, %v1920_v36  ;;  %v1958_v46 = vadd.f32 %v1841_v38, %v1769_v20  ;;  %v1110_v58 = vmul.f32 %v1078_v2, %v854_v11 }
 0x248   : > { %v957_v59 = vmul.f32 %v925_v43, %v1929_v6  ;;  %v958_v16 = vmul.f32 %v926_v42, %v1935_v10  ;;  %v1478_v60 = vpop.eup %1477  ;;  %v1112_v62 = vmul.f32 %v1080_v49, %v856_v1  ;;  %v857_v63 = vmul.f32 0.5, %v1856_v51 }
 0x249   : > { %1483 = vtanh.f32 %v1020_v40  ;;  %v1019_v21 = vmul.f32 0.7978846, %v987_v56  ;;  %v960_v0 = vmul.f32 %v928_v18, %v1939_v50  ;;  %1142 = vst [vmem:[%s1888_s12 + $0x40] sm:$0xff] %v1110_v58  ;;  %v1079_v19 = vadd.f32 1.0, %v1478_v60 }
 0x24a   : > { %v1480_v44 = vpop.eup %1479  ;;  %v989_v38 = vadd.f32 %v957_v59, %v1929_v6  ;;  %v990_v26 = vadd.f32 %v958_v16, %v1935_v10  ;;  %v895_v55 = vmul.f32 0.044715, %v1958_v46  ;;  %1144 = vst [vmem:[%s1888_s12 + $0x50] sm:$0xff] %v1112_v62  ;;  %v1972_v51 = vadd.f32 %v1843_v39, %v1771_v22 }
 0x24b   : > { %v1081_v4 = vadd.f32 1.0, %v1480_v44  ;;  %1485 = vtanh.f32 %v1019_v21  ;;  %v992_v5 = vadd.f32 %v960_v0, %v1939_v50  ;;  %v1111_v57 = vmul.f32 %v1079_v19, %v855_v35 }
 0x24c   : > { %v1021_v45 = vmul.f32 0.7978846, %v989_v38  ;;  %v1022_v7 = vmul.f32 0.7978846, %v990_v26  ;;  %v927_v25 = vmul.f32 %v895_v55, %v1958_v46  ;;  %v1482_v61 = vpop.eup %1481  ;;  %v858_v33 = vmul.f32 0.5, %v1859_v52 }
 0x24d   : > { %v1113_v11 = vmul.f32 %v1081_v4, %v857_v63  ;;  %v1024_v1 = vmul.f32 0.7978846, %v992_v5  ;;  %v897_v12 = vmul.f32 0.044715, %v1972_v51  ;;  %1143 = vst [vmem:[%s1888_s12 + $0x48] sm:$0xff] %v1111_v57  ;;  %v1082_v23 = vadd.f32 1.0, %v1482_v61 }
 0x24e   : > { %1487 = vtanh.f32 %v1021_v45  ;;  %v959_v31 = vmul.f32 %v927_v25, %v1958_v46  ;;  %v1981_v39 = vadd.f32 %v1849_v47, %v1765_v17  ;;  %v1987_v52 = vadd.f32 %v1851_v32, %v1767_v8 }
 0x24f   : > { %1145 = vst [vmem:[%s1888_s12 + $0x58] sm:$0xff] %v1113_v11  ;;  %1489 = vtanh.f32 %v1022_v7  ;;  %v929_v24 = vmul.f32 %v897_v12, %v1972_v51  ;;  %v1991_v27 = vadd.f32 %v1861_v53, %v1769_v20  ;;  %v1114_v35 = vmul.f32 %v1082_v23, %v858_v33 }
 0x250   : > { %v860_v29 = vmul.f32 0.5, %v1893_v13  ;;  %1491 = vtanh.f32 %v1024_v1  ;;  %v991_v14 = vadd.f32 %v959_v31, %v1958_v46  ;;  %v859_v47 = vmul.f32 0.5, %v1920_v36 }
 0x251   : > { %v961_v37 = vmul.f32 %v929_v24, %v1972_v51  ;;  %v898_v2 = vmul.f32 0.044715, %v1981_v39  ;;  %v900_v40 = vmul.f32 0.044715, %v1987_v52  ;;  %1146 = vst [vmem:[%s1888_s12 + $0x60] sm:$0xff] %v1114_v35  ;;  %v861_v43 = vmul.f32 0.5, %v1929_v6 }
 0x252   : > { %v1023_v53 = vmul.f32 0.7978846, %v991_v14  ;;  %v899_v42 = vmul.f32 0.044715, %v1991_v27  ;;  %v2004_v13 = vadd.f32 %v1863_v54, %v1771_v22  ;;  %v862_v58 = vmul.f32 0.5, %v1935_v10 }
 0x253   : > { %v1484_v32 = vpop.eup %1483  ;;  %v993_v36 = vadd.f32 %v961_v37, %v1972_v51  ;;  %v930_v56 = vmul.f32 %v898_v2, %v1981_v39  ;;  %v932_v18 = vmul.f32 %v900_v40, %v1987_v52  ;;  %v2018_v10 = vadd.f32 %v1881_v9, %v1765_v17 }
 0x254   : > { %v1084_v49 = vadd.f32 1.0, %v1484_v32  ;;  %1493 = vtanh.f32 %v1023_v53  ;;  %v931_v6 = vmul.f32 %v899_v42, %v1991_v27  ;;  %v901_v59 = vmul.f32 0.044715, %v2004_v13 }
 0x255   : > { %v1486_v16 = vpop.eup %1485  ;;  %v1025_v62 = vmul.f32 0.7978846, %v993_v36  ;;  %v962_v54 = vmul.f32 %v930_v56, %v1981_v39  ;;  %v964_v63 = vmul.f32 %v932_v18, %v1987_v52  ;;  %v2025_v26 = vadd.f32 %v1883_v34, %v1767_v8 }
 0x256   : > { %v1116_v60 = vmul.f32 %v1084_v49, %v860_v29  ;;  %v1083_v21 = vadd.f32 1.0, %v1486_v16  ;;  %v963_v0 = vmul.f32 %v931_v6, %v1991_v27  ;;  %v933_v44 = vmul.f32 %v901_v59, %v2004_v13 }
 0x257   : > { %1495 = vtanh.f32 %v1025_v62  ;;  %v994_v19 = vadd.f32 %v962_v54, %v1981_v39  ;;  %v996_v38 = vadd.f32 %v964_v63, %v1987_v52  ;;  %v864_v5 = vmul.f32 0.5, %v1939_v50 }
 0x258   : > { %1148 = vst [vmem:[%s1888_s12 + $0x70] sm:$0xff] %v1116_v60  ;;  %v1488_v55 = vpop.eup %1487  ;;  %v1115_v4 = vmul.f32 %v1083_v21, %v859_v47  ;;  %v995_v57 = vadd.f32 %v963_v0, %v1991_v27  ;;  %v965_v9 = vmul.f32 %v933_v44, %v2004_v13  ;;  %v863_v25 = vmul.f32 0.5, %v1958_v46 }
 0x259   : > { %v1490_v45 = vpop.eup %1489  ;;  %v1085_v7 = vadd.f32 1.0, %v1488_v55  ;;  %v1026_v61 = vmul.f32 0.7978846, %v994_v19  ;;  %v1028_v11 = vmul.f32 0.7978846, %v996_v38  ;;  %v2040_v37 = vadd.f32 %v1895_v15, %v1769_v20 }
 0x25a   : > { %v1492_v33 = vpop.eup %1491  ;;  %1147 = vst [vmem:[%s1888_s12 + $0x68] sm:$0xff] %v1115_v4  ;;  %v1086_v1 = vadd.f32 1.0, %v1490_v45  ;;  %v1027_v34 = vmul.f32 0.7978846, %v995_v57  ;;  %v997_v12 = vadd.f32 %v965_v9, %v2004_v13  ;;  %v902_v50 = vmul.f32 0.044715, %v2018_v10 }
 0x25b   : > { %v1117_v23 = vmul.f32 %v1085_v7, %v861_v43  ;;  %v1088_v31 = vadd.f32 1.0, %v1492_v33  ;;  %1497 = vtanh.f32 %v1026_v61  ;;  %v904_v24 = vmul.f32 0.044715, %v2025_v26 }
 0x25c   : > { %v1118_v35 = vmul.f32 %v1086_v1, %v862_v58  ;;  %1499 = vtanh.f32 %v1028_v11  ;;  %v1029_v46 = vmul.f32 0.7978846, %v997_v12  ;;  %v934_v29 = vmul.f32 %v902_v50, %v2018_v10 }
 0x25d   : > { %1149 = vst [vmem:[%s1888_s12 + $0x78] sm:$0xff] %v1117_v23  ;;  %v1120_v14 = vmul.f32 %v1088_v31, %v864_v5  ;;  %1501 = vtanh.f32 %v1027_v34  ;;  %v936_v47 = vmul.f32 %v904_v24, %v2025_v26  ;;  %v2046_v32 = vadd.f32 %v1897_v41, %v1771_v22 }
 0x25e   : > { %v1494_v2 = vpop.eup %1493  ;;  %1150 = vst [vmem:[%s1888_s12 + $0x80] sm:$0xff] %v1118_v35  ;;  %1503 = vtanh.f32 %v1029_v46  ;;  %v966_v40 = vmul.f32 %v934_v29, %v2018_v10  ;;  %v2050_v43 = vadd.f32 %v1901_v30, %v1765_v17  ;;  %v865_v42 = vmul.f32 0.5, %v1972_v51 }
 0x25f   : > { %1152 = vst [vmem:[%s1888_s12 + $0x90] sm:$0xff] %v1120_v14  ;;  %v1087_v53 = vadd.f32 1.0, %v1494_v2  ;;  %v968_v15 = vmul.f32 %v936_v47, %v2025_v26  ;;  %v903_v49 = vmul.f32 0.044715, %v2040_v37  ;;  %v866_v36 = vmul.f32 0.5, %v1981_v39 }
 0x260   : > { %v868_v56 = vmul.f32 0.5, %v1987_v52  ;;  %v998_v41 = vadd.f32 %v966_v40, %v2018_v10  ;;  %v905_v18 = vmul.f32 0.044715, %v2046_v32  ;;  %v906_v51 = vmul.f32 0.044715, %v2050_v43 }
 0x261   : > { %v1496_v58 = vpop.eup %1495  ;;  %v1119_v17 = vmul.f32 %v1087_v53, %v863_v25  ;;  %v1000_v30 = vadd.f32 %v968_v15, %v2025_v26  ;;  %v935_v6 = vmul.f32 %v903_v49, %v2040_v37  ;;  %v2066_v39 = vadd.f32 %v1903_v28, %v1767_v8 }
 0x262   : > { %v1089_v59 = vadd.f32 1.0, %v1496_v58  ;;  %v1030_v16 = vmul.f32 0.7978846, %v998_v41  ;;  %v937_v60 = vmul.f32 %v905_v18, %v2046_v32  ;;  %v938_v54 = vmul.f32 %v906_v51, %v2050_v43 }
 0x263   : > { %1151 = vst [vmem:[%s1888_s12 + $0x88] sm:$0xff] %v1119_v17  ;;  %v1032_v52 = vmul.f32 0.7978846, %v1000_v30  ;;  %v967_v62 = vmul.f32 %v935_v6, %v2040_v37  ;;  %v2073_v63 = vadd.f32 %v1907_v48, %v1769_v20  ;;  %v867_v0 = vmul.f32 0.5, %v1991_v27 }
 0x264   : > { %v1121_v21 = vmul.f32 %v1089_v59, %v865_v42  ;;  %1505 = vtanh.f32 %v1030_v16  ;;  %v969_v44 = vmul.f32 %v937_v60, %v2046_v32  ;;  %v970_v28 = vmul.f32 %v938_v54, %v2050_v43 }
 0x265   : > { %v1498_v19 = vpop.eup %1497  ;;  %1507 = vtanh.f32 %v1032_v52  ;;  %v999_v8 = vadd.f32 %v967_v62, %v2040_v37  ;;  %v908_v38 = vmul.f32 0.044715, %v2066_v39  ;;  %v869_v20 = vmul.f32 0.5, %v2004_v13 }
 0x266   : > { %v1500_v55 = vpop.eup %1499  ;;  %1153 = vst [vmem:[%s1888_s12 + $0x98] sm:$0xff] %v1121_v21  ;;  %v1090_v4 = vadd.f32 1.0, %v1498_v19  ;;  %v1001_v48 = vadd.f32 %v969_v44, %v2046_v32  ;;  %v907_v27 = vmul.f32 0.044715, %v2073_v63  ;;  %v1002_v45 = vadd.f32 %v970_v28, %v2050_v43 }
 0x267   : > { %v1502_v5 = vpop.eup %1501  ;;  %v1092_v57 = vadd.f32 1.0, %v1500_v55  ;;  %v1031_v9 = vmul.f32 0.7978846, %v999_v8  ;;  %v940_v7 = vmul.f32 %v908_v38, %v2066_v39  ;;  %v844_v35 = vadd.f32 %v1909_v3, %v1771_v22 }
 0x268   : > { %v1504_v25 = vpop.eup %1503  ;;  %v1122_v61 = vmul.f32 %v1090_v4, %v866_v36  ;;  %v1091_v11 = vadd.f32 1.0, %v1502_v5  ;;  %v1033_v33 = vmul.f32 0.7978846, %v1001_v48  ;;  %v939_v13 = vmul.f32 %v907_v27, %v2073_v63 }
 0x269   : > { %v1124_v1 = vmul.f32 %v1092_v57, %v868_v56  ;;  %v1093_v34 = vadd.f32 1.0, %v1504_v25  ;;  %1509 = vtanh.f32 %v1031_v9  ;;  %v1034_v12 = vmul.f32 0.7978846, %v1002_v45 }
 0x26a   : > { %1154 = vst [vmem:[%s1888_s12 + $0xa0] sm:$0xff] %v1122_v61  ;;  %v1123_v50 = vmul.f32 %v1091_v11, %v867_v0  ;;  %1511 = vtanh.f32 %v1033_v33  ;;  %v972_v23 = vmul.f32 %v940_v7, %v2066_v39  ;;  %v971_v31 = vmul.f32 %v939_v13, %v2073_v63 }
 0x26b   : > { %1156 = vst [vmem:[%s1888_s12 + $0xb0] sm:$0xff] %v1124_v1  ;;  %v1125_v24 = vmul.f32 %v1093_v34, %v869_v20  ;;  %1513 = vtanh.f32 %v1034_v12  ;;  %v909_v14 = vmul.f32 0.044715, %v844_v35  ;;  %v870_v42 = vmul.f32 0.5, %v2018_v10 }
 0x26c   : > { %1155 = vst [vmem:[%s1888_s12 + $0xa8] sm:$0xff] %v1123_v50  ;;  %v1004_v46 = vadd.f32 %v972_v23, %v2066_v39  ;;  %v1003_v29 = vadd.f32 %v971_v31, %v2073_v63  ;;  %v872_v36 = vmul.f32 0.5, %v2025_v26  ;;  %v871_v10 = vmul.f32 0.5, %v2040_v37 }
 0x26d   : > { %1157 = vst [vmem:[%s1888_s12 + $0xb8] sm:$0xff] %v1125_v24  ;;  %v941_v49 = vmul.f32 %v909_v14, %v844_v35  ;;  %v873_v26 = vmul.f32 0.5, %v2046_v32  ;;  %v874_v60 = vmul.f32 0.5, %v2050_v43  ;;  %v876_v0 = vmul.f32 0.5, %v2066_v39 }
 0x26e   : > { %v1506_v47 = vpop.eup %1505  ;;  %v1036_v2 = vmul.f32 0.7978846, %v1004_v46  ;;  %v1035_v40 = vmul.f32 0.7978846, %v1003_v29  ;;  %v875_v44 = vmul.f32 0.5, %v2073_v63  ;;  %v877_v38 = vmul.f32 0.5, %v844_v35 }
 0x26f   : > { %v1508_v53 = vpop.eup %1507  ;;  %v1094_v15 = vadd.f32 1.0, %v1506_v47  ;;  %v973_v56 = vmul.f32 %v941_v49, %v844_v35 }
 0x270   : > { %v1096_v22 = vadd.f32 1.0, %v1508_v53  ;;  %1515 = vtanh.f32 %v1036_v2 }
 0x271   : > { %v1126_v3 = vmul.f32 %v1094_v15, %v870_v42  ;;  %1517 = vtanh.f32 %v1035_v40  ;;  %v1005_v58 = vadd.f32 %v973_v56, %v844_v35 }
 0x272   : > { %v1128_v41 = vmul.f32 %v1096_v22, %v872_v36 }
 0x273   : > { %v1510_v18 = vpop.eup %1509  ;;  %1158 = vst [vmem:[%s1888_s12 + $0xc0] sm:$0xff] %v1126_v3  ;;  %v1037_v59 = vmul.f32 0.7978846, %v1005_v58 }
 0x274   : > { %v1512_v17 = vpop.eup %1511  ;;  %1160 = vst [vmem:[%s1888_s12 + $0xd0] sm:$0xff] %v1128_v41  ;;  %v1095_v30 = vadd.f32 1.0, %v1510_v18 }
 0x275   : > { %v1514_v6 = vpop.eup %1513  ;;  %v1097_v51 = vadd.f32 1.0, %v1512_v17  ;;  %1519 = vtanh.f32 %v1037_v59 }
 0x276   : > { %v1127_v16 = vmul.f32 %v1095_v30, %v871_v10  ;;  %v1098_v52 = vadd.f32 1.0, %v1514_v6 }
 0x277   : > { %v1129_v62 = vmul.f32 %v1097_v51, %v873_v26 }
 0x278   : > { %1159 = vst [vmem:[%s1888_s12 + $0xc8] sm:$0xff] %v1127_v16  ;;  %v1130_v54 = vmul.f32 %v1098_v52, %v874_v60 }
 0x279   : > { %1161 = vst [vmem:[%s1888_s12 + $0xd8] sm:$0xff] %v1129_v62 }
 0x27a   : > { %v1516_v21 = vpop.eup %1515  ;;  %1162 = vst [vmem:[%s1888_s12 + $0xe0] sm:$0xff] %v1130_v54 }
 0x27b   : > { %v1518_v37 = vpop.eup %1517  ;;  %v1100_v32 = vadd.f32 1.0, %v1516_v21 }
 0x27c   : > { %v1099_v19 = vadd.f32 1.0, %v1518_v37 }
 0x27d   : > { %v1132_v8 = vmul.f32 %v1100_v32, %v876_v0 }
 0x27e   : > { %v1131_v43 = vmul.f32 %v1099_v19, %v875_v44 }
 0x27f   : > { %1164 = vst [vmem:[%s1888_s12 + $0xf0] sm:$0xff] %v1132_v8  ;;  %v1520_v28 = vpop.eup %1519 }
 0x280   : > { %1163 = vst [vmem:[%s1888_s12 + $0xe8] sm:$0xff] %v1131_v43  ;;  %v1101_v55 = vadd.f32 1.0, %v1520_v28 }
 0x282   : > { %v1133_v4 = vmul.f32 %v1101_v55, %v877_v38 }
 0x284   : > { %1165 = vst [vmem:[%s1888_s12 + $0xf8] sm:$0xff] %v1133_v4 }
 0x285 PF: > { %s15_s20 = sadd.s32 1, %s1543_s20   ;;  %s2127_s18 = smov %s1539_s19 }
 0x286   : > { %p12_p5 = scmp.ge.s32.totalorder %s15_s20, 4   ;;  %s2128_s19 = smov %s2130_s21 }
 0x288   :  { %14 = sbr.rel (!%p12_p5) target bundleno = 2 (0x2), region = 82 }

// kernel: dit_forward.27
= control target key start
LH: loop header
LB: loop body
LE: loop exit
PB: predicated region body
PF: predicated region fallthrough
CT: control target
= control target key end

     0   :  { %s940_s18 = smov 0   ;;  %s942_s19 = smov 0   ;;  %s1063_s0 = inlined_call_operand.vmem [shape: f32[2,64,128], index: 0, kind: input, shape index: {}]   ;;  %s1064_s1 = inlined_call_operand.vmem [shape: f32[2,1,128], index: 1, kind: input, shape index: {}]   ;;  %s1065_s2 = inlined_call_operand.vmem [shape: f32[2,1,128], index: 2, kind: input, shape index: {}]   ;;  %s1066_s3 = inlined_call_operand.vmem [shape: bf16[128,32], index: 3, kind: input, shape index: {}]   ;;  %s1067_s4 = inlined_call_operand.vmem [shape: f32[1,32], index: 4, kind: input, shape index: {}]   ;;  %s1068_s5 = inlined_call_operand.vmem [shape: f32[2,64,32], index: 5, kind: output, shape index: {}]  }
   0x1   :  { %s944_s20 = smov 0  }
   0x2 LB: > { %s34_s21 = sadd.s32 1, %s904_s19  ;;  %p767_p0 = scmp.ge.s32.totalorder %s908_s20, 1  ;;  %s908_s20 = sphi %s944_s20, %s15_s20   ;;  %s904_s19 = sphi %s942_s19, %s1070_s19   ;;  %s900_s18 = sphi %s940_s18, %s1069_s18  }
   0x3   : > { %p36_p1 = scmp.ge.s32.totalorder %s34_s21, 2  ;;  %p250_p2 = scmp.lt.s32.totalorder %s908_s20, 3 }
   0x5   : > { %s1072_s21 = smov (%p36_p1, %s34_s21), 0  ;;  %p251_p3 = pnand %p767_p0, %p250_p2 }
   0x6   : > { %p303_p4 = scmp.lt.s32.totalorder (!%p251_p3), %s900_s18, 1  ;;  %v862_v40 = vld [vmem:[%s1066_s3] sm:$0xff] (!%p251_p3)   ;;  %v863_v41 = vld [vmem:[%s1066_s3 + $0x8] sm:$0xff] (!%p251_p3)   ;;  %v864_v42 = vld [vmem:[%s1066_s3 + $0x10] sm:$0xff] (!%p251_p3)   ;;  %v439_v51 = vlaneseq (!%p251_p3)  ;;  %vm607_vm0 = vcmask (!%p251_p3), 261120  }
   0x7   : > { %254 = sbr.rel (%p251_p3) target bundleno = 565 (0x235), region = 40  ;;  %798 = vmatprep.subr.bf16.mxu0 (!%p251_p3), %v862_v40  ;;  %822 = vmatprep.subr.bf16.mxu1 (!%p251_p3), %v862_v40  ;;  %v865_v43 = vld [vmem:[%s1066_s3 + $0x18] sm:$0xff] (!%p251_p3)   ;;  %v866_v44 = vld [vmem:[%s1066_s3 + $0x20] sm:$0xff] (!%p251_p3)   ;;  %v867_v45 = vld [vmem:[%s1066_s3 + $0x28] sm:$0xff] (!%p251_p3)  }
   0x8   : > { %799 = vmatpush3.bf16.msra.mxu0 (!%p251_p3), %v862_v40  ;;  %830 = vmatpush3.bf16.msra.mxu1 (!%p251_p3), %v862_v40  ;;  %v868_v46 = vld [vmem:[%s1066_s3 + $0x30] sm:$0xff] (!%p251_p3)   ;;  %v869_v47 = vld [vmem:[%s1066_s3 + $0x38] sm:$0xff] (!%p251_p3)   ;;  %v440_v58 = vshrl.u32 (!%p251_p3), %v439_v51, 7 }
   0x9   : > { %800 = vmatprep.subr.bf16.mxu0 (!%p251_p3), %v863_v41  ;;  %823 = vmatprep.subr.bf16.mxu1 (!%p251_p3), %v863_v41 }
   0xc   : > { %801 = vmatpush3.bf16.msra.mxu0 (!%p251_p3), %v863_v41  ;;  %831 = vmatpush3.bf16.msra.mxu1 (!%p251_p3), %v863_v41 }
   0xd   : > { %802 = vmatprep.subr.bf16.mxu0 (!%p251_p3), %v864_v42  ;;  %824 = vmatprep.subr.bf16.mxu1 (!%p251_p3), %v864_v42 }
   0xe   : > { %s1074_s18 = smov (!%p303_p4, %s900_s18), 1 }
   0xf   : > { %s784_s22 = sshll.u32 %s1074_s18, 6  ;;  %s317_s24 = scalar_lea.vmem %s1065_s2, %s1074_s18 }
  0x10   : > { %s310_s25 = scalar_lea.vmem %s1063_s0, %s784_s22  ;;  %803 = vmatpush3.bf16.msra.mxu0 %v864_v42  ;;  %832 = vmatpush3.bf16.msra.mxu1 %v864_v42  ;;  %v436_v61 = vld [vmem:[%s317_s24] sm:$0x1]  ;;  %s314_s27 = scalar_lea.vmem %s1064_s1, %s1074_s18 }
  0x11   : > { %v339_v0 = vld [vmem:[%s310_s25] sm:$0xff]  ;;  %v340_v2 = vld [vmem:[%s310_s25 + $0x8] sm:$0xff]  ;;  %v341_v4 = vld [vmem:[%s310_s25 + $0x10] sm:$0xff]  ;;  %804 = vmatprep.subr.bf16.mxu0 %v865_v43  ;;  %825 = vmatprep.subr.bf16.mxu1 %v865_v43  ;;  %s336_s7 = scalar_lea.vmem %s1068_s5, %s784_s22 }
  0x12   : > { %v343_v1 = vld [vmem:[%s310_s25 + $0x20] sm:$0xff]  ;;  %347 = vadd.xlane.f32.xlu0 %v339_v0  ;;  %v344_v3 = vld [vmem:[%s310_s25 + $0x28] sm:$0xff]  ;;  %v342_v5 = vld [vmem:[%s310_s25 + $0x18] sm:$0xff] }
  0x13   : > { %355 = vadd.xlane.f32.xlu1 %v343_v1  ;;  %v345_v6 = vld [vmem:[%s310_s25 + $0x30] sm:$0xff]  ;;  %v346_v7 = vld [vmem:[%s310_s25 + $0x38] sm:$0xff] }
  0x14   : > { %805 = vmatpush3.bf16.msra.mxu0 %v865_v43  ;;  %833 = vmatpush3.bf16.msra.mxu1 %v865_v43 }
  0x15   : > { %806 = vmatprep.subr.bf16.mxu0 %v866_v44  ;;  %826 = vmatprep.subr.bf16.mxu1 %v866_v44 }
  0x16   : > { %349 = vadd.xlane.f32.xlu0 %v340_v2 }
  0x17   : > { %357 = vadd.xlane.f32.xlu1 %v344_v3 }
  0x18   : > { %807 = vmatpush3.bf16.msra.mxu0 %v866_v44  ;;  %834 = vmatpush3.bf16.msra.mxu1 %v866_v44 }
  0x19   : > { %808 = vmatprep.subr.bf16.mxu0 %v867_v45  ;;  %827 = vmatprep.subr.bf16.mxu1 %v867_v45 }
  0x1a   : > { %351 = vadd.xlane.f32.xlu0 %v341_v4 }
  0x1b   : > { %353 = vadd.xlane.f32.xlu1 %v342_v5 }
  0x1c   : > { %809 = vmatpush3.bf16.msra.mxu0 %v867_v45  ;;  %835 = vmatpush3.bf16.msra.mxu1 %v867_v45 }
  0x1d   : > { %810 = vmatprep.subr.bf16.mxu0 %v868_v46  ;;  %828 = vmatprep.subr.bf16.mxu1 %v868_v46 }
  0x1e   : > { %359 = vadd.xlane.f32.xlu0 %v345_v6 }
  0x1f   : > { %361 = vadd.xlane.f32.xlu1 %v346_v7 }
  0x20   : > { %811 = vmatpush3.bf16.msra.mxu0 %v868_v46  ;;  %836 = vmatpush3.bf16.msra.mxu1 %v868_v46 }
  0x21   : > { %812 = vmatprep.subr.bf16.mxu0 %v869_v47  ;;  %829 = vmatprep.subr.bf16.mxu1 %v869_v47 }
  0x24   : > { %813 = vmatpush3.bf16.msra.mxu0 %v869_v47  ;;  %837 = vmatpush3.bf16.msra.mxu1 %v869_v47 }
  0x9f   : > { %v348_v8 = vpop.xlane.xlu0 %347 }
  0xa0   : > { %v356_v9 = vpop.xlane.xlu1 %355  ;;  %v364_v10 = vmul.f32 0.0078125, %v348_v8 }
  0xa1   : > { %v368_v11 = vmul.f32 0.0078125, %v356_v9 }
  0xa2   : > { %v966_v12 = vsub.f32 %v339_v0, %v364_v10 }
  0xa3   : > { %v968_v13 = vsub.f32 %v343_v1, %v368_v11  ;;  %v350_v14 = vpop.xlane.xlu0 %349 }
  0xa4   : > { %v358_v15 = vpop.xlane.xlu1 %357  ;;  %v365_v16 = vmul.f32 0.0078125, %v350_v14  ;;  %v380_v17 = vmul.f32 %v966_v12, %v966_v12 }
  0xa5   : > { %v369_v18 = vmul.f32 0.0078125, %v358_v15  ;;  %v384_v21 = vmul.f32 %v968_v13, %v968_v13 }
  0xa6   : > { %v972_v19 = vsub.f32 %v340_v2, %v365_v16  ;;  %388 = vadd.xlane.f32.xlu0 %v380_v17  ;;  %v437_v2 = vadd.f32 1.0, %v436_v61 }
  0xa7   : > { %v974_v20 = vsub.f32 %v344_v3, %v369_v18  ;;  %v352_v22 = vpop.xlane.xlu0 %351  ;;  %v441_v3 = vsub.s32 0, %v440_v58 }
  0xa8   : > { %v354_v23 = vpop.xlane.xlu1 %353  ;;  %v366_v24 = vmul.f32 0.0078125, %v352_v22  ;;  %v381_v25 = vmul.f32 %v972_v19, %v972_v19 }
  0xa9   : > { %v367_v26 = vmul.f32 0.0078125, %v354_v23  ;;  %v385_v29 = vmul.f32 %v974_v20, %v974_v20  ;;  %v442_v11 = vrot.slane %v437_v2, %v441_v3 }
  0xaa   : > { %v980_v27 = vsub.f32 %v341_v4, %v366_v24  ;;  %396 = vadd.xlane.f32.xlu0 %v384_v21  ;;  %390 = vadd.xlane.f32.xlu1 %v381_v25  ;;  %v772_v24 = vld [vmem:[%s314_s27] ss:$0 sm:$0xff] }
  0xab   : > { %v982_v28 = vsub.f32 %v342_v5, %v367_v26  ;;  %v360_v30 = vpop.xlane.xlu0 %359 }
  0xac   : > { %v362_v31 = vpop.xlane.xlu1 %361  ;;  %v370_v32 = vmul.f32 0.0078125, %v360_v30  ;;  %v382_v33 = vmul.f32 %v980_v27, %v980_v27 }
  0xad   : > { %v371_v34 = vmul.f32 0.0078125, %v362_v31  ;;  %v383_v37 = vmul.f32 %v982_v28, %v982_v28 }
  0xae   : > { %v988_v35 = vsub.f32 %v345_v6, %v370_v32  ;;  %398 = vadd.xlane.f32.xlu1 %v385_v29  ;;  %392 = vadd.xlane.f32.xlu0 %v382_v33 }
  0xaf   : > { %v990_v36 = vsub.f32 %v346_v7, %v371_v34 }
  0xb0   : > { %v386_v38 = vmul.f32 %v988_v35, %v988_v35 }
  0xb1   : > { %v387_v39 = vmul.f32 %v990_v36, %v990_v36 }
  0xb2   : > { %394 = vadd.xlane.f32.xlu1 %v383_v37  ;;  %400 = vadd.xlane.f32.xlu0 %v386_v38 }
  0xb6   : > { %402 = vadd.xlane.f32.xlu1 %v387_v39 }
 0x133   : > { %v389_v48 = vpop.xlane.xlu0 %388 }
 0x134   : > { %v404_v49 = vmul.f32 0.0078125, %v389_v48 }
 0x136   : > { %v412_v50 = vadd.f32 1e-06, %v404_v49 }
 0x137   : > { %v391_v52 = vpop.xlane.xlu1 %390  ;;  %v397_v53 = vpop.xlane.xlu0 %396 }
 0x138   : > { %870 = vrsqrt.f32 %v412_v50  ;;  %v405_v54 = vmul.f32 0.0078125, %v391_v52  ;;  %v408_v55 = vmul.f32 0.0078125, %v397_v53 }
 0x13a   : > { %v413_v56 = vadd.f32 1e-06, %v405_v54  ;;  %v416_v57 = vadd.f32 1e-06, %v408_v55 }
 0x13b   : > { %v399_v59 = vpop.xlane.xlu1 %398  ;;  %v393_v60 = vpop.xlane.xlu0 %392 }
 0x13c   : > { %872 = vrsqrt.f32 %v413_v56  ;;  %v409_v62 = vmul.f32 0.0078125, %v399_v59  ;;  %v406_v63 = vmul.f32 0.0078125, %v393_v60 }
 0x13d   : > { %874 = vrsqrt.f32 %v416_v57 }
 0x13e   : > { %v417_v0 = vadd.f32 1e-06, %v409_v62  ;;  %v414_v1 = vadd.f32 1e-06, %v406_v63 }
 0x13f   : > { %v395_v4 = vpop.xlane.xlu1 %394  ;;  %v401_v5 = vpop.xlane.xlu0 %400 }
 0x140   : > { %876 = vrsqrt.f32 %v417_v0  ;;  %v407_v6 = vmul.f32 0.0078125, %v395_v4  ;;  %v410_v7 = vmul.f32 0.0078125, %v401_v5 }
 0x141   : > { %878 = vrsqrt.f32 %v414_v1 }
 0x142   : > { %v871_v8 = vpop.eup %870  ;;  %v415_v9 = vadd.f32 1e-06, %v407_v6  ;;  %v418_v10 = vadd.f32 1e-06, %v410_v7 }
 0x143   : > { %v403_v14 = vpop.xlane.xlu1 %402  ;;  %v428_v15 = vmul.f32 %v871_v8, %v966_v12 }
 0x144   : > { %880 = vrsqrt.f32 %v415_v9  ;;  %v411_v16 = vmul.f32 0.0078125, %v403_v14 }
 0x145   : > { %882 = vrsqrt.f32 %v418_v10  ;;  %v444_v23 = vmul.f32 %v442_v11, %v428_v15 }
 0x146   : > { %v873_v17 = vpop.eup %872  ;;  %v419_v18 = vadd.f32 1e-06, %v411_v16 }
 0x147   : > { %v875_v21 = vpop.eup %874  ;;  %v429_v22 = vmul.f32 %v873_v17, %v972_v19  ;;  %v459_v30 = vadd.f32 %v772_v24, %v444_v23 }
 0x148   : > { %884 = vrsqrt.f32 %v419_v18  ;;  %v432_v25 = vmul.f32 %v875_v21, %v968_v13 }
 0x149   : > { %v445_v26 = vmul.f32 %v442_v11, %v429_v22 }
 0x14a   : > { %v877_v29 = vpop.eup %876  ;;  %v448_v33 = vmul.f32 %v442_v11, %v432_v25 }
 0x14b   : > { %v879_v12 = vpop.eup %878  ;;  %v460_v31 = vadd.f32 %v772_v24, %v445_v26  ;;  %v433_v32 = vmul.f32 %v877_v29, %v974_v20 }
 0x14c   : > { %v430_v34 = vmul.f32 %v879_v12, %v980_v27  ;;  %v463_v19 = vadd.f32 %v772_v24, %v448_v33 }
 0x14d   : > { %v467_v37 = vpack.c.bf16 %v460_v31, %v459_v30  ;;  %v449_v38 = vmul.f32 %v442_v11, %v433_v32 }
 0x14e   : > { %v881_v39 = vpop.eup %880  ;;  %v446_v13 = vmul.f32 %v442_v11, %v430_v34 }
 0x14f   : > { %v883_v40 = vpop.eup %882  ;;  %814 = vmatprep.mubr.bf16.mxu0 %v467_v37  ;;  %v464_v41 = vadd.f32 %v772_v24, %v449_v38  ;;  %v431_v42 = vmul.f32 %v881_v39, %v982_v28  ;;  %v773_v28 = vld [vmem:[%s1067_s4] ss:$0 sm:$0xff] }
 0x150   : > { %v434_v43 = vmul.f32 %v883_v40, %v988_v35  ;;  %v461_v20 = vadd.f32 %v772_v24, %v446_v13 }
 0x151   : > { %v469_v44 = vpack.c.bf16 %v464_v41, %v463_v19  ;;  %v447_v45 = vmul.f32 %v442_v11, %v431_v42 }
 0x152   : > { %v885_v46 = vpop.eup %884  ;;  %v450_v48 = vmul.f32 %v442_v11, %v434_v43 }
 0x153   : > { %818 = vmatprep.mubr.bf16.mxu1 %v469_v44  ;;  %v462_v47 = vadd.f32 %v772_v24, %v447_v45  ;;  %v435_v27 = vmul.f32 %v885_v46, %v990_v36 }
 0x154   : > { %v465_v51 = vadd.f32 %v772_v24, %v450_v48 }
 0x155   : > { %v468_v49 = vpack.c.bf16 %v462_v47, %v461_v20  ;;  %v451_v50 = vmul.f32 %v442_v11, %v435_v27 }
 0x157   : > { %815 = vmatmul.mubr.bf16.vlgmr.msra.gmra.mrb[0].mxu0 %v468_v49  ;;  %v466_v52 = vadd.f32 %v772_v24, %v451_v50 }
 0x159   : > { %v470_v53 = vpack.c.bf16 %v466_v52, %v465_v51 }
 0x15b   : > { %819 = vmatmul.mubr.bf16.vlgmr.msra.gmra.mrb[0].mxu1 %v470_v53 }
 0x22a   : > { %v816_v35 = vpop.f32.mrb[0].mxu0 }
 0x22b   : > { %v585_v36 = vadd.f32 %v816_v35, %v773_v28  ;;  %v576_v54 = vpop.f32.mrb[1].mxu0 }
 0x22c   : > { %v577_v55 = vadd.f32 %v773_v28, %v576_v54  ;;  %v817_v56 = vpop.f32.mrb[2].mxu0 }
 0x22d   : > { %610 = vst.msk [vmem:[%s336_s7 + $0x10] sm:$0xff] %vm607_vm0, %v585_v36  ;;  %v588_v57 = vadd.f32 %v817_v56, %v773_v28  ;;  %v579_v58 = vpop.f32.mrb[3].mxu0 }
 0x22e   : > { %608 = vst.msk [vmem:[%s336_s7] sm:$0xff] %vm607_vm0, %v577_v55  ;;  %v580_v59 = vadd.f32 %v773_v28, %v579_v58  ;;  %v820_v60 = vpop.f32.mrb[0].mxu1 }
 0x22f   : > { %611 = vst.msk [vmem:[%s336_s7 + $0x18] sm:$0xff] %vm607_vm0, %v588_v57  ;;  %v601_v61 = vadd.f32 %v820_v60, %v773_v28  ;;  %v592_v62 = vpop.f32.mrb[1].mxu1 }
 0x230   : > { %609 = vst.msk [vmem:[%s336_s7 + $0x8] sm:$0xff] %vm607_vm0, %v580_v59  ;;  %v593_v63 = vadd.f32 %v773_v28, %v592_v62  ;;  %v821_v0 = vpop.f32.mrb[2].mxu1 }
 0x231   : > { %614 = vst.msk [vmem:[%s336_s7 + $0x30] sm:$0xff] %vm607_vm0, %v601_v61  ;;  %v604_v1 = vadd.f32 %v821_v0, %v773_v28  ;;  %v595_v2 = vpop.f32.mrb[3].mxu1 }
 0x232   : > { %612 = vst.msk [vmem:[%s336_s7 + $0x20] sm:$0xff] %vm607_vm0, %v593_v63  ;;  %v596_v3 = vadd.f32 %v773_v28, %v595_v2 }
 0x233   : > { %615 = vst.msk [vmem:[%s336_s7 + $0x38] sm:$0xff] %vm607_vm0, %v604_v1 }
 0x234   : > { %613 = vst.msk [vmem:[%s336_s7 + $0x28] sm:$0xff] %vm607_vm0, %v596_v3 }
 0x235 PF: > { %s15_s20 = sadd.s32 1, %s908_s20   ;;  %s1069_s18 = smov %s904_s19 }
 0x236   : > { %p12_p5 = scmp.ge.s32.totalorder %s15_s20, 4   ;;  %s1070_s19 = smov %s1072_s21 }
 0x238   :  { %14 = sbr.rel (!%p12_p5) target bundleno = 2 (0x2), region = 82 }

// kernel: dit_forward.21
= control target key start
LH: loop header
LB: loop body
LE: loop exit
PB: predicated region body
PF: predicated region fallthrough
CT: control target
= control target key end

     0   :  { %s1271_s18 = smov 0   ;;  %s1273_s19 = smov 0   ;;  %s1492_s0 = inlined_call_operand.vmem [shape: f32[2,64,512], index: 0, kind: input, shape index: {}]   ;;  %s1493_s1 = inlined_call_operand.vmem [shape: f32[2,64,128], index: 1, kind: input, shape index: {}]   ;;  %s1494_s2 = inlined_call_operand.vmem [shape: f32[2,1,128], index: 2, kind: input, shape index: {}]   ;;  %s1495_s3 = inlined_call_operand.vmem [shape: bf16[512,128], index: 3, kind: input, shape index: {}]   ;;  %s1496_s4 = inlined_call_operand.vmem [shape: f32[1,128], index: 4, kind: input, shape index: {}]   ;;  %s1497_s5 = inlined_call_operand.vmem [shape: f32[2,64,128], index: 5, kind: output, shape index: {}]  }
   0x1   :  { %s1275_s20 = smov 0  }
   0x2 LB: > { %s34_s21 = sadd.s32 1, %s1235_s19  ;;  %p1035_p0 = scmp.ge.s32.totalorder %s1239_s20, 1  ;;  %s1239_s20 = sphi %s1275_s20, %s15_s20   ;;  %s1235_s19 = sphi %s1273_s19, %s1499_s19   ;;  %s1231_s18 = sphi %s1271_s18, %s1498_s18  }
   0x3   : > { %p36_p1 = scmp.ge.s32.totalorder %s34_s21, 2  ;;  %p270_p2 = scmp.lt.s32.totalorder %s1239_s20, 3 }
   0x5   : > { %s1501_s21 = smov (%p36_p1, %s34_s21), 0  ;;  %p271_p3 = pnand %p1035_p0, %p270_p2 }
   0x6   : > { %v1185_v0 = vld [vmem:[%s1495_s3 + $0x40] sm:$0xff] (!%p271_p3)   ;;  %v1189_v4 = vld [vmem:[%s1495_s3 + $0x48] sm:$0xff] (!%p271_p3)   ;;  %v1193_v8 = vld [vmem:[%s1495_s3 + $0x50] sm:$0xff] (!%p271_p3)   ;;  %p336_p4 = scmp.lt.s32.totalorder (!%p271_p3), %s1231_s18, 1 }
   0x7   : > { %274 = sbr.rel (%p271_p3) target bundleno = 290 (0x122), region = 40  ;;  %v1186_v1 = vld [vmem:[%s1495_s3 + $0xc0] sm:$0xff] (!%p271_p3)   ;;  %1081 = vmatprep.subr.bf16.mxu0 (!%p271_p3), %v1185_v0  ;;  %v1190_v5 = vld [vmem:[%s1495_s3 + $0xc8] sm:$0xff] (!%p271_p3)   ;;  %v1194_v9 = vld [vmem:[%s1495_s3 + $0xd0] sm:$0xff] (!%p271_p3)  }
   0x8   : > { %v1187_v2 = vld [vmem:[%s1495_s3] sm:$0xff] (!%p271_p3)   ;;  %1121 = vmatprep.subr.bf16.mxu1 (!%p271_p3), %v1186_v1  ;;  %v1191_v6 = vld [vmem:[%s1495_s3 + $0x8] sm:$0xff] (!%p271_p3)   ;;  %v1195_v10 = vld [vmem:[%s1495_s3 + $0x10] sm:$0xff] (!%p271_p3)  }
   0x9   : > { %v1188_v3 = vld [vmem:[%s1495_s3 + $0x80] sm:$0xff] (!%p271_p3)   ;;  %1082 = vmatpush3.bf16.msra.mxu0 (!%p271_p3), %v1187_v2  ;;  %v1192_v7 = vld [vmem:[%s1495_s3 + $0x88] sm:$0xff] (!%p271_p3)   ;;  %v1196_v11 = vld [vmem:[%s1495_s3 + $0x90] sm:$0xff] (!%p271_p3)  }
   0xa   : > { %1122 = vmatpush3.bf16.msra.mxu1 (!%p271_p3), %v1188_v3  ;;  %1083 = vmatprep.subr.bf16.mxu0 (!%p271_p3), %v1189_v4  ;;  %v1197_v12 = vld [vmem:[%s1495_s3 + $0x58] sm:$0xff] (!%p271_p3)   ;;  %v1201_v16 = vld [vmem:[%s1495_s3 + $0x60] sm:$0xff] (!%p271_p3)   ;;  %v1205_v20 = vld [vmem:[%s1495_s3 + $0x68] sm:$0xff] (!%p271_p3)  }
   0xb   : > { %1123 = vmatprep.subr.bf16.mxu1 (!%p271_p3), %v1190_v5  ;;  %v1198_v13 = vld [vmem:[%s1495_s3 + $0xd8] sm:$0xff] (!%p271_p3)   ;;  %v1202_v17 = vld [vmem:[%s1495_s3 + $0xe0] sm:$0xff] (!%p271_p3)   ;;  %v1206_v21 = vld [vmem:[%s1495_s3 + $0xe8] sm:$0xff] (!%p271_p3)  }
   0xc   : > { %v1199_v14 = vld [vmem:[%s1495_s3 + $0x18] sm:$0xff] (!%p271_p3)   ;;  %v1203_v18 = vld [vmem:[%s1495_s3 + $0x20] sm:$0xff] (!%p271_p3)   ;;  %v1207_v22 = vld [vmem:[%s1495_s3 + $0x28] sm:$0xff] (!%p271_p3)  }
   0xd   : > { %1084 = vmatpush3.bf16.msra.mxu0 (!%p271_p3), %v1191_v6  ;;  %v1200_v15 = vld [vmem:[%s1495_s3 + $0x98] sm:$0xff] (!%p271_p3)   ;;  %v1204_v19 = vld [vmem:[%s1495_s3 + $0xa0] sm:$0xff] (!%p271_p3)   ;;  %v1208_v23 = vld [vmem:[%s1495_s3 + $0xa8] sm:$0xff] (!%p271_p3)  }
   0xe   : > { %1124 = vmatpush3.bf16.msra.mxu1 %v1192_v7  ;;  %1085 = vmatprep.subr.bf16.mxu0 %v1193_v8  ;;  %s1503_s18 = smov (!%p336_p4, %s1231_s18), 1  ;;  %v1209_v24 = vld [vmem:[%s1495_s3 + $0x70] sm:$0xff]   ;;  %v1213_v28 = vld [vmem:[%s1495_s3 + $0x78] sm:$0xff]  }
   0xf   : > { %1125 = vmatprep.subr.bf16.mxu1 %v1194_v9  ;;  %v1210_v25 = vld [vmem:[%s1495_s3 + $0xf0] sm:$0xff]   ;;  %s1078_s9 = sshll.u32 %s1503_s18, 8  ;;  %v1214_v29 = vld [vmem:[%s1495_s3 + $0xf8] sm:$0xff]   ;;  %s1079_s29 = sshll.u32 %s1503_s18, 6 }
  0x10   : > { %v1211_v26 = vld [vmem:[%s1495_s3 + $0x30] sm:$0xff]   ;;  %s1389_s22 = scalar_lea.vmem %s1492_s0, %s1078_s9  ;;  %v1215_v30 = vld [vmem:[%s1495_s3 + $0x38] sm:$0xff]   ;;  %s364_s7 = scalar_lea.vmem %s1494_s2, %s1503_s18 }
  0x11   : > { %1086 = vmatpush3.bf16.msra.mxu0 %v1195_v10  ;;  %v1212_v27 = vld [vmem:[%s1495_s3 + $0xb0] sm:$0xff]   ;;  %v1216_v31 = vld [vmem:[%s1495_s3 + $0xb8] sm:$0xff]   ;;  %v387_v32 = vld [vmem:[%s1389_s22 + $0x8] sm:$0xff]  ;;  %s1443_s10 = scalar_lea.vmem %s1493_s1, %s1079_s29  ;;  %s1453_s12 = scalar_lea.vmem %s1497_s5, %s1079_s29 }
  0x12   : > { %1126 = vmatpush3.bf16.msra.mxu1 %v1196_v11  ;;  %1087 = vmatprep.subr.bf16.mxu0 %v1197_v12  ;;  %v391_v33 = vld [vmem:[%s1389_s22 + $0x28] sm:$0xff]  ;;  %v389_v34 = vld [vmem:[%s1389_s22 + $0x18] sm:$0xff]  ;;  %v386_v37 = vld [vmem:[%s1389_s22] sm:$0xff] }
  0x13   : > { %1127 = vmatprep.subr.bf16.mxu1 %v1198_v13  ;;  %v419_v35 = vpack.c.bf16 %v391_v33, %v387_v32  ;;  %v393_v36 = vld [vmem:[%s1389_s22 + $0x38] sm:$0xff]  ;;  %v390_v38 = vld [vmem:[%s1389_s22 + $0x20] sm:$0xff]  ;;  %v388_v41 = vld [vmem:[%s1389_s22 + $0x10] sm:$0xff] }
  0x14   : > { %v421_v39 = vpack.c.bf16 %v393_v36, %v389_v34  ;;  %v418_v40 = vpack.c.bf16 %v390_v38, %v386_v37  ;;  %v392_v42 = vld [vmem:[%s1389_s22 + $0x30] sm:$0xff]  ;;  %v395_v43 = vld [vmem:[%s1389_s22 + $0x48] sm:$0xff]  ;;  %v397_v46 = vld [vmem:[%s1389_s22 + $0x58] sm:$0xff] }
  0x15   : > { %1088 = vmatpush3.bf16.msra.mxu0 %v1199_v14  ;;  %729 = vmatprep.mubr.bf16.mxu0 %v419_v35  ;;  %v420_v44 = vpack.c.bf16 %v392_v42, %v388_v41  ;;  %v399_v45 = vld [vmem:[%s1389_s22 + $0x68] sm:$0xff]  ;;  %v401_v47 = vld [vmem:[%s1389_s22 + $0x78] sm:$0xff]  ;;  %v394_v50 = vld [vmem:[%s1389_s22 + $0x40] sm:$0xff] }
  0x16   : > { %1128 = vmatpush3.bf16.msra.mxu1 %v1200_v15  ;;  %1089 = vmatprep.subr.bf16.mxu0 %v1201_v16  ;;  %v423_v48 = vpack.c.bf16 %v399_v45, %v395_v43  ;;  %v425_v49 = vpack.c.bf16 %v401_v47, %v397_v46  ;;  %v398_v51 = vld [vmem:[%s1389_s22 + $0x60] sm:$0xff]  ;;  %v396_v52 = vld [vmem:[%s1389_s22 + $0x50] sm:$0xff]  ;;  %v403_v54 = vld [vmem:[%s1389_s22 + $0x88] sm:$0xff] }
  0x17   : > { %1129 = vmatprep.subr.bf16.mxu1 %v1202_v17  ;;  %794 = vmatprep.mubr.bf16.mxu1 %v421_v39  ;;  %v400_v53 = vld [vmem:[%s1389_s22 + $0x70] sm:$0xff]  ;;  %v407_v55 = vld [vmem:[%s1389_s22 + $0xa8] sm:$0xff]  ;;  %v405_v56 = vld [vmem:[%s1389_s22 + $0x98] sm:$0xff]  ;;  %v422_v58 = vpack.c.bf16 %v398_v51, %v394_v50 }
  0x18   : > { %v409_v57 = vld [vmem:[%s1389_s22 + $0xb8] sm:$0xff]  ;;  %v424_v59 = vpack.c.bf16 %v400_v53, %v396_v52  ;;  %v427_v60 = vpack.c.bf16 %v407_v55, %v403_v54  ;;  %v402_v62 = vld [vmem:[%s1389_s22 + $0x80] sm:$0xff]  ;;  %v404_v0 = vld [vmem:[%s1389_s22 + $0x90] sm:$0xff] }
  0x19   : > { %1090 = vmatpush3.bf16.msra.mxu0 %v1203_v18  ;;  %v429_v61 = vpack.c.bf16 %v409_v57, %v405_v56  ;;  %v406_v63 = vld [vmem:[%s1389_s22 + $0xa0] sm:$0xff]  ;;  %v408_v1 = vld [vmem:[%s1389_s22 + $0xb0] sm:$0xff]  ;;  %v411_v2 = vld [vmem:[%s1389_s22 + $0xc8] sm:$0xff] }
  0x1a   : > { %1130 = vmatpush3.bf16.msra.mxu1 %v1204_v19  ;;  %1091 = vmatprep.subr.bf16.mxu0 %v1205_v20  ;;  %v415_v3 = vld [vmem:[%s1389_s22 + $0xe8] sm:$0xff]  ;;  %v413_v4 = vld [vmem:[%s1389_s22 + $0xd8] sm:$0xff]  ;;  %v426_v6 = vpack.c.bf16 %v406_v63, %v402_v62  ;;  %v428_v7 = vpack.c.bf16 %v408_v1, %v404_v0  ;;  %v410_v10 = vld [vmem:[%s1389_s22 + $0xc0] sm:$0xff] }
  0x1b   : > { %1131 = vmatprep.subr.bf16.mxu1 %v1206_v21  ;;  %v417_v5 = vld [vmem:[%s1389_s22 + $0xf8] sm:$0xff]  ;;  %v431_v8 = vpack.c.bf16 %v415_v3, %v411_v2  ;;  %v414_v11 = vld [vmem:[%s1389_s22 + $0xe0] sm:$0xff]  ;;  %v412_v12 = vld [vmem:[%s1389_s22 + $0xd0] sm:$0xff] }
  0x1c   : > { %v433_v9 = vpack.c.bf16 %v417_v5, %v413_v4  ;;  %v416_v13 = vld [vmem:[%s1389_s22 + $0xf0] sm:$0xff]  ;;  %v430_v14 = vpack.c.bf16 %v414_v11, %v410_v10  ;;  %v1432_v18 = vld [vmem:[%s1496_s4] ss:$0 sm:$0xff]  ;;  %v828_v37 = vld [vmem:[%s1443_s10 + $0x8] sm:$0xff] }
  0x1d   : > { %1092 = vmatpush3.bf16.msra.mxu0 %v1207_v22  ;;  %v432_v15 = vpack.c.bf16 %v416_v13, %v412_v12  ;;  %v827_v33 = vld [vmem:[%s1443_s10] sm:$0xff]  ;;  %v829_v55 = vld [vmem:[%s1443_s10 + $0x10] sm:$0xff] }
  0x1e   : > { %1132 = vmatpush3.bf16.msra.mxu1 %v1208_v23  ;;  %1093 = vmatprep.subr.bf16.mxu0 %v1209_v24  ;;  %v831_v13 = vld [vmem:[%s1443_s10 + $0x20] sm:$0xff] }
  0x1f   : > { %1133 = vmatprep.subr.bf16.mxu1 %v1210_v25 }
  0x21   : > { %1094 = vmatpush3.bf16.msra.mxu0 %v1211_v26 }
  0x22   : > { %1134 = vmatpush3.bf16.msra.mxu1 %v1212_v27  ;;  %1095 = vmatprep.subr.bf16.mxu0 %v1213_v28 }
  0x23   : > { %1135 = vmatprep.subr.bf16.mxu1 %v1214_v29  ;;  %v1445_v29 = vld [vmem:[%s364_s7] ss:$0 sm:$0xff] }
  0x25   : > { %1096 = vmatpush3.bf16.msra.mxu0 %v1215_v30 }
  0x26   : > { %1136 = vmatpush3.bf16.msra.mxu1 %v1216_v31 }
  0x28   : > { %730 = vmatmul.mubr.bf16.vlgmr.msra.gmra.mrb[0].mxu0 %v418_v40 }
  0x29   : > { %795 = vmatmul.mubr.bf16.vlgmr.msra.gmra.mrb[0].mxu1 %v420_v44  ;;  %737 = vmatprep.mubr.bf16.mxu0 %v423_v48 }
  0x2a   : > { %802 = vmatprep.mubr.bf16.mxu1 %v425_v49 }
  0x30   : > { %738 = vmatmul.mubr.bf16.gmra.mrb[4].mxu0 %v422_v58 }
  0x31   : > { %803 = vmatmul.mubr.bf16.gmra.mrb[4].mxu1 %v424_v59  ;;  %745 = vmatprep.mubr.bf16.mxu0 %v427_v60  ;;  %v830_v59 = vld [vmem:[%s1443_s10 + $0x18] sm:$0xff] }
  0x32   : > { %810 = vmatprep.mubr.bf16.mxu1 %v429_v61 }
  0x38   : > { %746 = vmatmul.mubr.bf16.gmra.mrb[8].mxu0 %v426_v6 }
  0x39   : > { %811 = vmatmul.mubr.bf16.gmra.mrb[8].mxu1 %v428_v7  ;;  %753 = vmatprep.mubr.bf16.mxu0 %v431_v8 }
  0x3a   : > { %818 = vmatprep.mubr.bf16.mxu1 %v433_v9 }
  0x40   : > { %754 = vmatmul.mubr.bf16.gmra.mrb[12].mxu0 %v430_v14 }
  0x41   : > { %819 = vmatmul.mubr.bf16.gmra.mrb[12].mxu1 %v432_v15 }
  0xfb   : > { %v1097_v16 = vpop.f32.mrb[0].mxu0 }
  0xfc   : > { %v1137_v17 = vpop.f32.mrb[0].mxu1  ;;  %v1098_v19 = vpop.f32.mrb[1].mxu0 }
  0xfd   : > { %v1099_v20 = vadd.f32 %v1098_v19, %v1097_v16  ;;  %v1138_v21 = vpop.f32.mrb[1].mxu1  ;;  %v1100_v22 = vpop.f32.mrb[2].mxu0 }
  0xfe   : > { %v1139_v23 = vadd.f32 %v1138_v21, %v1137_v17  ;;  %v1140_v24 = vpop.f32.mrb[2].mxu1  ;;  %v1101_v25 = vpop.f32.mrb[3].mxu0  ;;  %v832_v17 = vld [vmem:[%s1443_s10 + $0x28] sm:$0xff] }
  0xff   : > { %v732_v26 = vadd.f32 %v1099_v20, %v1432_v18  ;;  %v1102_v27 = vadd.f32 %v1101_v25, %v1100_v22  ;;  %v1141_v28 = vpop.f32.mrb[3].mxu1 }
 0x100   : > { %v1142_v30 = vadd.f32 %v1141_v28, %v1140_v24 }
 0x101   : > { %v797_v31 = vadd.f32 %v1139_v23, %v732_v26  ;;  %v735_v32 = vadd.f32 %v1102_v27, %v1432_v18 }
 0x103   : > { %v842_v34 = vmul.f32 %v1445_v29, %v797_v31  ;;  %v800_v35 = vadd.f32 %v1142_v30, %v735_v32  ;;  %v1103_v36 = vpop.f32.mrb[4].mxu0 }
 0x104   : > { %v1143_v38 = vpop.f32.mrb[4].mxu1  ;;  %v1104_v39 = vpop.f32.mrb[5].mxu0 }
 0x105   : > { %v850_v40 = vadd.f32 %v842_v34, %v827_v33  ;;  %v843_v41 = vmul.f32 %v1445_v29, %v800_v35  ;;  %v1105_v42 = vadd.f32 %v1104_v39, %v1103_v36  ;;  %v1144_v43 = vpop.f32.mrb[5].mxu1  ;;  %v1106_v44 = vpop.f32.mrb[6].mxu0 }
 0x106   : > { %v1145_v45 = vadd.f32 %v1144_v43, %v1143_v38  ;;  %v1146_v46 = vpop.f32.mrb[6].mxu1  ;;  %v1107_v47 = vpop.f32.mrb[7].mxu0 }
 0x107   : > { %858 = vst [vmem:[%s1453_s12] sm:$0xff] %v850_v40  ;;  %v851_v48 = vadd.f32 %v843_v41, %v828_v37  ;;  %v740_v49 = vadd.f32 %v1105_v42, %v1432_v18  ;;  %v1108_v50 = vadd.f32 %v1107_v47, %v1106_v44  ;;  %v1147_v51 = vpop.f32.mrb[7].mxu1  ;;  %v833_v37 = vld [vmem:[%s1443_s10 + $0x30] sm:$0xff]  ;;  %v834_v40 = vld [vmem:[%s1443_s10 + $0x38] sm:$0xff] }
 0x108   : > { %v1148_v52 = vadd.f32 %v1147_v51, %v1146_v46 }
 0x109   : > { %859 = vst [vmem:[%s1453_s12 + $0x8] sm:$0xff] %v851_v48  ;;  %v805_v53 = vadd.f32 %v1145_v45, %v740_v49  ;;  %v743_v54 = vadd.f32 %v1108_v50, %v1432_v18 }
 0x10b   : > { %v844_v56 = vmul.f32 %v1445_v29, %v805_v53  ;;  %v808_v57 = vadd.f32 %v1148_v52, %v743_v54  ;;  %v1109_v58 = vpop.f32.mrb[8].mxu0 }
 0x10c   : > { %v1149_v60 = vpop.f32.mrb[8].mxu1  ;;  %v1110_v61 = vpop.f32.mrb[9].mxu0 }
 0x10d   : > { %v852_v62 = vadd.f32 %v844_v56, %v829_v55  ;;  %v845_v63 = vmul.f32 %v1445_v29, %v808_v57  ;;  %v1111_v0 = vadd.f32 %v1110_v61, %v1109_v58  ;;  %v1150_v1 = vpop.f32.mrb[9].mxu1  ;;  %v1112_v2 = vpop.f32.mrb[10].mxu0 }
 0x10e   : > { %v1151_v3 = vadd.f32 %v1150_v1, %v1149_v60  ;;  %v1152_v4 = vpop.f32.mrb[10].mxu1  ;;  %v1113_v5 = vpop.f32.mrb[11].mxu0 }
 0x10f   : > { %860 = vst [vmem:[%s1453_s12 + $0x10] sm:$0xff] %v852_v62  ;;  %v853_v6 = vadd.f32 %v845_v63, %v830_v59  ;;  %v748_v7 = vadd.f32 %v1111_v0, %v1432_v18  ;;  %v1114_v8 = vadd.f32 %v1113_v5, %v1112_v2  ;;  %v1153_v9 = vpop.f32.mrb[11].mxu1 }
 0x110   : > { %v1154_v10 = vadd.f32 %v1153_v9, %v1152_v4 }
 0x111   : > { %861 = vst [vmem:[%s1453_s12 + $0x18] sm:$0xff] %v853_v6  ;;  %v813_v11 = vadd.f32 %v1151_v3, %v748_v7  ;;  %v751_v12 = vadd.f32 %v1114_v8, %v1432_v18 }
 0x113   : > { %v846_v14 = vmul.f32 %v1445_v29, %v813_v11  ;;  %v816_v15 = vadd.f32 %v1154_v10, %v751_v12  ;;  %v1115_v16 = vpop.f32.mrb[12].mxu0 }
 0x114   : > { %v1155_v19 = vpop.f32.mrb[12].mxu1  ;;  %v1116_v20 = vpop.f32.mrb[13].mxu0 }
 0x115   : > { %v854_v21 = vadd.f32 %v846_v14, %v831_v13  ;;  %v847_v22 = vmul.f32 %v1445_v29, %v816_v15  ;;  %v1117_v23 = vadd.f32 %v1116_v20, %v1115_v16  ;;  %v1156_v24 = vpop.f32.mrb[13].mxu1  ;;  %v1118_v25 = vpop.f32.mrb[14].mxu0 }
 0x116   : > { %v1157_v26 = vadd.f32 %v1156_v24, %v1155_v19  ;;  %v1158_v27 = vpop.f32.mrb[14].mxu1  ;;  %v1119_v28 = vpop.f32.mrb[15].mxu0 }
 0x117   : > { %862 = vst [vmem:[%s1453_s12 + $0x20] sm:$0xff] %v854_v21  ;;  %v855_v30 = vadd.f32 %v847_v22, %v832_v17  ;;  %v756_v31 = vadd.f32 %v1117_v23, %v1432_v18  ;;  %v1120_v32 = vadd.f32 %v1119_v28, %v1118_v25  ;;  %v1159_v33 = vpop.f32.mrb[15].mxu1 }
 0x118   : > { %v1160_v34 = vadd.f32 %v1159_v33, %v1158_v27 }
 0x119   : > { %863 = vst [vmem:[%s1453_s12 + $0x28] sm:$0xff] %v855_v30  ;;  %v821_v35 = vadd.f32 %v1157_v26, %v756_v31  ;;  %v759_v36 = vadd.f32 %v1120_v32, %v1432_v18 }
 0x11b   : > { %v848_v38 = vmul.f32 %v1445_v29, %v821_v35  ;;  %v824_v39 = vadd.f32 %v1160_v34, %v759_v36 }
 0x11d   : > { %v856_v41 = vadd.f32 %v848_v38, %v833_v37  ;;  %v849_v42 = vmul.f32 %v1445_v29, %v824_v39 }
 0x11f   : > { %864 = vst [vmem:[%s1453_s12 + $0x30] sm:$0xff] %v856_v41  ;;  %v857_v43 = vadd.f32 %v849_v42, %v834_v40 }
 0x121   : > { %865 = vst [vmem:[%s1453_s12 + $0x38] sm:$0xff] %v857_v43 }
 0x122 PF: > { %s15_s20 = sadd.s32 1, %s1239_s20   ;;  %s1498_s18 = smov %s1235_s19 }
 0x123   : > { %p12_p5 = scmp.ge.s32.totalorder %s15_s20, 4   ;;  %s1499_s19 = smov %s1501_s21 }
 0x125   :  { %14 = sbr.rel (!%p12_p5) target bundleno = 2 (0x2), region = 82 }

</bundles_post_ra>
